<compile_context>
chip_gen: v7x
topology: tpu7x:2x2x1
jax: 0.10.0
libtpu: 0.0.40
codegen_flags: <defaults>
</compile_context>

<pallas_src>
import math
import jax
import jax.numpy as jnp
from jax.experimental import pallas as pl
from jax.experimental.pallas import tpu as pltpu

NEG_SLOPE = 0.01     # PyTorch LeakyReLU default
HIDDEN = 128         # LSTM hidden / embed width (fixed by the module)
LAYERS = 2
EMB_HID = 64         # nn_block hidden width
PAD = 128            # lane-dense padding of the final output


def _leaky(x):
    return jnp.where(x > 0, x, NEG_SLOPE * x)


# ----------------------------------------------------------------------------
# Fused kernel: embed MLP -> 2-layer LSTM -> decode MLP (everything in VMEM/vregs)
# ----------------------------------------------------------------------------
def sub_pose_kernel(x_ref, h0_ref, c0_ref,
                    we1_ref, be1_ref,
                    wx0_ref, bx0_ref, wx1_ref, bx1_ref,
                    whh_ref,
                    wd1_ref, bd1_ref, wd2_ref, bd2_ref,
                    y_ref, hn_ref, cn_ref):
    L, B, H = h0_ref.shape
    SB = x_ref.shape[0]
    S = SB // B
    H4 = 4 * H

    # ---- data_embed layer 1 (layer 2 is folded into LSTM layer-0 input proj) ----
    e = _leaky(jnp.dot(x_ref[...], we1_ref[...],
                       preferred_element_type=jnp.float32) + be1_ref[...])   # (S*B,64) f32

    def run_layer(xw, h, c, whh):
        # xw: (S, B, 4H) f32 hoisted input projection (biases included),
        # tile-aligned per-step reads. h, c: (B, H) f32. whh: (H, 4H) bf16.
        hs = []
        for t in range(S):                       # fully unrolled serial recurrence
            gates = xw[t] + jnp.dot(h.astype(jnp.bfloat16), whh,
                                    preferred_element_type=jnp.float32)      # (B,4H) f32
            if_g = jax.nn.sigmoid(gates[:, :2 * H])        # i|f in one EUP pass
            g_g = jnp.tanh(gates[:, 2 * H:3 * H])
            o_g = jax.nn.sigmoid(gates[:, 3 * H:])
            c = if_g[:, H:] * c + if_g[:, :H] * g_g        # f*c + i*g
            h = o_g * jnp.tanh(c)
            hs.append(h)
        # time-major (S*B, H) sequence stays a value (2 vregs), no VMEM round-trip
        return jnp.concatenate(hs, axis=0), h, c

    # ---- LSTM layer 0 (input proj K=64 thanks to the embed-layer-2 fold) ----
    xw0 = (jnp.dot(e.astype(jnp.bfloat16), wx0_ref[...],
                   preferred_element_type=jnp.float32)
           + bx0_ref[...]).reshape(S, B, H4)
    seq0, h0n, c0n = run_layer(xw0, h0_ref[0], c0_ref[0], whh_ref[0])
    hn_ref[0] = h0n
    cn_ref[0] = c0n

    # ---- LSTM layer 1 ----
    xw1 = (jnp.dot(seq0.astype(jnp.bfloat16), wx1_ref[...],
                   preferred_element_type=jnp.float32)
           + bx1_ref[...]).reshape(S, B, H4)
    seq1, h1n, c1n = run_layer(xw1, h0_ref[1], c0_ref[1], whh_ref[1])
    hn_ref[1] = h1n
    cn_ref[1] = c1n

    # ---- decode: Linear -> LeakyReLU -> Linear (lane-dense 128-wide padded output) ----
    d = _leaky(jnp.dot(seq1.astype(jnp.bfloat16), wd1_ref[...],
                       preferred_element_type=jnp.float32) + bd1_ref[...])
    y_ref[...] = (jnp.dot(d.astype(jnp.bfloat16), wd2_ref[...],
                          preferred_element_type=jnp.float32)
                  + bd2_ref[...]).astype(y_ref.dtype)


# ----------------------------------------------------------------------------
# Parameter prep: fold embed layer-2 into LSTM layer-0 input proj, cast the
# large matmul weights to bf16 (MXU-native on v5e / v6e / v7x).
# ----------------------------------------------------------------------------
def prepare_params(embed_params, lstm_params, decode_params):
    we1, be1, we2, be2 = embed_params            # (D,64),(1,64),(64,128),(1,128)
    wih, whh, blstm = lstm_params                # (L,H,4H),(L,H,4H),(L,1,4H)
    wd1, bd1, wd2p, bd2p = decode_params         # (128,64),(1,64),(64,PAD),(1,PAD)
    wx0 = we2 @ wih[0]                           # (64, 4H)   exact fold
    bx0 = be2 @ wih[0] + blstm[0]                # (1, 4H)
    bf16 = lambda a: a.astype(jnp.bfloat16)
    return dict(we1=we1, be1=be1,                # tiny K=12 layer stays f32
                wx0=bf16(wx0), bx0=bx0,
                wx1=bf16(wih[1]), bx1=blstm[1],
                whh=bf16(whh),
                wd1=bf16(wd1), bd1=bd1,
                wd2=bf16(wd2p), bd2=bd2p)


# ----------------------------------------------------------------------------
# Wrapper
# ----------------------------------------------------------------------------
def sub_pose_forward(x, hc, params, out_dim):
    B, S, D = x.shape
    H, L = HIDDEN, LAYERS
    if hc is None:
        h0 = jnp.zeros((L, B, H), jnp.float32)
        c0 = jnp.zeros((L, B, H), jnp.float32)
    else:
        h0, c0 = hc

    # time-major rows (row index = t * B + b); tiny one-off transpose in XLA
    x_tm = jnp.transpose(x, (1, 0, 2)).reshape(S * B, D)

    p = params
    args = (x_tm, h0, c0, p["we1"], p["be1"], p["wx0"], p["bx0"], p["wx1"],
            p["bx1"], p["whh"], p["wd1"], p["bd1"], p["wd2"], p["bd2"])

    H4 = 4 * H
    flops = int(2 * S * B * (D * EMB_HID                       # embed layer 1
                             + EMB_HID * H4                    # layer-0 input proj (fused)
                             + H * H4                          # layer-1 input proj
                             + H * EMB_HID + EMB_HID * PAD)    # decode
                + L * S * 2 * B * H * H4)                      # recurrent matmuls
    transcendentals = int(L * S * B * 5 * H)                   # sigmoid(3H)+tanh(2H) per row/step
    bytes_accessed = int(sum(a.size * a.dtype.itemsize for a in args)
                         + 4 * (S * B * PAD + 2 * L * B * H))

    vspec = pl.BlockSpec(memory_space=pltpu.MemorySpace.VMEM)
    y_pad, hn, cn = pl.pallas_call(
        sub_pose_kernel,
        out_shape=(jax.ShapeDtypeStruct((S * B, PAD), jnp.float32),   # lane-dense output slab
                   jax.ShapeDtypeStruct((L, B, H), jnp.float32),      # h_n
                   jax.ShapeDtypeStruct((L, B, H), jnp.float32)),     # c_n
        in_specs=[vspec] * len(args),
        out_specs=(vspec, vspec, vspec),
        cost_estimate=pl.CostEstimate(flops=flops,
                                      transcendentals=transcendentals,
                                      bytes_accessed=bytes_accessed),
    )(*args)

    y = jnp.transpose(y_pad.reshape(S, B, PAD), (1, 0, 2))[:, :, :out_dim]  # (B,S,out)
    return y, (hn, cn)


# ----------------------------------------------------------------------------
# Pure-JAX f32 reference (PyTorch semantics) for validation.
# ----------------------------------------------------------------------------
def sub_pose_reference(x, hc, embed_params, lstm_params, decode_params, out_dim):
    B, S, D = x.shape
    H = HIDDEN
    we1, be1, we2, be2 = embed_params
    wih, whh, blstm = lstm_params
    wd1, bd1, wd2p, bd2p = decode_params
    h, c = hc
    e = _leaky(x.reshape(B * S, D) @ we1 + be1) @ we2 + be2
    seq = e.reshape(B, S, H)
    hs, cs = [], []
    for layer in range(LAYERS):
        hl, cl = h[layer], c[layer]
        outs = []
        for t in range(S):
            g = seq[:, t, :] @ wih[layer] + hl @ whh[layer] + blstm[layer]
            i = jax.nn.sigmoid(g[:, :H]); f = jax.nn.sigmoid(g[:, H:2 * H])
            gg = jnp.tanh(g[:, 2 * H:3 * H]); o = jax.nn.sigmoid(g[:, 3 * H:])
            cl = f * cl + i * gg
            hl = o * jnp.tanh(cl)
            outs.append(hl)
        seq = jnp.stack(outs, axis=1)
        hs.append(hl); cs.append(cl)
    y = _leaky(seq.reshape(B * S, H) @ wd1 + bd1) @ wd2p + bd2p
    return y.reshape(B, S, PAD)[:, :, :out_dim], (jnp.stack(hs), jnp.stack(cs))


# ----------------------------------------------------------------------------
# Deterministic parameter init (PyTorch-style uniform bounds, synthetic values).
# Linear weights stored transposed as (in, out) so kernels compute x @ W + b.
# ----------------------------------------------------------------------------
def init_linear(key, fan_in, fan_out):
    k1, k2 = jax.random.split(key)
    bound = 1.0 / math.sqrt(fan_in)
    w = jax.random.uniform(k1, (fan_in, fan_out), jnp.float32, -bound, bound)
    b = jax.random.uniform(k2, (1, fan_out), jnp.float32, -bound, bound)
    return w, b


def init_block(key, d_in, d_hid, d_out):
    k1, k2 = jax.random.split(key)
    w1, b1 = init_linear(k1, d_in, d_hid)
    w2, b2 = init_linear(k2, d_hid, d_out)
    return w1, b1, w2, b2


def init_decode(key, d_in, d_hid, d_out, pad_to=PAD):
    w1, b1, w2, b2 = init_block(key, d_in, d_hid, d_out)
    w2p = jnp.zeros((d_hid, pad_to), jnp.float32).at[:, :d_out].set(w2)
    b2p = jnp.zeros((1, pad_to), jnp.float32).at[:, :d_out].set(b2)
    return w1, b1, w2p, b2p


def init_lstm(key, hidden, num_layers):
    bound = 1.0 / math.sqrt(hidden)
    wih, whh, bias = [], [], []
    for _ in range(num_layers):
        key, k1, k2, k3, k4 = jax.random.split(key, 5)
        wih.append(jax.random.uniform(k1, (hidden, 4 * hidden), jnp.float32, -bound, bound))
        whh.append(jax.random.uniform(k2, (hidden, 4 * hidden), jnp.float32, -bound, bound))
        bih = jax.random.uniform(k3, (1, 4 * hidden), jnp.float32, -bound, bound)
        bhh = jax.random.uniform(k4, (1, 4 * hidden), jnp.float32, -bound, bound)
        bias.append(bih + bhh)                     # pre-summed (off the critical path)
    return jnp.stack(wih), jnp.stack(whh), jnp.stack(bias)


if __name__ == "__main__":
    B, S = 2, 8
    D_IN, OUT = 12, 3

    root = jax.random.PRNGKey(0)
    k_x, k_h, k_c, k_emb, k_lstm, k_dec = jax.random.split(root, 6)

    x = jax.random.normal(k_x, (B, S, D_IN), jnp.float32)
    h0 = jax.random.normal(k_h, (LAYERS, B, HIDDEN), jnp.float32) * 0.1
    c0 = jax.random.normal(k_c, (LAYERS, B, HIDDEN), jnp.float32) * 0.1

    embed_params = init_block(k_emb, D_IN, EMB_HID, HIDDEN)           # data_embed
    lstm_params = init_lstm(k_lstm, HIDDEN, LAYERS)                   # LSTM (unidirectional)
    decode_params = init_decode(k_dec, HIDDEN, EMB_HID, OUT)          # decode (padded to 128)

    params = prepare_params(embed_params, lstm_params, decode_params)

    out, (hn, cn) = sub_pose_forward(x, (h0, c0), params, OUT)
    jax.block_until_ready((out, hn, cn))

    assert out.shape == (B, S, OUT)
    assert hn.shape == (LAYERS, B, HIDDEN)
    assert cn.shape == (LAYERS, B, HIDDEN)

    # Validate against an f32 pure-JAX reference (bf16 MXU operands -> loose tol).
    ref_y, (ref_hn, ref_cn) = sub_pose_reference(x, (h0, c0), embed_params,
                                                 lstm_params, decode_params, OUT)
    assert float(jnp.max(jnp.abs(out - ref_y))) < 5e-2
    assert float(jnp.max(jnp.abs(hn - ref_hn))) < 5e-2
    assert float(jnp.max(jnp.abs(cn - ref_cn))) < 5e-2

    print("KERNEL_OK")
</pallas_src>

<mosaic_0001>
module attributes {stable_mosaic.version = 11 : i64} {
  func.func @sub_pose_kernel(%arg0: memref<16x12xf32, #tpu.memory_space<vmem>>, %arg1: memref<2x2x128xf32, #tpu.memory_space<vmem>>, %arg2: memref<2x2x128xf32, #tpu.memory_space<vmem>>, %arg3: memref<12x64xf32, #tpu.memory_space<vmem>>, %arg4: memref<1x64xf32, #tpu.memory_space<vmem>>, %arg5: memref<64x512xbf16, #tpu.memory_space<vmem>>, %arg6: memref<1x512xf32, #tpu.memory_space<vmem>>, %arg7: memref<128x512xbf16, #tpu.memory_space<vmem>>, %arg8: memref<1x512xf32, #tpu.memory_space<vmem>>, %arg9: memref<2x128x512xbf16, #tpu.memory_space<vmem>>, %arg10: memref<128x64xbf16, #tpu.memory_space<vmem>>, %arg11: memref<1x64xf32, #tpu.memory_space<vmem>>, %arg12: memref<64x128xbf16, #tpu.memory_space<vmem>>, %arg13: memref<1x128xf32, #tpu.memory_space<vmem>>, %arg14: memref<16x128xf32, #tpu.memory_space<vmem>>, %arg15: memref<2x2x128xf32, #tpu.memory_space<vmem>>, %arg16: memref<2x2x128xf32, #tpu.memory_space<vmem>>) attributes {dimension_semantics = [], scalar_prefetch = 0 : i64, scratch_operands = 0 : i64, tpu.core_type = #tpu.core_type<tc>} {
    %c0 = arith.constant 0 : index
    %c0_0 = arith.constant 0 : index
    %0 = vector.load %arg0[%c0, %c0_0] : memref<16x12xf32, #tpu.memory_space<vmem>>, vector<16x12xf32>
    %c0_1 = arith.constant 0 : index
    %c0_2 = arith.constant 0 : index
    %1 = vector.load %arg3[%c0_1, %c0_2] : memref<12x64xf32, #tpu.memory_space<vmem>>, vector<12x64xf32>
    %cst = arith.constant dense<0.000000e+00> : vector<16x64xf32>
    %2 = tpu.matmul %0, %1, %cst {dimension_numbers = #tpu.dot_dimension_numbers<[1], [0], [0], [1], [0, 0, 1, 1], [], []>} : vector<16x12xf32>, vector<12x64xf32>, vector<16x64xf32> -> vector<16x64xf32>
    %c0_3 = arith.constant 0 : index
    %c0_4 = arith.constant 0 : index
    %3 = vector.load %arg4[%c0_3, %c0_4] : memref<1x64xf32, #tpu.memory_space<vmem>>, vector<1x64xf32>
    %4 = vector.broadcast %3 : vector<1x64xf32> to vector<16x64xf32>
    %5 = arith.addf %2, %4 : vector<16x64xf32>
    %cst_5 = arith.constant 0.000000e+00 : f32
    %6 = vector.broadcast %cst_5 : f32 to vector<16x64xf32>
    %7 = arith.cmpf ogt, %5, %6 : vector<16x64xf32>
    %cst_6 = arith.constant 0.00999999977 : f32
    %8 = vector.broadcast %cst_6 : f32 to vector<16x64xf32>
    %9 = arith.mulf %8, %5 : vector<16x64xf32>
    %10 = arith.select %7, %5, %9 : vector<16x64xi1>, vector<16x64xf32>
    %11 = arith.truncf %10 : vector<16x64xf32> to vector<16x64xbf16>
    %c0_7 = arith.constant 0 : index
    %c0_8 = arith.constant 0 : index
    %12 = vector.load %arg5[%c0_7, %c0_8] : memref<64x512xbf16, #tpu.memory_space<vmem>>, vector<64x512xbf16>
    %cst_9 = arith.constant dense<0.000000e+00> : vector<16x512xf32>
    %13 = tpu.matmul %11, %12, %cst_9 {dimension_numbers = #tpu.dot_dimension_numbers<[1], [0], [0], [1], [0, 0, 1, 1], [], []>} : vector<16x64xbf16>, vector<64x512xbf16>, vector<16x512xf32> -> vector<16x512xf32>
    %c0_10 = arith.constant 0 : index
    %c0_11 = arith.constant 0 : index
    %14 = vector.load %arg6[%c0_10, %c0_11] : memref<1x512xf32, #tpu.memory_space<vmem>>, vector<1x512xf32>
    %15 = vector.broadcast %14 : vector<1x512xf32> to vector<16x512xf32>
    %16 = arith.addf %13, %15 : vector<16x512xf32>
    %17 = vector.shape_cast %16 : vector<16x512xf32> to vector<8x2x512xf32>
    %c0_12 = arith.constant 0 : index
    %c0_13 = arith.constant 0 : index
    %c0_14 = arith.constant 0 : index
    %18 = vector.load %arg1[%c0_12, %c0_13, %c0_14] : memref<2x2x128xf32, #tpu.memory_space<vmem>>, vector<1x2x128xf32>
    %19 = vector.shape_cast %18 : vector<1x2x128xf32> to vector<2x128xf32>
    %c0_15 = arith.constant 0 : index
    %c0_16 = arith.constant 0 : index
    %c0_17 = arith.constant 0 : index
    %20 = vector.load %arg2[%c0_15, %c0_16, %c0_17] : memref<2x2x128xf32, #tpu.memory_space<vmem>>, vector<1x2x128xf32>
    %21 = vector.shape_cast %20 : vector<1x2x128xf32> to vector<2x128xf32>
    %c0_18 = arith.constant 0 : index
    %c0_19 = arith.constant 0 : index
    %c0_20 = arith.constant 0 : index
    %22 = vector.load %arg9[%c0_18, %c0_19, %c0_20] : memref<2x128x512xbf16, #tpu.memory_space<vmem>>, vector<1x128x512xbf16>
    %23 = vector.shape_cast %22 : vector<1x128x512xbf16> to vector<128x512xbf16>
    %24 = vector.extract_strided_slice %17 {offsets = [0, 0, 0], sizes = [1, 2, 512], strides = [1, 1, 1]} : vector<8x2x512xf32> to vector<1x2x512xf32>
    %25 = vector.shape_cast %24 : vector<1x2x512xf32> to vector<2x512xf32>
    %26 = arith.truncf %19 : vector<2x128xf32> to vector<2x128xbf16>
    %cst_21 = arith.constant dense<0.000000e+00> : vector<2x512xf32>
    %27 = tpu.matmul %26, %23, %cst_21 {dimension_numbers = #tpu.dot_dimension_numbers<[1], [0], [0], [1], [0, 0, 1, 1], [], []>} : vector<2x128xbf16>, vector<128x512xbf16>, vector<2x512xf32> -> vector<2x512xf32>
    %28 = arith.addf %25, %27 : vector<2x512xf32>
    %29 = vector.extract_strided_slice %28 {offsets = [0, 0], sizes = [2, 256], strides = [1, 1]} : vector<2x512xf32> to vector<2x256xf32>
    %30 = arith.negf %29 : vector<2x256xf32>
    %31 = math.exp %30 : vector<2x256xf32>
    %cst_22 = arith.constant 1.000000e+00 : f32
    %32 = vector.broadcast %cst_22 : f32 to vector<2x256xf32>
    %33 = arith.addf %32, %31 : vector<2x256xf32>
    %34 = arith.divf %32, %33 : vector<2x256xf32>
    %35 = vector.extract_strided_slice %28 {offsets = [0, 256], sizes = [2, 128], strides = [1, 1]} : vector<2x512xf32> to vector<2x128xf32>
    %36 = math.tanh %35 : vector<2x128xf32>
    %37 = vector.extract_strided_slice %28 {offsets = [0, 384], sizes = [2, 128], strides = [1, 1]} : vector<2x512xf32> to vector<2x128xf32>
    %38 = arith.negf %37 : vector<2x128xf32>
    %39 = math.exp %38 : vector<2x128xf32>
    %cst_23 = arith.constant 1.000000e+00 : f32
    %40 = vector.broadcast %cst_23 : f32 to vector<2x128xf32>
    %41 = arith.addf %40, %39 : vector<2x128xf32>
    %42 = arith.divf %40, %41 : vector<2x128xf32>
    %43 = vector.extract_strided_slice %34 {offsets = [0, 128], sizes = [2, 128], strides = [1, 1]} : vector<2x256xf32> to vector<2x128xf32>
    %44 = arith.mulf %43, %21 : vector<2x128xf32>
    %45 = vector.extract_strided_slice %34 {offsets = [0, 0], sizes = [2, 128], strides = [1, 1]} : vector<2x256xf32> to vector<2x128xf32>
    %46 = arith.mulf %45, %36 : vector<2x128xf32>
    %47 = arith.addf %44, %46 : vector<2x128xf32>
    %48 = math.tanh %47 : vector<2x128xf32>
    %49 = arith.mulf %42, %48 : vector<2x128xf32>
    %50 = vector.extract_strided_slice %17 {offsets = [1, 0, 0], sizes = [1, 2, 512], strides = [1, 1, 1]} : vector<8x2x512xf32> to vector<1x2x512xf32>
    %51 = vector.shape_cast %50 : vector<1x2x512xf32> to vector<2x512xf32>
    %52 = arith.truncf %49 : vector<2x128xf32> to vector<2x128xbf16>
    %cst_24 = arith.constant dense<0.000000e+00> : vector<2x512xf32>
    %53 = tpu.matmul %52, %23, %cst_24 {dimension_numbers = #tpu.dot_dimension_numbers<[1], [0], [0], [1], [0, 0, 1, 1], [], []>} : vector<2x128xbf16>, vector<128x512xbf16>, vector<2x512xf32> -> vector<2x512xf32>
    %54 = arith.addf %51, %53 : vector<2x512xf32>
    %55 = vector.extract_strided_slice %54 {offsets = [0, 0], sizes = [2, 256], strides = [1, 1]} : vector<2x512xf32> to vector<2x256xf32>
    %56 = arith.negf %55 : vector<2x256xf32>
    %57 = math.exp %56 : vector<2x256xf32>
    %cst_25 = arith.constant 1.000000e+00 : f32
    %58 = vector.broadcast %cst_25 : f32 to vector<2x256xf32>
    %59 = arith.addf %58, %57 : vector<2x256xf32>
    %60 = arith.divf %58, %59 : vector<2x256xf32>
    %61 = vector.extract_strided_slice %54 {offsets = [0, 256], sizes = [2, 128], strides = [1, 1]} : vector<2x512xf32> to vector<2x128xf32>
    %62 = math.tanh %61 : vector<2x128xf32>
    %63 = vector.extract_strided_slice %54 {offsets = [0, 384], sizes = [2, 128], strides = [1, 1]} : vector<2x512xf32> to vector<2x128xf32>
    %64 = arith.negf %63 : vector<2x128xf32>
    %65 = math.exp %64 : vector<2x128xf32>
    %cst_26 = arith.constant 1.000000e+00 : f32
    %66 = vector.broadcast %cst_26 : f32 to vector<2x128xf32>
    %67 = arith.addf %66, %65 : vector<2x128xf32>
    %68 = arith.divf %66, %67 : vector<2x128xf32>
    %69 = vector.extract_strided_slice %60 {offsets = [0, 128], sizes = [2, 128], strides = [1, 1]} : vector<2x256xf32> to vector<2x128xf32>
    %70 = arith.mulf %69, %47 : vector<2x128xf32>
    %71 = vector.extract_strided_slice %60 {offsets = [0, 0], sizes = [2, 128], strides = [1, 1]} : vector<2x256xf32> to vector<2x128xf32>
    %72 = arith.mulf %71, %62 : vector<2x128xf32>
    %73 = arith.addf %70, %72 : vector<2x128xf32>
    %74 = math.tanh %73 : vector<2x128xf32>
    %75 = arith.mulf %68, %74 : vector<2x128xf32>
    %76 = vector.extract_strided_slice %17 {offsets = [2, 0, 0], sizes = [1, 2, 512], strides = [1, 1, 1]} : vector<8x2x512xf32> to vector<1x2x512xf32>
    %77 = vector.shape_cast %76 : vector<1x2x512xf32> to vector<2x512xf32>
    %78 = arith.truncf %75 : vector<2x128xf32> to vector<2x128xbf16>
    %cst_27 = arith.constant dense<0.000000e+00> : vector<2x512xf32>
    %79 = tpu.matmul %78, %23, %cst_27 {dimension_numbers = #tpu.dot_dimension_numbers<[1], [0], [0], [1], [0, 0, 1, 1], [], []>} : vector<2x128xbf16>, vector<128x512xbf16>, vector<2x512xf32> -> vector<2x512xf32>
    %80 = arith.addf %77, %79 : vector<2x512xf32>
    %81 = vector.extract_strided_slice %80 {offsets = [0, 0], sizes = [2, 256], strides = [1, 1]} : vector<2x512xf32> to vector<2x256xf32>
    %82 = arith.negf %81 : vector<2x256xf32>
    %83 = math.exp %82 : vector<2x256xf32>
    %cst_28 = arith.constant 1.000000e+00 : f32
    %84 = vector.broadcast %cst_28 : f32 to vector<2x256xf32>
    %85 = arith.addf %84, %83 : vector<2x256xf32>
    %86 = arith.divf %84, %85 : vector<2x256xf32>
    %87 = vector.extract_strided_slice %80 {offsets = [0, 256], sizes = [2, 128], strides = [1, 1]} : vector<2x512xf32> to vector<2x128xf32>
    %88 = math.tanh %87 : vector<2x128xf32>
    %89 = vector.extract_strided_slice %80 {offsets = [0, 384], sizes = [2, 128], strides = [1, 1]} : vector<2x512xf32> to vector<2x128xf32>
    %90 = arith.negf %89 : vector<2x128xf32>
    %91 = math.exp %90 : vector<2x128xf32>
    %cst_29 = arith.constant 1.000000e+00 : f32
    %92 = vector.broadcast %cst_29 : f32 to vector<2x128xf32>
    %93 = arith.addf %92, %91 : vector<2x128xf32>
    %94 = arith.divf %92, %93 : vector<2x128xf32>
    %95 = vector.extract_strided_slice %86 {offsets = [0, 128], sizes = [2, 128], strides = [1, 1]} : vector<2x256xf32> to vector<2x128xf32>
    %96 = arith.mulf %95, %73 : vector<2x128xf32>
    %97 = vector.extract_strided_slice %86 {offsets = [0, 0], sizes = [2, 128], strides = [1, 1]} : vector<2x256xf32> to vector<2x128xf32>
    %98 = arith.mulf %97, %88 : vector<2x128xf32>
    %99 = arith.addf %96, %98 : vector<2x128xf32>
    %100 = math.tanh %99 : vector<2x128xf32>
    %101 = arith.mulf %94, %100 : vector<2x128xf32>
    %102 = vector.extract_strided_slice %17 {offsets = [3, 0, 0], sizes = [1, 2, 512], strides = [1, 1, 1]} : vector<8x2x512xf32> to vector<1x2x512xf32>
    %103 = vector.shape_cast %102 : vector<1x2x512xf32> to vector<2x512xf32>
    %104 = arith.truncf %101 : vector<2x128xf32> to vector<2x128xbf16>
    %cst_30 = arith.constant dense<0.000000e+00> : vector<2x512xf32>
    %105 = tpu.matmul %104, %23, %cst_30 {dimension_numbers = #tpu.dot_dimension_numbers<[1], [0], [0], [1], [0, 0, 1, 1], [], []>} : vector<2x128xbf16>, vector<128x512xbf16>, vector<2x512xf32> -> vector<2x512xf32>
    %106 = arith.addf %103, %105 : vector<2x512xf32>
    %107 = vector.extract_strided_slice %106 {offsets = [0, 0], sizes = [2, 256], strides = [1, 1]} : vector<2x512xf32> to vector<2x256xf32>
    %108 = arith.negf %107 : vector<2x256xf32>
    %109 = math.exp %108 : vector<2x256xf32>
    %cst_31 = arith.constant 1.000000e+00 : f32
    %110 = vector.broadcast %cst_31 : f32 to vector<2x256xf32>
    %111 = arith.addf %110, %109 : vector<2x256xf32>
    %112 = arith.divf %110, %111 : vector<2x256xf32>
    %113 = vector.extract_strided_slice %106 {offsets = [0, 256], sizes = [2, 128], strides = [1, 1]} : vector<2x512xf32> to vector<2x128xf32>
    %114 = math.tanh %113 : vector<2x128xf32>
    %115 = vector.extract_strided_slice %106 {offsets = [0, 384], sizes = [2, 128], strides = [1, 1]} : vector<2x512xf32> to vector<2x128xf32>
    %116 = arith.negf %115 : vector<2x128xf32>
    %117 = math.exp %116 : vector<2x128xf32>
    %cst_32 = arith.constant 1.000000e+00 : f32
    %118 = vector.broadcast %cst_32 : f32 to vector<2x128xf32>
    %119 = arith.addf %118, %117 : vector<2x128xf32>
    %120 = arith.divf %118, %119 : vector<2x128xf32>
    %121 = vector.extract_strided_slice %112 {offsets = [0, 128], sizes = [2, 128], strides = [1, 1]} : vector<2x256xf32> to vector<2x128xf32>
    %122 = arith.mulf %121, %99 : vector<2x128xf32>
    %123 = vector.extract_strided_slice %112 {offsets = [0, 0], sizes = [2, 128], strides = [1, 1]} : vector<2x256xf32> to vector<2x128xf32>
    %124 = arith.mulf %123, %114 : vector<2x128xf32>
    %125 = arith.addf %122, %124 : vector<2x128xf32>
    %126 = math.tanh %125 : vector<2x128xf32>
    %127 = arith.mulf %120, %126 : vector<2x128xf32>
    %128 = vector.extract_strided_slice %17 {offsets = [4, 0, 0], sizes = [1, 2, 512], strides = [1, 1, 1]} : vector<8x2x512xf32> to vector<1x2x512xf32>
    %129 = vector.shape_cast %128 : vector<1x2x512xf32> to vector<2x512xf32>
    %130 = arith.truncf %127 : vector<2x128xf32> to vector<2x128xbf16>
    %cst_33 = arith.constant dense<0.000000e+00> : vector<2x512xf32>
    %131 = tpu.matmul %130, %23, %cst_33 {dimension_numbers = #tpu.dot_dimension_numbers<[1], [0], [0], [1], [0, 0, 1, 1], [], []>} : vector<2x128xbf16>, vector<128x512xbf16>, vector<2x512xf32> -> vector<2x512xf32>
    %132 = arith.addf %129, %131 : vector<2x512xf32>
    %133 = vector.extract_strided_slice %132 {offsets = [0, 0], sizes = [2, 256], strides = [1, 1]} : vector<2x512xf32> to vector<2x256xf32>
    %134 = arith.negf %133 : vector<2x256xf32>
    %135 = math.exp %134 : vector<2x256xf32>
    %cst_34 = arith.constant 1.000000e+00 : f32
    %136 = vector.broadcast %cst_34 : f32 to vector<2x256xf32>
    %137 = arith.addf %136, %135 : vector<2x256xf32>
    %138 = arith.divf %136, %137 : vector<2x256xf32>
    %139 = vector.extract_strided_slice %132 {offsets = [0, 256], sizes = [2, 128], strides = [1, 1]} : vector<2x512xf32> to vector<2x128xf32>
    %140 = math.tanh %139 : vector<2x128xf32>
    %141 = vector.extract_strided_slice %132 {offsets = [0, 384], sizes = [2, 128], strides = [1, 1]} : vector<2x512xf32> to vector<2x128xf32>
    %142 = arith.negf %141 : vector<2x128xf32>
    %143 = math.exp %142 : vector<2x128xf32>
    %cst_35 = arith.constant 1.000000e+00 : f32
    %144 = vector.broadcast %cst_35 : f32 to vector<2x128xf32>
    %145 = arith.addf %144, %143 : vector<2x128xf32>
    %146 = arith.divf %144, %145 : vector<2x128xf32>
    %147 = vector.extract_strided_slice %138 {offsets = [0, 128], sizes = [2, 128], strides = [1, 1]} : vector<2x256xf32> to vector<2x128xf32>
    %148 = arith.mulf %147, %125 : vector<2x128xf32>
    %149 = vector.extract_strided_slice %138 {offsets = [0, 0], sizes = [2, 128], strides = [1, 1]} : vector<2x256xf32> to vector<2x128xf32>
    %150 = arith.mulf %149, %140 : vector<2x128xf32>
    %151 = arith.addf %148, %150 : vector<2x128xf32>
    %152 = math.tanh %151 : vector<2x128xf32>
    %153 = arith.mulf %146, %152 : vector<2x128xf32>
    %154 = vector.extract_strided_slice %17 {offsets = [5, 0, 0], sizes = [1, 2, 512], strides = [1, 1, 1]} : vector<8x2x512xf32> to vector<1x2x512xf32>
    %155 = vector.shape_cast %154 : vector<1x2x512xf32> to vector<2x512xf32>
    %156 = arith.truncf %153 : vector<2x128xf32> to vector<2x128xbf16>
    %cst_36 = arith.constant dense<0.000000e+00> : vector<2x512xf32>
    %157 = tpu.matmul %156, %23, %cst_36 {dimension_numbers = #tpu.dot_dimension_numbers<[1], [0], [0], [1], [0, 0, 1, 1], [], []>} : vector<2x128xbf16>, vector<128x512xbf16>, vector<2x512xf32> -> vector<2x512xf32>
    %158 = arith.addf %155, %157 : vector<2x512xf32>
    %159 = vector.extract_strided_slice %158 {offsets = [0, 0], sizes = [2, 256], strides = [1, 1]} : vector<2x512xf32> to vector<2x256xf32>
    %160 = arith.negf %159 : vector<2x256xf32>
    %161 = math.exp %160 : vector<2x256xf32>
    %cst_37 = arith.constant 1.000000e+00 : f32
    %162 = vector.broadcast %cst_37 : f32 to vector<2x256xf32>
    %163 = arith.addf %162, %161 : vector<2x256xf32>
    %164 = arith.divf %162, %163 : vector<2x256xf32>
    %165 = vector.extract_strided_slice %158 {offsets = [0, 256], sizes = [2, 128], strides = [1, 1]} : vector<2x512xf32> to vector<2x128xf32>
    %166 = math.tanh %165 : vector<2x128xf32>
    %167 = vector.extract_strided_slice %158 {offsets = [0, 384], sizes = [2, 128], strides = [1, 1]} : vector<2x512xf32> to vector<2x128xf32>
    %168 = arith.negf %167 : vector<2x128xf32>
    %169 = math.exp %168 : vector<2x128xf32>
    %cst_38 = arith.constant 1.000000e+00 : f32
    %170 = vector.broadcast %cst_38 : f32 to vector<2x128xf32>
    %171 = arith.addf %170, %169 : vector<2x128xf32>
    %172 = arith.divf %170, %171 : vector<2x128xf32>
    %173 = vector.extract_strided_slice %164 {offsets = [0, 128], sizes = [2, 128], strides = [1, 1]} : vector<2x256xf32> to vector<2x128xf32>
    %174 = arith.mulf %173, %151 : vector<2x128xf32>
    %175 = vector.extract_strided_slice %164 {offsets = [0, 0], sizes = [2, 128], strides = [1, 1]} : vector<2x256xf32> to vector<2x128xf32>
    %176 = arith.mulf %175, %166 : vector<2x128xf32>
    %177 = arith.addf %174, %176 : vector<2x128xf32>
    %178 = math.tanh %177 : vector<2x128xf32>
    %179 = arith.mulf %172, %178 : vector<2x128xf32>
    %180 = vector.extract_strided_slice %17 {offsets = [6, 0, 0], sizes = [1, 2, 512], strides = [1, 1, 1]} : vector<8x2x512xf32> to vector<1x2x512xf32>
    %181 = vector.shape_cast %180 : vector<1x2x512xf32> to vector<2x512xf32>
    %182 = arith.truncf %179 : vector<2x128xf32> to vector<2x128xbf16>
    %cst_39 = arith.constant dense<0.000000e+00> : vector<2x512xf32>
    %183 = tpu.matmul %182, %23, %cst_39 {dimension_numbers = #tpu.dot_dimension_numbers<[1], [0], [0], [1], [0, 0, 1, 1], [], []>} : vector<2x128xbf16>, vector<128x512xbf16>, vector<2x512xf32> -> vector<2x512xf32>
    %184 = arith.addf %181, %183 : vector<2x512xf32>
    %185 = vector.extract_strided_slice %184 {offsets = [0, 0], sizes = [2, 256], strides = [1, 1]} : vector<2x512xf32> to vector<2x256xf32>
    %186 = arith.negf %185 : vector<2x256xf32>
    %187 = math.exp %186 : vector<2x256xf32>
    %cst_40 = arith.constant 1.000000e+00 : f32
    %188 = vector.broadcast %cst_40 : f32 to vector<2x256xf32>
    %189 = arith.addf %188, %187 : vector<2x256xf32>
    %190 = arith.divf %188, %189 : vector<2x256xf32>
    %191 = vector.extract_strided_slice %184 {offsets = [0, 256], sizes = [2, 128], strides = [1, 1]} : vector<2x512xf32> to vector<2x128xf32>
    %192 = math.tanh %191 : vector<2x128xf32>
    %193 = vector.extract_strided_slice %184 {offsets = [0, 384], sizes = [2, 128], strides = [1, 1]} : vector<2x512xf32> to vector<2x128xf32>
    %194 = arith.negf %193 : vector<2x128xf32>
    %195 = math.exp %194 : vector<2x128xf32>
    %cst_41 = arith.constant 1.000000e+00 : f32
    %196 = vector.broadcast %cst_41 : f32 to vector<2x128xf32>
    %197 = arith.addf %196, %195 : vector<2x128xf32>
    %198 = arith.divf %196, %197 : vector<2x128xf32>
    %199 = vector.extract_strided_slice %190 {offsets = [0, 128], sizes = [2, 128], strides = [1, 1]} : vector<2x256xf32> to vector<2x128xf32>
    %200 = arith.mulf %199, %177 : vector<2x128xf32>
    %201 = vector.extract_strided_slice %190 {offsets = [0, 0], sizes = [2, 128], strides = [1, 1]} : vector<2x256xf32> to vector<2x128xf32>
    %202 = arith.mulf %201, %192 : vector<2x128xf32>
    %203 = arith.addf %200, %202 : vector<2x128xf32>
    %204 = math.tanh %203 : vector<2x128xf32>
    %205 = arith.mulf %198, %204 : vector<2x128xf32>
    %206 = vector.extract_strided_slice %17 {offsets = [7, 0, 0], sizes = [1, 2, 512], strides = [1, 1, 1]} : vector<8x2x512xf32> to vector<1x2x512xf32>
    %207 = vector.shape_cast %206 : vector<1x2x512xf32> to vector<2x512xf32>
    %208 = arith.truncf %205 : vector<2x128xf32> to vector<2x128xbf16>
    %cst_42 = arith.constant dense<0.000000e+00> : vector<2x512xf32>
    %209 = tpu.matmul %208, %23, %cst_42 {dimension_numbers = #tpu.dot_dimension_numbers<[1], [0], [0], [1], [0, 0, 1, 1], [], []>} : vector<2x128xbf16>, vector<128x512xbf16>, vector<2x512xf32> -> vector<2x512xf32>
    %210 = arith.addf %207, %209 : vector<2x512xf32>
    %211 = vector.extract_strided_slice %210 {offsets = [0, 0], sizes = [2, 256], strides = [1, 1]} : vector<2x512xf32> to vector<2x256xf32>
    %212 = arith.negf %211 : vector<2x256xf32>
    %213 = math.exp %212 : vector<2x256xf32>
    %cst_43 = arith.constant 1.000000e+00 : f32
    %214 = vector.broadcast %cst_43 : f32 to vector<2x256xf32>
    %215 = arith.addf %214, %213 : vector<2x256xf32>
    %216 = arith.divf %214, %215 : vector<2x256xf32>
    %217 = vector.extract_strided_slice %210 {offsets = [0, 256], sizes = [2, 128], strides = [1, 1]} : vector<2x512xf32> to vector<2x128xf32>
    %218 = math.tanh %217 : vector<2x128xf32>
    %219 = vector.extract_strided_slice %210 {offsets = [0, 384], sizes = [2, 128], strides = [1, 1]} : vector<2x512xf32> to vector<2x128xf32>
    %220 = arith.negf %219 : vector<2x128xf32>
    %221 = math.exp %220 : vector<2x128xf32>
    %cst_44 = arith.constant 1.000000e+00 : f32
    %222 = vector.broadcast %cst_44 : f32 to vector<2x128xf32>
    %223 = arith.addf %222, %221 : vector<2x128xf32>
    %224 = arith.divf %222, %223 : vector<2x128xf32>
    %225 = vector.extract_strided_slice %216 {offsets = [0, 128], sizes = [2, 128], strides = [1, 1]} : vector<2x256xf32> to vector<2x128xf32>
    %226 = arith.mulf %225, %203 : vector<2x128xf32>
    %227 = vector.extract_strided_slice %216 {offsets = [0, 0], sizes = [2, 128], strides = [1, 1]} : vector<2x256xf32> to vector<2x128xf32>
    %228 = arith.mulf %227, %218 : vector<2x128xf32>
    %229 = arith.addf %226, %228 : vector<2x128xf32>
    %230 = math.tanh %229 : vector<2x128xf32>
    %231 = arith.mulf %224, %230 : vector<2x128xf32>
    %232 = tpu.concatenate %49, %75, %101, %127, %153, %179, %205, %231 in 0 : vector<2x128xf32>, vector<2x128xf32>, vector<2x128xf32>, vector<2x128xf32>, vector<2x128xf32>, vector<2x128xf32>, vector<2x128xf32>, vector<2x128xf32> -> vector<16x128xf32>
    %c0_45 = arith.constant 0 : index
    %c0_46 = arith.constant 0 : index
    %c0_47 = arith.constant 0 : index
    %233 = vector.load %arg15[%c0_45, %c0_46, %c0_47] : memref<2x2x128xf32, #tpu.memory_space<vmem>>, vector<1x2x128xf32>
    %234 = vector.shape_cast %233 : vector<1x2x128xf32> to vector<2x128xf32>
    %235 = vector.shape_cast %231 : vector<2x128xf32> to vector<1x2x128xf32>
    tpu.vector_store %arg15[%c0_45, %c0_46, %c0_47], %235 {strides = array<i32>} : memref<2x2x128xf32, #tpu.memory_space<vmem>>, vector<1x2x128xf32>,
    %c0_48 = arith.constant 0 : index
    %c0_49 = arith.constant 0 : index
    %c0_50 = arith.constant 0 : index
    %236 = vector.load %arg16[%c0_48, %c0_49, %c0_50] : memref<2x2x128xf32, #tpu.memory_space<vmem>>, vector<1x2x128xf32>
    %237 = vector.shape_cast %236 : vector<1x2x128xf32> to vector<2x128xf32>
    %238 = vector.shape_cast %229 : vector<2x128xf32> to vector<1x2x128xf32>
    tpu.vector_store %arg16[%c0_48, %c0_49, %c0_50], %238 {strides = array<i32>} : memref<2x2x128xf32, #tpu.memory_space<vmem>>, vector<1x2x128xf32>,
    %239 = arith.truncf %232 : vector<16x128xf32> to vector<16x128xbf16>
    %c0_51 = arith.constant 0 : index
    %c0_52 = arith.constant 0 : index
    %240 = vector.load %arg7[%c0_51, %c0_52] : memref<128x512xbf16, #tpu.memory_space<vmem>>, vector<128x512xbf16>
    %cst_53 = arith.constant dense<0.000000e+00> : vector<16x512xf32>
    %241 = tpu.matmul %239, %240, %cst_53 {dimension_numbers = #tpu.dot_dimension_numbers<[1], [0], [0], [1], [0, 0, 1, 1], [], []>} : vector<16x128xbf16>, vector<128x512xbf16>, vector<16x512xf32> -> vector<16x512xf32>
    %c0_54 = arith.constant 0 : index
    %c0_55 = arith.constant 0 : index
    %242 = vector.load %arg8[%c0_54, %c0_55] : memref<1x512xf32, #tpu.memory_space<vmem>>, vector<1x512xf32>
    %243 = vector.broadcast %242 : vector<1x512xf32> to vector<16x512xf32>
    %244 = arith.addf %241, %243 : vector<16x512xf32>
    %245 = vector.shape_cast %244 : vector<16x512xf32> to vector<8x2x512xf32>
    %c1 = arith.constant 1 : index
    %c0_56 = arith.constant 0 : index
    %c0_57 = arith.constant 0 : index
    %246 = vector.load %arg1[%c1, %c0_56, %c0_57] : memref<2x2x128xf32, #tpu.memory_space<vmem>>, vector<1x2x128xf32>
    %247 = vector.shape_cast %246 : vector<1x2x128xf32> to vector<2x128xf32>
    %c1_58 = arith.constant 1 : index
    %c0_59 = arith.constant 0 : index
    %c0_60 = arith.constant 0 : index
    %248 = vector.load %arg2[%c1_58, %c0_59, %c0_60] : memref<2x2x128xf32, #tpu.memory_space<vmem>>, vector<1x2x128xf32>
    %249 = vector.shape_cast %248 : vector<1x2x128xf32> to vector<2x128xf32>
    %c1_61 = arith.constant 1 : index
    %c0_62 = arith.constant 0 : index
    %c0_63 = arith.constant 0 : index
    %250 = vector.load %arg9[%c1_61, %c0_62, %c0_63] : memref<2x128x512xbf16, #tpu.memory_space<vmem>>, vector<1x128x512xbf16>
    %251 = vector.shape_cast %250 : vector<1x128x512xbf16> to vector<128x512xbf16>
    %252 = vector.extract_strided_slice %245 {offsets = [0, 0, 0], sizes = [1, 2, 512], strides = [1, 1, 1]} : vector<8x2x512xf32> to vector<1x2x512xf32>
    %253 = vector.shape_cast %252 : vector<1x2x512xf32> to vector<2x512xf32>
    %254 = arith.truncf %247 : vector<2x128xf32> to vector<2x128xbf16>
    %cst_64 = arith.constant dense<0.000000e+00> : vector<2x512xf32>
    %255 = tpu.matmul %254, %251, %cst_64 {dimension_numbers = #tpu.dot_dimension_numbers<[1], [0], [0], [1], [0, 0, 1, 1], [], []>} : vector<2x128xbf16>, vector<128x512xbf16>, vector<2x512xf32> -> vector<2x512xf32>
    %256 = arith.addf %253, %255 : vector<2x512xf32>
    %257 = vector.extract_strided_slice %256 {offsets = [0, 0], sizes = [2, 256], strides = [1, 1]} : vector<2x512xf32> to vector<2x256xf32>
    %258 = arith.negf %257 : vector<2x256xf32>
    %259 = math.exp %258 : vector<2x256xf32>
    %cst_65 = arith.constant 1.000000e+00 : f32
    %260 = vector.broadcast %cst_65 : f32 to vector<2x256xf32>
    %261 = arith.addf %260, %259 : vector<2x256xf32>
    %262 = arith.divf %260, %261 : vector<2x256xf32>
    %263 = vector.extract_strided_slice %256 {offsets = [0, 256], sizes = [2, 128], strides = [1, 1]} : vector<2x512xf32> to vector<2x128xf32>
    %264 = math.tanh %263 : vector<2x128xf32>
    %265 = vector.extract_strided_slice %256 {offsets = [0, 384], sizes = [2, 128], strides = [1, 1]} : vector<2x512xf32> to vector<2x128xf32>
    %266 = arith.negf %265 : vector<2x128xf32>
    %267 = math.exp %266 : vector<2x128xf32>
    %cst_66 = arith.constant 1.000000e+00 : f32
    %268 = vector.broadcast %cst_66 : f32 to vector<2x128xf32>
    %269 = arith.addf %268, %267 : vector<2x128xf32>
    %270 = arith.divf %268, %269 : vector<2x128xf32>
    %271 = vector.extract_strided_slice %262 {offsets = [0, 128], sizes = [2, 128], strides = [1, 1]} : vector<2x256xf32> to vector<2x128xf32>
    %272 = arith.mulf %271, %249 : vector<2x128xf32>
    %273 = vector.extract_strided_slice %262 {offsets = [0, 0], sizes = [2, 128], strides = [1, 1]} : vector<2x256xf32> to vector<2x128xf32>
    %274 = arith.mulf %273, %264 : vector<2x128xf32>
    %275 = arith.addf %272, %274 : vector<2x128xf32>
    %276 = math.tanh %275 : vector<2x128xf32>
    %277 = arith.mulf %270, %276 : vector<2x128xf32>
    %278 = vector.extract_strided_slice %245 {offsets = [1, 0, 0], sizes = [1, 2, 512], strides = [1, 1, 1]} : vector<8x2x512xf32> to vector<1x2x512xf32>
    %279 = vector.shape_cast %278 : vector<1x2x512xf32> to vector<2x512xf32>
    %280 = arith.truncf %277 : vector<2x128xf32> to vector<2x128xbf16>
    %cst_67 = arith.constant dense<0.000000e+00> : vector<2x512xf32>
    %281 = tpu.matmul %280, %251, %cst_67 {dimension_numbers = #tpu.dot_dimension_numbers<[1], [0], [0], [1], [0, 0, 1, 1], [], []>} : vector<2x128xbf16>, vector<128x512xbf16>, vector<2x512xf32> -> vector<2x512xf32>
    %282 = arith.addf %279, %281 : vector<2x512xf32>
    %283 = vector.extract_strided_slice %282 {offsets = [0, 0], sizes = [2, 256], strides = [1, 1]} : vector<2x512xf32> to vector<2x256xf32>
    %284 = arith.negf %283 : vector<2x256xf32>
    %285 = math.exp %284 : vector<2x256xf32>
    %cst_68 = arith.constant 1.000000e+00 : f32
    %286 = vector.broadcast %cst_68 : f32 to vector<2x256xf32>
    %287 = arith.addf %286, %285 : vector<2x256xf32>
    %288 = arith.divf %286, %287 : vector<2x256xf32>
    %289 = vector.extract_strided_slice %282 {offsets = [0, 256], sizes = [2, 128], strides = [1, 1]} : vector<2x512xf32> to vector<2x128xf32>
    %290 = math.tanh %289 : vector<2x128xf32>
    %291 = vector.extract_strided_slice %282 {offsets = [0, 384], sizes = [2, 128], strides = [1, 1]} : vector<2x512xf32> to vector<2x128xf32>
    %292 = arith.negf %291 : vector<2x128xf32>
    %293 = math.exp %292 : vector<2x128xf32>
    %cst_69 = arith.constant 1.000000e+00 : f32
    %294 = vector.broadcast %cst_69 : f32 to vector<2x128xf32>
    %295 = arith.addf %294, %293 : vector<2x128xf32>
    %296 = arith.divf %294, %295 : vector<2x128xf32>
    %297 = vector.extract_strided_slice %288 {offsets = [0, 128], sizes = [2, 128], strides = [1, 1]} : vector<2x256xf32> to vector<2x128xf32>
    %298 = arith.mulf %297, %275 : vector<2x128xf32>
    %299 = vector.extract_strided_slice %288 {offsets = [0, 0], sizes = [2, 128], strides = [1, 1]} : vector<2x256xf32> to vector<2x128xf32>
    %300 = arith.mulf %299, %290 : vector<2x128xf32>
    %301 = arith.addf %298, %300 : vector<2x128xf32>
    %302 = math.tanh %301 : vector<2x128xf32>
    %303 = arith.mulf %296, %302 : vector<2x128xf32>
    %304 = vector.extract_strided_slice %245 {offsets = [2, 0, 0], sizes = [1, 2, 512], strides = [1, 1, 1]} : vector<8x2x512xf32> to vector<1x2x512xf32>
    %305 = vector.shape_cast %304 : vector<1x2x512xf32> to vector<2x512xf32>
    %306 = arith.truncf %303 : vector<2x128xf32> to vector<2x128xbf16>
    %cst_70 = arith.constant dense<0.000000e+00> : vector<2x512xf32>
    %307 = tpu.matmul %306, %251, %cst_70 {dimension_numbers = #tpu.dot_dimension_numbers<[1], [0], [0], [1], [0, 0, 1, 1], [], []>} : vector<2x128xbf16>, vector<128x512xbf16>, vector<2x512xf32> -> vector<2x512xf32>
    %308 = arith.addf %305, %307 : vector<2x512xf32>
    %309 = vector.extract_strided_slice %308 {offsets = [0, 0], sizes = [2, 256], strides = [1, 1]} : vector<2x512xf32> to vector<2x256xf32>
    %310 = arith.negf %309 : vector<2x256xf32>
    %311 = math.exp %310 : vector<2x256xf32>
    %cst_71 = arith.constant 1.000000e+00 : f32
    %312 = vector.broadcast %cst_71 : f32 to vector<2x256xf32>
    %313 = arith.addf %312, %311 : vector<2x256xf32>
    %314 = arith.divf %312, %313 : vector<2x256xf32>
    %315 = vector.extract_strided_slice %308 {offsets = [0, 256], sizes = [2, 128], strides = [1, 1]} : vector<2x512xf32> to vector<2x128xf32>
    %316 = math.tanh %315 : vector<2x128xf32>
    %317 = vector.extract_strided_slice %308 {offsets = [0, 384], sizes = [2, 128], strides = [1, 1]} : vector<2x512xf32> to vector<2x128xf32>
    %318 = arith.negf %317 : vector<2x128xf32>
    %319 = math.exp %318 : vector<2x128xf32>
    %cst_72 = arith.constant 1.000000e+00 : f32
    %320 = vector.broadcast %cst_72 : f32 to vector<2x128xf32>
    %321 = arith.addf %320, %319 : vector<2x128xf32>
    %322 = arith.divf %320, %321 : vector<2x128xf32>
    %323 = vector.extract_strided_slice %314 {offsets = [0, 128], sizes = [2, 128], strides = [1, 1]} : vector<2x256xf32> to vector<2x128xf32>
    %324 = arith.mulf %323, %301 : vector<2x128xf32>
    %325 = vector.extract_strided_slice %314 {offsets = [0, 0], sizes = [2, 128], strides = [1, 1]} : vector<2x256xf32> to vector<2x128xf32>
    %326 = arith.mulf %325, %316 : vector<2x128xf32>
    %327 = arith.addf %324, %326 : vector<2x128xf32>
    %328 = math.tanh %327 : vector<2x128xf32>
    %329 = arith.mulf %322, %328 : vector<2x128xf32>
    %330 = vector.extract_strided_slice %245 {offsets = [3, 0, 0], sizes = [1, 2, 512], strides = [1, 1, 1]} : vector<8x2x512xf32> to vector<1x2x512xf32>
    %331 = vector.shape_cast %330 : vector<1x2x512xf32> to vector<2x512xf32>
    %332 = arith.truncf %329 : vector<2x128xf32> to vector<2x128xbf16>
    %cst_73 = arith.constant dense<0.000000e+00> : vector<2x512xf32>
    %333 = tpu.matmul %332, %251, %cst_73 {dimension_numbers = #tpu.dot_dimension_numbers<[1], [0], [0], [1], [0, 0, 1, 1], [], []>} : vector<2x128xbf16>, vector<128x512xbf16>, vector<2x512xf32> -> vector<2x512xf32>
    %334 = arith.addf %331, %333 : vector<2x512xf32>
    %335 = vector.extract_strided_slice %334 {offsets = [0, 0], sizes = [2, 256], strides = [1, 1]} : vector<2x512xf32> to vector<2x256xf32>
    %336 = arith.negf %335 : vector<2x256xf32>
    %337 = math.exp %336 : vector<2x256xf32>
    %cst_74 = arith.constant 1.000000e+00 : f32
    %338 = vector.broadcast %cst_74 : f32 to vector<2x256xf32>
    %339 = arith.addf %338, %337 : vector<2x256xf32>
    %340 = arith.divf %338, %339 : vector<2x256xf32>
    %341 = vector.extract_strided_slice %334 {offsets = [0, 256], sizes = [2, 128], strides = [1, 1]} : vector<2x512xf32> to vector<2x128xf32>
    %342 = math.tanh %341 : vector<2x128xf32>
    %343 = vector.extract_strided_slice %334 {offsets = [0, 384], sizes = [2, 128], strides = [1, 1]} : vector<2x512xf32> to vector<2x128xf32>
    %344 = arith.negf %343 : vector<2x128xf32>
    %345 = math.exp %344 : vector<2x128xf32>
    %cst_75 = arith.constant 1.000000e+00 : f32
    %346 = vector.broadcast %cst_75 : f32 to vector<2x128xf32>
    %347 = arith.addf %346, %345 : vector<2x128xf32>
    %348 = arith.divf %346, %347 : vector<2x128xf32>
    %349 = vector.extract_strided_slice %340 {offsets = [0, 128], sizes = [2, 128], strides = [1, 1]} : vector<2x256xf32> to vector<2x128xf32>
    %350 = arith.mulf %349, %327 : vector<2x128xf32>
    %351 = vector.extract_strided_slice %340 {offsets = [0, 0], sizes = [2, 128], strides = [1, 1]} : vector<2x256xf32> to vector<2x128xf32>
    %352 = arith.mulf %351, %342 : vector<2x128xf32>
    %353 = arith.addf %350, %352 : vector<2x128xf32>
    %354 = math.tanh %353 : vector<2x128xf32>
    %355 = arith.mulf %348, %354 : vector<2x128xf32>
    %356 = vector.extract_strided_slice %245 {offsets = [4, 0, 0], sizes = [1, 2, 512], strides = [1, 1, 1]} : vector<8x2x512xf32> to vector<1x2x512xf32>
    %357 = vector.shape_cast %356 : vector<1x2x512xf32> to vector<2x512xf32>
    %358 = arith.truncf %355 : vector<2x128xf32> to vector<2x128xbf16>
    %cst_76 = arith.constant dense<0.000000e+00> : vector<2x512xf32>
    %359 = tpu.matmul %358, %251, %cst_76 {dimension_numbers = #tpu.dot_dimension_numbers<[1], [0], [0], [1], [0, 0, 1, 1], [], []>} : vector<2x128xbf16>, vector<128x512xbf16>, vector<2x512xf32> -> vector<2x512xf32>
    %360 = arith.addf %357, %359 : vector<2x512xf32>
    %361 = vector.extract_strided_slice %360 {offsets = [0, 0], sizes = [2, 256], strides = [1, 1]} : vector<2x512xf32> to vector<2x256xf32>
    %362 = arith.negf %361 : vector<2x256xf32>
    %363 = math.exp %362 : vector<2x256xf32>
    %cst_77 = arith.constant 1.000000e+00 : f32
    %364 = vector.broadcast %cst_77 : f32 to vector<2x256xf32>
    %365 = arith.addf %364, %363 : vector<2x256xf32>
    %366 = arith.divf %364, %365 : vector<2x256xf32>
    %367 = vector.extract_strided_slice %360 {offsets = [0, 256], sizes = [2, 128], strides = [1, 1]} : vector<2x512xf32> to vector<2x128xf32>
    %368 = math.tanh %367 : vector<2x128xf32>
    %369 = vector.extract_strided_slice %360 {offsets = [0, 384], sizes = [2, 128], strides = [1, 1]} : vector<2x512xf32> to vector<2x128xf32>
    %370 = arith.negf %369 : vector<2x128xf32>
    %371 = math.exp %370 : vector<2x128xf32>
    %cst_78 = arith.constant 1.000000e+00 : f32
    %372 = vector.broadcast %cst_78 : f32 to vector<2x128xf32>
    %373 = arith.addf %372, %371 : vector<2x128xf32>
    %374 = arith.divf %372, %373 : vector<2x128xf32>
    %375 = vector.extract_strided_slice %366 {offsets = [0, 128], sizes = [2, 128], strides = [1, 1]} : vector<2x256xf32> to vector<2x128xf32>
    %376 = arith.mulf %375, %353 : vector<2x128xf32>
    %377 = vector.extract_strided_slice %366 {offsets = [0, 0], sizes = [2, 128], strides = [1, 1]} : vector<2x256xf32> to vector<2x128xf32>
    %378 = arith.mulf %377, %368 : vector<2x128xf32>
    %379 = arith.addf %376, %378 : vector<2x128xf32>
    %380 = math.tanh %379 : vector<2x128xf32>
    %381 = arith.mulf %374, %380 : vector<2x128xf32>
    %382 = vector.extract_strided_slice %245 {offsets = [5, 0, 0], sizes = [1, 2, 512], strides = [1, 1, 1]} : vector<8x2x512xf32> to vector<1x2x512xf32>
    %383 = vector.shape_cast %382 : vector<1x2x512xf32> to vector<2x512xf32>
    %384 = arith.truncf %381 : vector<2x128xf32> to vector<2x128xbf16>
    %cst_79 = arith.constant dense<0.000000e+00> : vector<2x512xf32>
    %385 = tpu.matmul %384, %251, %cst_79 {dimension_numbers = #tpu.dot_dimension_numbers<[1], [0], [0], [1], [0, 0, 1, 1], [], []>} : vector<2x128xbf16>, vector<128x512xbf16>, vector<2x512xf32> -> vector<2x512xf32>
    %386 = arith.addf %383, %385 : vector<2x512xf32>
    %387 = vector.extract_strided_slice %386 {offsets = [0, 0], sizes = [2, 256], strides = [1, 1]} : vector<2x512xf32> to vector<2x256xf32>
    %388 = arith.negf %387 : vector<2x256xf32>
    %389 = math.exp %388 : vector<2x256xf32>
    %cst_80 = arith.constant 1.000000e+00 : f32
    %390 = vector.broadcast %cst_80 : f32 to vector<2x256xf32>
    %391 = arith.addf %390, %389 : vector<2x256xf32>
    %392 = arith.divf %390, %391 : vector<2x256xf32>
    %393 = vector.extract_strided_slice %386 {offsets = [0, 256], sizes = [2, 128], strides = [1, 1]} : vector<2x512xf32> to vector<2x128xf32>
    %394 = math.tanh %393 : vector<2x128xf32>
    %395 = vector.extract_strided_slice %386 {offsets = [0, 384], sizes = [2, 128], strides = [1, 1]} : vector<2x512xf32> to vector<2x128xf32>
    %396 = arith.negf %395 : vector<2x128xf32>
    %397 = math.exp %396 : vector<2x128xf32>
    %cst_81 = arith.constant 1.000000e+00 : f32
    %398 = vector.broadcast %cst_81 : f32 to vector<2x128xf32>
    %399 = arith.addf %398, %397 : vector<2x128xf32>
    %400 = arith.divf %398, %399 : vector<2x128xf32>
    %401 = vector.extract_strided_slice %392 {offsets = [0, 128], sizes = [2, 128], strides = [1, 1]} : vector<2x256xf32> to vector<2x128xf32>
    %402 = arith.mulf %401, %379 : vector<2x128xf32>
    %403 = vector.extract_strided_slice %392 {offsets = [0, 0], sizes = [2, 128], strides = [1, 1]} : vector<2x256xf32> to vector<2x128xf32>
    %404 = arith.mulf %403, %394 : vector<2x128xf32>
    %405 = arith.addf %402, %404 : vector<2x128xf32>
    %406 = math.tanh %405 : vector<2x128xf32>
    %407 = arith.mulf %400, %406 : vector<2x128xf32>
    %408 = vector.extract_strided_slice %245 {offsets = [6, 0, 0], sizes = [1, 2, 512], strides = [1, 1, 1]} : vector<8x2x512xf32> to vector<1x2x512xf32>
    %409 = vector.shape_cast %408 : vector<1x2x512xf32> to vector<2x512xf32>
    %410 = arith.truncf %407 : vector<2x128xf32> to vector<2x128xbf16>
    %cst_82 = arith.constant dense<0.000000e+00> : vector<2x512xf32>
    %411 = tpu.matmul %410, %251, %cst_82 {dimension_numbers = #tpu.dot_dimension_numbers<[1], [0], [0], [1], [0, 0, 1, 1], [], []>} : vector<2x128xbf16>, vector<128x512xbf16>, vector<2x512xf32> -> vector<2x512xf32>
    %412 = arith.addf %409, %411 : vector<2x512xf32>
    %413 = vector.extract_strided_slice %412 {offsets = [0, 0], sizes = [2, 256], strides = [1, 1]} : vector<2x512xf32> to vector<2x256xf32>
    %414 = arith.negf %413 : vector<2x256xf32>
    %415 = math.exp %414 : vector<2x256xf32>
    %cst_83 = arith.constant 1.000000e+00 : f32
    %416 = vector.broadcast %cst_83 : f32 to vector<2x256xf32>
    %417 = arith.addf %416, %415 : vector<2x256xf32>
    %418 = arith.divf %416, %417 : vector<2x256xf32>
    %419 = vector.extract_strided_slice %412 {offsets = [0, 256], sizes = [2, 128], strides = [1, 1]} : vector<2x512xf32> to vector<2x128xf32>
    %420 = math.tanh %419 : vector<2x128xf32>
    %421 = vector.extract_strided_slice %412 {offsets = [0, 384], sizes = [2, 128], strides = [1, 1]} : vector<2x512xf32> to vector<2x128xf32>
    %422 = arith.negf %421 : vector<2x128xf32>
    %423 = math.exp %422 : vector<2x128xf32>
    %cst_84 = arith.constant 1.000000e+00 : f32
    %424 = vector.broadcast %cst_84 : f32 to vector<2x128xf32>
    %425 = arith.addf %424, %423 : vector<2x128xf32>
    %426 = arith.divf %424, %425 : vector<2x128xf32>
    %427 = vector.extract_strided_slice %418 {offsets = [0, 128], sizes = [2, 128], strides = [1, 1]} : vector<2x256xf32> to vector<2x128xf32>
    %428 = arith.mulf %427, %405 : vector<2x128xf32>
    %429 = vector.extract_strided_slice %418 {offsets = [0, 0], sizes = [2, 128], strides = [1, 1]} : vector<2x256xf32> to vector<2x128xf32>
    %430 = arith.mulf %429, %420 : vector<2x128xf32>
    %431 = arith.addf %428, %430 : vector<2x128xf32>
    %432 = math.tanh %431 : vector<2x128xf32>
    %433 = arith.mulf %426, %432 : vector<2x128xf32>
    %434 = vector.extract_strided_slice %245 {offsets = [7, 0, 0], sizes = [1, 2, 512], strides = [1, 1, 1]} : vector<8x2x512xf32> to vector<1x2x512xf32>
    %435 = vector.shape_cast %434 : vector<1x2x512xf32> to vector<2x512xf32>
    %436 = arith.truncf %433 : vector<2x128xf32> to vector<2x128xbf16>
    %cst_85 = arith.constant dense<0.000000e+00> : vector<2x512xf32>
    %437 = tpu.matmul %436, %251, %cst_85 {dimension_numbers = #tpu.dot_dimension_numbers<[1], [0], [0], [1], [0, 0, 1, 1], [], []>} : vector<2x128xbf16>, vector<128x512xbf16>, vector<2x512xf32> -> vector<2x512xf32>
    %438 = arith.addf %435, %437 : vector<2x512xf32>
    %439 = vector.extract_strided_slice %438 {offsets = [0, 0], sizes = [2, 256], strides = [1, 1]} : vector<2x512xf32> to vector<2x256xf32>
    %440 = arith.negf %439 : vector<2x256xf32>
    %441 = math.exp %440 : vector<2x256xf32>
    %cst_86 = arith.constant 1.000000e+00 : f32
    %442 = vector.broadcast %cst_86 : f32 to vector<2x256xf32>
    %443 = arith.addf %442, %441 : vector<2x256xf32>
    %444 = arith.divf %442, %443 : vector<2x256xf32>
    %445 = vector.extract_strided_slice %438 {offsets = [0, 256], sizes = [2, 128], strides = [1, 1]} : vector<2x512xf32> to vector<2x128xf32>
    %446 = math.tanh %445 : vector<2x128xf32>
    %447 = vector.extract_strided_slice %438 {offsets = [0, 384], sizes = [2, 128], strides = [1, 1]} : vector<2x512xf32> to vector<2x128xf32>
    %448 = arith.negf %447 : vector<2x128xf32>
    %449 = math.exp %448 : vector<2x128xf32>
    %cst_87 = arith.constant 1.000000e+00 : f32
    %450 = vector.broadcast %cst_87 : f32 to vector<2x128xf32>
    %451 = arith.addf %450, %449 : vector<2x128xf32>
    %452 = arith.divf %450, %451 : vector<2x128xf32>
    %453 = vector.extract_strided_slice %444 {offsets = [0, 128], sizes = [2, 128], strides = [1, 1]} : vector<2x256xf32> to vector<2x128xf32>
    %454 = arith.mulf %453, %431 : vector<2x128xf32>
    %455 = vector.extract_strided_slice %444 {offsets = [0, 0], sizes = [2, 128], strides = [1, 1]} : vector<2x256xf32> to vector<2x128xf32>
    %456 = arith.mulf %455, %446 : vector<2x128xf32>
    %457 = arith.addf %454, %456 : vector<2x128xf32>
    %458 = math.tanh %457 : vector<2x128xf32>
    %459 = arith.mulf %452, %458 : vector<2x128xf32>
    %460 = tpu.concatenate %277, %303, %329, %355, %381, %407, %433, %459 in 0 : vector<2x128xf32>, vector<2x128xf32>, vector<2x128xf32>, vector<2x128xf32>, vector<2x128xf32>, vector<2x128xf32>, vector<2x128xf32>, vector<2x128xf32> -> vector<16x128xf32>
    %c1_88 = arith.constant 1 : index
    %c0_89 = arith.constant 0 : index
    %c0_90 = arith.constant 0 : index
    %461 = vector.load %arg15[%c1_88, %c0_89, %c0_90] : memref<2x2x128xf32, #tpu.memory_space<vmem>>, vector<1x2x128xf32>
    %462 = vector.shape_cast %461 : vector<1x2x128xf32> to vector<2x128xf32>
    %463 = vector.shape_cast %459 : vector<2x128xf32> to vector<1x2x128xf32>
    tpu.vector_store %arg15[%c1_88, %c0_89, %c0_90], %463 {strides = array<i32>} : memref<2x2x128xf32, #tpu.memory_space<vmem>>, vector<1x2x128xf32>,
    %c1_91 = arith.constant 1 : index
    %c0_92 = arith.constant 0 : index
    %c0_93 = arith.constant 0 : index
    %464 = vector.load %arg16[%c1_91, %c0_92, %c0_93] : memref<2x2x128xf32, #tpu.memory_space<vmem>>, vector<1x2x128xf32>
    %465 = vector.shape_cast %464 : vector<1x2x128xf32> to vector<2x128xf32>
    %466 = vector.shape_cast %457 : vector<2x128xf32> to vector<1x2x128xf32>
    tpu.vector_store %arg16[%c1_91, %c0_92, %c0_93], %466 {strides = array<i32>} : memref<2x2x128xf32, #tpu.memory_space<vmem>>, vector<1x2x128xf32>,
    %467 = arith.truncf %460 : vector<16x128xf32> to vector<16x128xbf16>
    %c0_94 = arith.constant 0 : index
    %c0_95 = arith.constant 0 : index
    %468 = vector.load %arg10[%c0_94, %c0_95] : memref<128x64xbf16, #tpu.memory_space<vmem>>, vector<128x64xbf16>
    %cst_96 = arith.constant dense<0.000000e+00> : vector<16x64xf32>
    %469 = tpu.matmul %467, %468, %cst_96 {dimension_numbers = #tpu.dot_dimension_numbers<[1], [0], [0], [1], [0, 0, 1, 1], [], []>} : vector<16x128xbf16>, vector<128x64xbf16>, vector<16x64xf32> -> vector<16x64xf32>
    %c0_97 = arith.constant 0 : index
    %c0_98 = arith.constant 0 : index
    %470 = vector.load %arg11[%c0_97, %c0_98] : memref<1x64xf32, #tpu.memory_space<vmem>>, vector<1x64xf32>
    %471 = vector.broadcast %470 : vector<1x64xf32> to vector<16x64xf32>
    %472 = arith.addf %469, %471 : vector<16x64xf32>
    %cst_99 = arith.constant 0.000000e+00 : f32
    %473 = vector.broadcast %cst_99 : f32 to vector<16x64xf32>
    %474 = arith.cmpf ogt, %472, %473 : vector<16x64xf32>
    %cst_100 = arith.constant 0.00999999977 : f32
    %475 = vector.broadcast %cst_100 : f32 to vector<16x64xf32>
    %476 = arith.mulf %475, %472 : vector<16x64xf32>
    %477 = arith.select %474, %472, %476 : vector<16x64xi1>, vector<16x64xf32>
    %478 = arith.truncf %477 : vector<16x64xf32> to vector<16x64xbf16>
    %c0_101 = arith.constant 0 : index
    %c0_102 = arith.constant 0 : index
    %479 = vector.load %arg12[%c0_101, %c0_102] : memref<64x128xbf16, #tpu.memory_space<vmem>>, vector<64x128xbf16>
    %cst_103 = arith.constant dense<0.000000e+00> : vector<16x128xf32>
    %480 = tpu.matmul %478, %479, %cst_103 {dimension_numbers = #tpu.dot_dimension_numbers<[1], [0], [0], [1], [0, 0, 1, 1], [], []>} : vector<16x64xbf16>, vector<64x128xbf16>, vector<16x128xf32> -> vector<16x128xf32>
    %c0_104 = arith.constant 0 : index
    %c0_105 = arith.constant 0 : index
    %481 = vector.load %arg13[%c0_104, %c0_105] : memref<1x128xf32, #tpu.memory_space<vmem>>, vector<1x128xf32>
    %482 = vector.broadcast %481 : vector<1x128xf32> to vector<16x128xf32>
    %483 = arith.addf %480, %482 : vector<16x128xf32>
    %c0_106 = arith.constant 0 : index
    %c0_107 = arith.constant 0 : index
    %484 = vector.load %arg14[%c0_106, %c0_107] : memref<16x128xf32, #tpu.memory_space<vmem>>, vector<16x128xf32>
    tpu.vector_store %arg14[%c0_106, %c0_107], %483 {strides = array<i32>} : memref<16x128xf32, #tpu.memory_space<vmem>>, vector<16x128xf32>,
    return
  }
}

</mosaic_0001>

<bundles_post_ra>
// kernel: tpu_custom_call.1
= control target key start
LH: loop header
LB: loop body
LE: loop exit
PB: predicated region body
PF: predicated region fallthrough
CT: control target
= control target key end

     0   :  { %s5825_s0 = inlined_call_operand.vmem [shape: f32[16,12], index: 0, kind: input, shape index: {}]   ;;  %s5826_s1 = inlined_call_operand.vmem [shape: f32[2,2,128], index: 1, kind: input, shape index: {}]   ;;  %s5827_s2 = inlined_call_operand.vmem [shape: f32[2,2,128], index: 2, kind: input, shape index: {}]   ;;  %s5828_s3 = inlined_call_operand.vmem [shape: f32[12,64], index: 3, kind: input, shape index: {}]   ;;  %s5829_s4 = inlined_call_operand.vmem [shape: f32[1,64], index: 4, kind: input, shape index: {}]   ;;  %s5830_s5 = inlined_call_operand.hbm [shape: bf16[64,512], index: 5, kind: input, shape index: {}]   ;;  %s5831_s6 = inlined_call_operand.vmem [shape: f32[1,512], index: 6, kind: input, shape index: {}]   ;;  %s5832_s7 = inlined_call_operand.hbm [shape: bf16[128,512], index: 7, kind: input, shape index: {}]   ;;  %s5833_s8 = inlined_call_operand.vmem [shape: f32[1,512], index: 8, kind: input, shape index: {}]   ;;  %s5834_s9 = inlined_call_operand.hbm [shape: bf16[2,128,512], index: 9, kind: input, shape index: {}]   ;;  %s5835_s10 = inlined_call_operand.vmem [shape: bf16[128,64], index: 10, kind: input, shape index: {}]   ;;  %s5836_s11 = inlined_call_operand.vmem [shape: f32[1,64], index: 11, kind: input, shape index: {}]   ;;  %s5837_s12 = inlined_call_operand.vmem [shape: bf16[64,128], index: 12, kind: input, shape index: {}]   ;;  %s5838_s13 = inlined_call_operand.vmem [shape: f32[1,128], index: 13, kind: input, shape index: {}]   ;;  %s5839_s14 = inlined_call_operand.hbm [shape: f32[16,128], index: 14, kind: output, shape index: {0}]   ;;  %s5840_s15 = inlined_call_operand.hbm [shape: f32[2,2,128], index: 15, kind: output, shape index: {1}]   ;;  %s5841_s16 = inlined_call_operand.hbm [shape: f32[2,2,128], index: 16, kind: output, shape index: {2}]  }
   0x1   :  { %5847 = sst [smem:[#allocation16_spill]] %s5825_s0 }
   0x2   :  { %22 = vsyncpa [#allocation3], 0 }
   0x3   :  { %23 = vsyncpa [#allocation6], 0 }
   0x4   :  { %24 = vsyncpa [#allocation4], 0 }
   0x5   :  { %25 = vsyncpa [#allocation10], 0  ;;  %s4607_s21 = smov [#allocation5]   ;;  %s4608_s23 = smov [#allocation2]  }
   0x6   :  { %s55_s22 = sshll.u32 %s4607_s21, 4  ;;  %s41_s24 = sshll.u32 %s4608_s23, 4  ;;  %s56_s22 = int_to_ptr.vmem [resolvable:$true] %s55_s22  ;;  %s4709_s24 = int_to_ptr.vmem [resolvable:$true] %s41_s24 }
   0x7   :  { %s4467_s27 = scalar_lea.hbm %s5832_s7, 4096 }
   0x8   :  { %p4468_p0 = scmp.ne.s32.totalorder %s5832_s7, %s4467_s27  ;;  %p4471_p1 = scmp.lt.u32.totalorder %s4467_s27, %s5832_s7 }
   0xa   :  { %p4473_p2 = pnand %p4471_p1, %p4468_p0 }
   0xc   :  { %4476 = shalt.err (!%p4473_p2)
}
   0xd   :  { %s4477_s17 = scalar_lea.vmem %s56_s22, 4096  ;;  %p4482_p4 = scmp.lt.s32.totalorder %s56_s22, %s56_s22 }
   0xe   :  { %p4478_p3 = scmp.ne.s32.totalorder %s56_s22, %s4477_s17  ;;  %p4483_p5 = scmp.lt.s32.totalorder %s4477_s17, %s4477_s17 }
  0x10   :  { %p4484_p6 = por %p4483_p5, %p4482_p4 }
  0x12   :  { %p4485_p7 = pnand %p4484_p6, %p4478_p3 }
  0x14   :  { %4488 = shalt.err (!%p4485_p7)
}
  0x15   :  { %s4609_s18 = smov 256   ;;  %s4610_s19 = smov 16  }
  0x16   :  { %61 = dma.hbm_to_vmem [thread:$0]  %s5832_s7, 4096, %s56_s22, [#allocation6], %s4609_s18, %s4609_s18, %s4610_s19  }
  0x17   :  { %s4489_s26 = scalar_lea.hbm %s5830_s5, 2048 }
  0x18   :  { %p4490_p8 = scmp.ne.s32.totalorder %s5830_s5, %s4489_s26  ;;  %p4493_p9 = scmp.lt.u32.totalorder %s4489_s26, %s5830_s5 }
  0x1a   :  { %p4495_p10 = pnand %p4493_p9, %p4490_p8 }
  0x1c   :  { %4498 = shalt.err (!%p4495_p10)
}
  0x1d   :  { %s4499_s0 = scalar_lea.vmem %s4709_s24, 2048  ;;  %p4504_p12 = scmp.lt.s32.totalorder %s4709_s24, %s4709_s24 }
  0x1e   :  { %p4500_p11 = scmp.ne.s32.totalorder %s4709_s24, %s4499_s0  ;;  %p4505_p13 = scmp.lt.s32.totalorder %s4499_s0, %s4499_s0 }
  0x20   :  { %p4506_p0 = por %p4505_p13, %p4504_p12 }
  0x22   :  { %p4507_p1 = pnand %p4506_p0, %p4500_p11 }
  0x24   :  { %4510 = shalt.err (!%p4507_p1)
}
  0x25   :  { %47 = dma.hbm_to_vmem [thread:$0]  %s5830_s5, 2048, %s4709_s24, [#allocation3], %s4609_s18, %s4609_s18, %s4610_s19  }
  0x26   :  { %s4611_s17 = smov [#allocation7]   ;;  %s4511_s25 = scalar_lea.hbm %s5834_s9, 8192 }
  0x27   :  { %s69_s20 = sshll.u32 %s4611_s17, 4  ;;  %p4512_p2 = scmp.ne.s32.totalorder %s5834_s9, %s4511_s25  ;;  %s70_s20 = int_to_ptr.vmem [resolvable:$true] %s69_s20 }
  0x28   :  { %p4515_p3 = scmp.lt.u32.totalorder %s4511_s25, %s5834_s9 }
  0x2a   :  { %p4517_p4 = pnand %p4515_p3, %p4512_p2 }
  0x2c   :  { %4520 = shalt.err (!%p4517_p4)
}
  0x2d   :  { %s4521_s30 = scalar_lea.vmem %s70_s20, 8192  ;;  %p4526_p6 = scmp.lt.s32.totalorder %s70_s20, %s70_s20 }
  0x2e   :  { %p4522_p5 = scmp.ne.s32.totalorder %s70_s20, %s4521_s30  ;;  %p4527_p7 = scmp.lt.s32.totalorder %s4521_s30, %s4521_s30 }
  0x30   :  { %p4528_p8 = por %p4527_p7, %p4526_p6 }
  0x32   :  { %p4529_p9 = pnand %p4528_p8, %p4522_p5 }
  0x34   :  { %4532 = shalt.err (!%p4529_p9)
}
  0x35   :  { %75 = dma.hbm_to_vmem [thread:$0]  %s5834_s9, 8192, %s70_s20, [#allocation6], %s4609_s18, %s4609_s18, %s4610_s19  }
  0x36   :  { %4599 = dma.done.wait [#allocation3], 2048  }
  0x37   :  { %4600 = vsyncadd [#allocation3], 4294965248 }
  0x38   :  { %4601 = dma.done.wait [#allocation6], 12288  }
  0x39   :  { %4602 = vsyncadd [#allocation6], 4294955008  ;;  %vm112_vm0 = vcmask 1043456   ;;  %vm105_vm1 = vcmask 97280   ;;  %vm4612_vm2 = vmmov 1   ;;  %v96_v0 = vld [vmem:[%s5828_s3] sm:$0xff] }
  0x3a   :  { %vm4009_vm3 = vmpackc.low %vm112_vm0, %vm4612_vm2  ;;  %v97_v1 = vld [vmem:[%s5828_s3 + $0x8] sm:$0xf]  ;;  %s5848_s9 = sld [smem:[#allocation16_spill]]  ;;  %v4031_v5 = vld [vmem:[#allocation2 + $0x4] ss:$16 sps:$4 sm:$0xff]   ;;  %v4613_v23 = vmov 0  }
  0x3b   :  { %v4008_v3 = vpack.c.bf16 %v97_v1, %v96_v0  ;;  %v4033_v6 = vld [vmem:[#allocation2 + $0x8] ss:$16 sps:$4 sm:$0xff]   ;;  %v4035_v7 = vld [vmem:[#allocation2 + $0xc] ss:$16 sps:$4 sm:$0xff]   ;;  %v4036_v8 = vld [vmem:[#allocation2] ss:$16 sps:$4 sm:$0xff]   ;;  %320 = vmatprep.subr.bf16.mxu1 %v4031_v5  ;;  %352 = vmatprep.mubr.bf16.mxu1 %v4613_v23 }
  0x3c   :  { %v4037_v9 = vld [vmem:[#allocation2 + $0x24] ss:$16 sps:$4 sm:$0xff]   ;;  %321 = vmatpush1.bf16.msra.mxu1 %v4036_v8  ;;  %v4039_v10 = vld [vmem:[#allocation2 + $0x28] ss:$16 sps:$4 sm:$0xff]   ;;  %v4041_v11 = vld [vmem:[#allocation2 + $0x2c] ss:$16 sps:$4 sm:$0xff]  }
  0x3d   :  { %4010 = vmatprep.subr.msk.bf16.mxu0 %vm4009_vm3, %v4008_v3  ;;  %322 = vmatprep.subr.bf16.mxu1 %v4037_v9  ;;  %v4042_v12 = vld [vmem:[#allocation2 + $0x20] ss:$16 sps:$4 sm:$0xff]   ;;  %v4043_v13 = vld [vmem:[#allocation2 + $0x44] ss:$16 sps:$4 sm:$0xff]   ;;  %v4047_v14 = vld [vmem:[#allocation2 + $0x4c] ss:$16 sps:$4 sm:$0xff]  }
  0x3e   :  { %4013 = vmatpush3.bf16.msk.msra.mxu0 %vm4009_vm3, %v4008_v3  ;;  %v4045_v15 = vld [vmem:[#allocation2 + $0x48] ss:$16 sps:$4 sm:$0xff]   ;;  %v4048_v16 = vld [vmem:[#allocation2 + $0x40] ss:$16 sps:$4 sm:$0xff]   ;;  %v4049_v17 = vld [vmem:[#allocation2 + $0x64] ss:$16 sps:$4 sm:$0xff]  }
  0x3f   :  { %363 = vmatprep.subr.bf16.mxu0 %v4035_v7  ;;  %v4053_v18 = vld [vmem:[#allocation2 + $0x6c] ss:$16 sps:$4 sm:$0xff]   ;;  %v4051_v19 = vld [vmem:[#allocation2 + $0x68] ss:$16 sps:$4 sm:$0xff]   ;;  %v4054_v20 = vld [vmem:[#allocation2 + $0x60] ss:$16 sps:$4 sm:$0xff]  }
  0x40   :  { %v94_v2 = vld [vmem:[%s5848_s9] sm:$0xff]  ;;  %v95_v4 = vld [vmem:[%s5848_s9 + $0x8] sm:$0xff]  ;;  %323 = vmatpush1.bf16.msra.mxu1 %v4042_v12  ;;  %vm316_vm6 = vcmask 523264   ;;  %v4614_v7 = vmov 1983009808   ;;  %vm1806_vm7 = vcmask 1041408  }
  0x41   :  { %3973 = vmatprep.mubr.msk.f32.mxu0 %vm105_vm1, %v94_v2  ;;  %324 = vmatprep.subr.bf16.mxu1 %v4043_v13  ;;  %v4776_v21 = vld [vmem:[#allocation7 + $0x4] ss:$16 sps:$4 sm:$0xff]   ;;  %v4778_v22 = vld [vmem:[#allocation7 + $0xc] ss:$16 sps:$4 sm:$0xff]   ;;  %v3784_v24 = vld [vmem:[%s5829_s4] ss:$0 sm:$0xff]  ;;  %v216_v2 = vlaneseq  ;;  %v419_v8 = vunpack.c.l.s4 %v4614_v7 }
  0x42   :  { %3974 = vmatmul.mubr.msk.f32.vlgmr.msra.gmra.mrb[0].mxu0 %vm105_vm1, %v95_v4  ;;  %v4787_v33 = vld [vmem:[#allocation7] ss:$16 sps:$4 sm:$0xff]   ;;  %v4789_v34 = vld [vmem:[#allocation7 + $0x8] ss:$16 sps:$4 sm:$0xff]   ;;  %v4791_v36 = vld [vmem:[#allocation7 + $0x24] ss:$16 sps:$4 sm:$0xff]  }
  0x43   :  { %364 = vmatpush1.bf16.msra.mxu0 %v4033_v6  ;;  %395 = vmatprep.mubr.bf16.mxu0 %v4613_v23  ;;  %v4793_v37 = vld [vmem:[#allocation7 + $0x2c] ss:$16 sps:$4 sm:$0xff]   ;;  %v4799_v38 = vld [vmem:[#allocation7 + $0x20] ss:$16 sps:$4 sm:$0xff]   ;;  %v4801_v39 = vld [vmem:[#allocation7 + $0x28] ss:$16 sps:$4 sm:$0xff]   ;;  %v420_v13 = vunpack.c.0.s8 %v419_v8 }
  0x44   :  { %365 = vmatprep.subr.bf16.mxu0 %v4041_v11  ;;  %325 = vmatpush1.bf16.msra.mxu1 %v4048_v16  ;;  %v4805_v40 = vld [vmem:[#allocation7 + $0x44] ss:$16 sps:$4 sm:$0xff]   ;;  %v4807_v41 = vld [vmem:[#allocation7 + $0x4c] ss:$16 sps:$4 sm:$0xff]   ;;  %v4813_v42 = vld [vmem:[#allocation7 + $0x40] ss:$16 sps:$4 sm:$0xff]  }
  0x45   :  { %326 = vmatprep.subr.bf16.mxu1 %v4049_v17  ;;  %v4815_v43 = vld [vmem:[#allocation7 + $0x48] ss:$16 sps:$4 sm:$0xff]   ;;  %v4819_v44 = vld [vmem:[#allocation7 + $0x64] ss:$16 sps:$4 sm:$0xff]   ;;  %v4821_v45 = vld [vmem:[#allocation7 + $0x6c] ss:$16 sps:$4 sm:$0xff]  }
  0x46   :  { %v4825_v46 = vld [vmem:[#allocation7 + $0x60] ss:$16 sps:$4 sm:$0xff]   ;;  %v4827_v47 = vld [vmem:[#allocation7 + $0x68] ss:$16 sps:$4 sm:$0xff]   ;;  %v4831_v48 = vld [vmem:[#allocation7 + $0x84] ss:$16 sps:$4 sm:$0xff]  }
  0x47   :  { %366 = vmatpush1.bf16.msra.mxu0 %v4039_v10  ;;  %v4833_v49 = vld [vmem:[#allocation7 + $0x8c] ss:$16 sps:$4 sm:$0xff]   ;;  %v4837_v50 = vld [vmem:[#allocation7 + $0x80] ss:$16 sps:$4 sm:$0xff]   ;;  %v4839_v51 = vld [vmem:[#allocation7 + $0x88] ss:$16 sps:$4 sm:$0xff]  }
  0x48   :  { %367 = vmatprep.subr.bf16.mxu0 %v4047_v14  ;;  %327 = vmatpush1.bf16.msra.mxu1 %v4054_v20  ;;  %v4843_v52 = vld [vmem:[#allocation7 + $0xa4] ss:$16 sps:$4 sm:$0xff]   ;;  %v4845_v53 = vld [vmem:[#allocation7 + $0xac] ss:$16 sps:$4 sm:$0xff]   ;;  %v4849_v54 = vld [vmem:[#allocation7 + $0xa0] ss:$16 sps:$4 sm:$0xff]  }
  0x49   :  { %689 = vmatprep.subr.bf16.mxu1 %v4776_v21  ;;  %v4851_v55 = vld [vmem:[#allocation7 + $0xa8] ss:$16 sps:$4 sm:$0xff]   ;;  %v4855_v56 = vld [vmem:[#allocation7 + $0xc4] ss:$16 sps:$4 sm:$0xff]   ;;  %v4857_v57 = vld [vmem:[#allocation7 + $0xcc] ss:$16 sps:$4 sm:$0xff]  }
  0x4a   :  { %v4861_v58 = vld [vmem:[#allocation7 + $0xc0] ss:$16 sps:$4 sm:$0xff]   ;;  %v4863_v59 = vld [vmem:[#allocation7 + $0xc8] ss:$16 sps:$4 sm:$0xff]   ;;  %v4867_v60 = vld [vmem:[#allocation7 + $0xe4] ss:$16 sps:$4 sm:$0xff]  }
  0x4b   :  { %368 = vmatpush1.bf16.msra.mxu0 %v4045_v15  ;;  %v4869_v61 = vld [vmem:[#allocation7 + $0xec] ss:$16 sps:$4 sm:$0xff]   ;;  %v4873_v62 = vld [vmem:[#allocation7 + $0xe0] ss:$16 sps:$4 sm:$0xff]   ;;  %v4875_v63 = vld [vmem:[#allocation7 + $0xe8] ss:$16 sps:$4 sm:$0xff]  }
  0x4c   :  { %369 = vmatprep.subr.bf16.mxu0 %v4053_v18  ;;  %v494_v0 = vld [vmem:[%s5826_s1] sm:$0x3]  ;;  %v4920_v3 = vshrl.u32 %v216_v2, 7  ;;  %vm1809_vm8 = vcmask 1045504   ;;  %vm4616_vm9 = vmmov 0  }
  0x4d   :  { %v528_v1 = vpack.c.bf16 %v494_v0, %v494_v0  ;;  %v214_v6 = vld [vmem:[%s5831_s6] sm:$0xf] }
  0x4e   :  { %v5846_v4 = vsub.s32 0, %v4920_v3  ;;  %v5845_v5 = vsub.s32 2, %v4920_v3  ;;  %v5844_v9 = vsub.s32 1, %v4920_v3  ;;  %v5843_v10 = vsub.s32 3, %v4920_v3 }
  0x4f   :  { %370 = vmatpush1.bf16.msra.mxu0 %v4051_v19 }
  0x50   :  { %730 = vmatprep.subr.bf16.mxu0 %v4778_v22  ;;  %v219_v11 = vrot.slane %v214_v6, %v5846_v4  ;;  %v227_v12 = vrot.slane %v214_v6, %v5845_v5  ;;  %v223_v14 = vrot.slane %v214_v6, %v5844_v9  ;;  %v231_v15 = vrot.slane %v214_v6, %v5843_v10 }
 0x115   :  { %v3975_v25 = vpop.f32.mrb[0].mxu0 }
 0x116   :  { %v188_v26 = vadd.f32 %v3975_v25, %v3784_v24  ;;  %v182_v27 = vpop.f32.mrb[1].mxu0  ;;  %v4938_v25 = vsub.s32 %v420_v13, %v4920_v3 }
 0x117   :  { %v183_v28 = vadd.f32 %v3784_v24, %v182_v27 }
 0x118   :  { %vm192_vm4 = vcmp.gt.f32.partialorder %v188_v26, 0.0  ;;  %v194_v29 = vmul.f32 0.01, %v188_v26 }
 0x119   :  { %vm191_vm5 = vcmp.gt.f32.partialorder %v183_v28, 0.0  ;;  %v193_v30 = vmul.f32 0.01, %v183_v28 }
 0x11a   :  { %v196_v31 = vsel %vm192_vm4, %v188_v26, %v194_v29 }
 0x11b   :  { %v195_v32 = vsel %vm191_vm5, %v183_v28, %v193_v30 }
 0x11c   :  { %v197_v35 = vpack.c.bf16 %v196_v31, %v195_v32 }
 0x11e   :  { %3804 = vmatmul.mubr.msk.bf16.vlgmr.msra.gmra.mrb[0].mxu1 %vm316_vm6, %v197_v35  ;;  %3805 = vmatmul.mubr.msk.bf16.vlgmr.msra.gmra.mrb[4].mxu0 %vm316_vm6, %v197_v35 }
 0x11f   :  { %690 = vmatpush1.bf16.msra.mxu1 %v4787_v33  ;;  %731 = vmatpush1.bf16.msra.mxu0 %v4789_v34 }
 0x120   :  { %691 = vmatprep.subr.bf16.mxu1 %v4791_v36  ;;  %732 = vmatprep.subr.bf16.mxu0 %v4793_v37 }
 0x121   :  { %721 = vmatprep.mubr.bf16.mxu1 %v4613_v23  ;;  %762 = vmatprep.mubr.bf16.mxu0 %v4613_v23 }
 0x123   :  { %692 = vmatpush1.bf16.msra.mxu1 %v4799_v38  ;;  %733 = vmatpush1.bf16.msra.mxu0 %v4801_v39 }
 0x124   :  { %693 = vmatprep.subr.bf16.mxu1 %v4805_v40  ;;  %734 = vmatprep.subr.bf16.mxu0 %v4807_v41 }
 0x127   :  { %694 = vmatpush1.bf16.msra.mxu1 %v4813_v42  ;;  %735 = vmatpush1.bf16.msra.mxu0 %v4815_v43 }
 0x128   :  { %695 = vmatprep.subr.bf16.mxu1 %v4819_v44  ;;  %736 = vmatprep.subr.bf16.mxu0 %v4821_v45 }
 0x12b   :  { %696 = vmatpush1.bf16.msra.mxu1 %v4825_v46  ;;  %737 = vmatpush1.bf16.msra.mxu0 %v4827_v47 }
 0x12c   :  { %697 = vmatprep.subr.bf16.mxu1 %v4831_v48  ;;  %738 = vmatprep.subr.bf16.mxu0 %v4833_v49 }
 0x12f   :  { %698 = vmatpush1.bf16.msra.mxu1 %v4837_v50  ;;  %739 = vmatpush1.bf16.msra.mxu0 %v4839_v51 }
 0x130   :  { %699 = vmatprep.subr.bf16.mxu1 %v4843_v52  ;;  %740 = vmatprep.subr.bf16.mxu0 %v4845_v53 }
 0x133   :  { %700 = vmatpush1.bf16.msra.mxu1 %v4849_v54  ;;  %741 = vmatpush1.bf16.msra.mxu0 %v4851_v55 }
 0x134   :  { %701 = vmatprep.subr.bf16.mxu1 %v4855_v56  ;;  %742 = vmatprep.subr.bf16.mxu0 %v4857_v57 }
 0x137   :  { %702 = vmatpush1.bf16.msra.mxu1 %v4861_v58  ;;  %743 = vmatpush1.bf16.msra.mxu0 %v4863_v59 }
 0x138   :  { %703 = vmatprep.subr.bf16.mxu1 %v4867_v60  ;;  %744 = vmatprep.subr.bf16.mxu0 %v4869_v61 }
 0x13b   :  { %704 = vmatpush1.bf16.msra.mxu1 %v4873_v62  ;;  %745 = vmatpush1.bf16.msra.mxu0 %v4875_v63 }
 0x13c   :  { %821 = vmatprep.subr.bf16.mxu1 %v4776_v21  ;;  %862 = vmatprep.subr.bf16.mxu0 %v4778_v22 }
 0x13e   :  { %722 = vmatmul.mubr.bf16.vlgmr.msra.gmra.mrb[4].mxu1 %v528_v1  ;;  %763 = vmatmul.mubr.bf16.vlgmr.msra.gmra.mrb[8].mxu0 %v528_v1 }
 0x13f   :  { %822 = vmatpush1.bf16.msra.mxu1 %v4787_v33  ;;  %863 = vmatpush1.bf16.msra.mxu0 %v4789_v34 }
 0x140   :  { %823 = vmatprep.subr.bf16.mxu1 %v4791_v36  ;;  %864 = vmatprep.subr.bf16.mxu0 %v4793_v37 }
 0x141   :  { %853 = vmatprep.mubr.bf16.mxu1 %v4613_v23  ;;  %894 = vmatprep.mubr.bf16.mxu0 %v4613_v23 }
 0x143   :  { %824 = vmatpush1.bf16.msra.mxu1 %v4799_v38  ;;  %865 = vmatpush1.bf16.msra.mxu0 %v4801_v39 }
 0x144   :  { %825 = vmatprep.subr.bf16.mxu1 %v4805_v40  ;;  %866 = vmatprep.subr.bf16.mxu0 %v4807_v41 }
 0x147   :  { %826 = vmatpush1.bf16.msra.mxu1 %v4813_v42  ;;  %867 = vmatpush1.bf16.msra.mxu0 %v4815_v43 }
 0x148   :  { %827 = vmatprep.subr.bf16.mxu1 %v4819_v44  ;;  %868 = vmatprep.subr.bf16.mxu0 %v4821_v45 }
 0x14b   :  { %828 = vmatpush1.bf16.msra.mxu1 %v4825_v46  ;;  %869 = vmatpush1.bf16.msra.mxu0 %v4827_v47 }
 0x14c   :  { %829 = vmatprep.subr.bf16.mxu1 %v4831_v48  ;;  %870 = vmatprep.subr.bf16.mxu0 %v4833_v49 }
 0x14f   :  { %830 = vmatpush1.bf16.msra.mxu1 %v4837_v50  ;;  %871 = vmatpush1.bf16.msra.mxu0 %v4839_v51 }
 0x150   :  { %831 = vmatprep.subr.bf16.mxu1 %v4843_v52  ;;  %872 = vmatprep.subr.bf16.mxu0 %v4845_v53 }
 0x153   :  { %832 = vmatpush1.bf16.msra.mxu1 %v4849_v54  ;;  %873 = vmatpush1.bf16.msra.mxu0 %v4851_v55 }
 0x154   :  { %833 = vmatprep.subr.bf16.mxu1 %v4855_v56  ;;  %874 = vmatprep.subr.bf16.mxu0 %v4857_v57 }
 0x157   :  { %834 = vmatpush1.bf16.msra.mxu1 %v4861_v58  ;;  %875 = vmatpush1.bf16.msra.mxu0 %v4863_v59 }
 0x158   :  { %835 = vmatprep.subr.bf16.mxu1 %v4867_v60  ;;  %876 = vmatprep.subr.bf16.mxu0 %v4869_v61 }
 0x15b   :  { %836 = vmatpush1.bf16.msra.mxu1 %v4873_v62  ;;  %877 = vmatpush1.bf16.msra.mxu0 %v4875_v63 }
 0x15c   :  { %953 = vmatprep.subr.bf16.mxu1 %v4776_v21  ;;  %994 = vmatprep.subr.bf16.mxu0 %v4778_v22 }
 0x1f1   :  { %v354_v16 = vpop.f32.mrb[0].mxu1  ;;  %v397_v17 = vpop.f32.mrb[4].mxu0 }
 0x1f2   :  { %v355_v18 = vadd.f32 %v354_v16, %v219_v11  ;;  %v398_v19 = vadd.f32 %v397_v17, %v227_v12  ;;  %v356_v20 = vpop.f32.mrb[1].mxu1  ;;  %v399_v24 = vpop.f32.mrb[5].mxu0 }
 0x1f3   :  { %v357_v26 = vadd.f32 %v356_v20, %v223_v14  ;;  %v400_v27 = vadd.f32 %v399_v24, %v231_v15  ;;  %v358_v28 = vpop.f32.mrb[2].mxu1  ;;  %v401_v29 = vpop.f32.mrb[6].mxu0 }
 0x1f4   :  { %v359_v30 = vadd.f32 %v358_v28, %v219_v11  ;;  %v402_v31 = vadd.f32 %v401_v29, %v227_v12  ;;  %v360_v32 = vpop.f32.mrb[3].mxu1  ;;  %v403_v35 = vpop.f32.mrb[7].mxu0 }
 0x1f5   :  { %v414_v0 = vcombine.low %v355_v18, %v357_v26  ;;  %v415_v1 = vcombine.high %v355_v18, %v357_v26  ;;  %v416_v2 = vcombine.low %v398_v19, %v400_v27  ;;  %v417_v6 = vcombine.high %v398_v19, %v400_v27 }
 0x1f6   :  { %v361_v7 = vadd.f32 %v360_v32, %v223_v14  ;;  %v404_v8 = vadd.f32 %v403_v35, %v231_v15 }
 0x1f7   :  { %v4941_v16 = vrot.slane %v414_v0, %v4938_v25  ;;  %v4944_v13 = vrot.slane %v415_v1, %v4938_v25  ;;  %v4947_v17 = vrot.slane %v416_v2, %v4938_v25  ;;  %v4950_v11 = vrot.slane %v417_v6, %v4938_v25 }
 0x1f8   :  { %v450_v12 = vcombine.low %v359_v30, %v361_v7  ;;  %v451_v20 = vcombine.high %v359_v30, %v361_v7  ;;  %v452_v24 = vcombine.low %v402_v31, %v404_v8  ;;  %v453_v18 = vcombine.high %v402_v31, %v404_v8 }
 0x1f9   :  { %v446_v14 = vcombine.low %v4941_v16, %v4947_v17 }
 0x1fa   :  { %v4961_v27 = vrot.slane %v450_v12, %v4938_v25  ;;  %v4964_v28 = vrot.slane %v451_v20, %v4938_v25  ;;  %v4967_v29 = vrot.slane %v452_v24, %v4938_v25  ;;  %v4970_v30 = vrot.slane %v453_v18, %v4938_v25 }
 0x211   :  { %v723_v1 = vpop.f32.mrb[4].mxu1  ;;  %v764_v2 = vpop.f32.mrb[8].mxu0 }
 0x212   :  { %v725_v6 = vpop.f32.mrb[5].mxu1  ;;  %v766_v7 = vpop.f32.mrb[9].mxu0 }
 0x213   :  { %v775_v8 = vcombine.low %v723_v1, %v725_v6  ;;  %v776_v12 = vcombine.low %v764_v2, %v766_v7  ;;  %v727_v20 = vpop.f32.mrb[6].mxu1  ;;  %v768_v24 = vpop.f32.mrb[10].mxu0 }
 0x214   :  { %v728_v18 = vpop.f32.mrb[7].mxu1  ;;  %v769_v10 = vpop.f32.mrb[11].mxu0 }
 0x215   :  { %v783_v9 = vrot.slane %v775_v8, %v4938_v25  ;;  %v790_v5 = vrot.slane %v776_v12, %v4938_v25  ;;  %v495_v10 = vld [vmem:[%s5827_s2] sm:$0x3] }
 0x217   :  { %v791_v4 = vcombine.low %v783_v9, %v790_v5 }
 0x219   :  { %v793_v32 = vadd.f32 %v791_v4, %v446_v14 }
 0x21b   :  { %v3838_v35 = vmul.f32 -1.442695, %v793_v32  ;;  %v804_v31 = vrot.slane %v793_v32, 6  ;;  %v801_v15 = vrot.slane %v793_v32, 4 }
 0x21d   :  { %4211 = vpow2.f32 %v3838_v35  ;;  %v3839_v0 = vmul.f32 -1.442695, %v804_v31 }
 0x21f   :  { %4213 = vpow2.f32 %v3839_v0 }
 0x227   :  { %v4212_v26 = vpop.eup %4211 }
 0x228   :  { %v797_v19 = vadd.f32 1.0, %v4212_v26 }
 0x229   :  { %v4214_v1 = vpop.eup %4213 }
 0x22a   :  { %4215 = vrcp.f32 %v797_v19  ;;  %v809_v5 = vadd.f32 1.0, %v4214_v1 }
 0x22b   :  { %4217 = vtanh.f32 %v801_v15 }
 0x22c   :  { %4219 = vrcp.f32 %v809_v5  ;;  %v5849_v5 = vcombine.high %v4941_v16, %v4947_v17 }
 0x234   :  { %v4216_v2 = vpop.eup %4215 }
 0x235   :  { %v813_v6 = vrot.slane %v4216_v2, 2  ;;  %v4218_v7 = vpop.eup %4217 }
 0x236   :  { %v816_v4 = vmul.f32 %v4218_v7, %v4216_v2  ;;  %v4220_v26 = vpop.eup %4219 }
 0x237   :  { %v815_v9 = vmul.f32 %v813_v6, %v495_v10 }
 0x239   :  { %v4985_v14 = vadd.f32 %v816_v4, %v815_v9 }
 0x23b   :  { %4221 = vtanh.f32 %v4985_v14 }
 0x245   :  { %v4222_v31 = vpop.eup %4221 }
 0x246   :  { %v4988_v19 = vmul.f32 %v4222_v31, %v4220_v26 }
 0x248   :  { %v820_v15 = vpack.c.bf16 %v4988_v19, %v4988_v19 }
 0x24a   :  { %854 = vmatmul.mubr.bf16.vlgmr.msra.gmra.mrb[8].mxu1 %v820_v15  ;;  %895 = vmatmul.mubr.bf16.vlgmr.msra.gmra.mrb[12].mxu0 %v820_v15 }
 0x24b   :  { %954 = vmatpush1.bf16.msra.mxu1 %v4787_v33  ;;  %995 = vmatpush1.bf16.msra.mxu0 %v4789_v34 }
 0x24c   :  { %955 = vmatprep.subr.bf16.mxu1 %v4791_v36  ;;  %996 = vmatprep.subr.bf16.mxu0 %v4793_v37 }
 0x24d   :  { %985 = vmatprep.mubr.bf16.mxu1 %v4613_v23  ;;  %1026 = vmatprep.mubr.bf16.mxu0 %v4613_v23 }
 0x24f   :  { %956 = vmatpush1.bf16.msra.mxu1 %v4799_v38  ;;  %997 = vmatpush1.bf16.msra.mxu0 %v4801_v39 }
 0x250   :  { %957 = vmatprep.subr.bf16.mxu1 %v4805_v40  ;;  %998 = vmatprep.subr.bf16.mxu0 %v4807_v41 }
 0x253   :  { %958 = vmatpush1.bf16.msra.mxu1 %v4813_v42  ;;  %999 = vmatpush1.bf16.msra.mxu0 %v4815_v43 }
 0x254   :  { %959 = vmatprep.subr.bf16.mxu1 %v4819_v44  ;;  %1000 = vmatprep.subr.bf16.mxu0 %v4821_v45 }
 0x257   :  { %960 = vmatpush1.bf16.msra.mxu1 %v4825_v46  ;;  %1001 = vmatpush1.bf16.msra.mxu0 %v4827_v47 }
 0x258   :  { %961 = vmatprep.subr.bf16.mxu1 %v4831_v48  ;;  %1002 = vmatprep.subr.bf16.mxu0 %v4833_v49 }
 0x25b   :  { %962 = vmatpush1.bf16.msra.mxu1 %v4837_v50  ;;  %1003 = vmatpush1.bf16.msra.mxu0 %v4839_v51 }
 0x25c   :  { %963 = vmatprep.subr.bf16.mxu1 %v4843_v52  ;;  %1004 = vmatprep.subr.bf16.mxu0 %v4845_v53 }
 0x25f   :  { %964 = vmatpush1.bf16.msra.mxu1 %v4849_v54  ;;  %1005 = vmatpush1.bf16.msra.mxu0 %v4851_v55 }
 0x260   :  { %965 = vmatprep.subr.bf16.mxu1 %v4855_v56  ;;  %1006 = vmatprep.subr.bf16.mxu0 %v4857_v57 }
 0x263   :  { %966 = vmatpush1.bf16.msra.mxu1 %v4861_v58  ;;  %1007 = vmatpush1.bf16.msra.mxu0 %v4863_v59 }
 0x264   :  { %967 = vmatprep.subr.bf16.mxu1 %v4867_v60  ;;  %1008 = vmatprep.subr.bf16.mxu0 %v4869_v61 }
 0x267   :  { %968 = vmatpush1.bf16.msra.mxu1 %v4873_v62  ;;  %1009 = vmatpush1.bf16.msra.mxu0 %v4875_v63 }
 0x268   :  { %1085 = vmatprep.subr.bf16.mxu1 %v4776_v21  ;;  %1126 = vmatprep.subr.bf16.mxu0 %v4778_v22 }
 0x31d   :  { %v855_v32 = vpop.f32.mrb[8].mxu1  ;;  %v896_v35 = vpop.f32.mrb[12].mxu0 }
 0x31e   :  { %v857_v0 = vpop.f32.mrb[9].mxu1  ;;  %v898_v8 = vpop.f32.mrb[13].mxu0 }
 0x31f   :  { %v907_v12 = vcombine.low %v855_v32, %v857_v0  ;;  %v908_v20 = vcombine.low %v896_v35, %v898_v8  ;;  %v859_v24 = vpop.f32.mrb[10].mxu1  ;;  %v900_v18 = vpop.f32.mrb[14].mxu0 }
 0x320   :  { %v860_v1 = vpop.f32.mrb[11].mxu1  ;;  %v901_v2 = vpop.f32.mrb[15].mxu0 }
 0x321   :  { %v915_v10 = vrot.slane %v907_v12, %v4938_v25  ;;  %v922_v6 = vrot.slane %v908_v20, %v4938_v25 }
 0x323   :  { %v923_v7 = vcombine.low %v915_v10, %v922_v6 }
 0x325   :  { %v925_v4 = vadd.f32 %v923_v7, %v5849_v5 }
 0x327   :  { %v3840_v9 = vmul.f32 -1.442695, %v925_v4  ;;  %v936_v26 = vrot.slane %v925_v4, 6  ;;  %v933_v35 = vrot.slane %v925_v4, 4 }
 0x329   :  { %4223 = vpow2.f32 %v3840_v9  ;;  %v3841_v31 = vmul.f32 -1.442695, %v936_v26 }
 0x32b   :  { %4225 = vpow2.f32 %v3841_v31 }
 0x333   :  { %v4224_v15 = vpop.eup %4223 }
 0x334   :  { %v929_v32 = vadd.f32 1.0, %v4224_v15 }
 0x335   :  { %v4226_v0 = vpop.eup %4225 }
 0x336   :  { %4227 = vrcp.f32 %v929_v32  ;;  %v941_v20 = vadd.f32 1.0, %v4226_v0 }
 0x337   :  { %4229 = vtanh.f32 %v933_v35 }
 0x338   :  { %4231 = vrcp.f32 %v941_v20 }
 0x340   :  { %v4228_v8 = vpop.eup %4227 }
 0x341   :  { %v945_v12 = vrot.slane %v4228_v8, 2  ;;  %v4230_v24 = vpop.eup %4229 }
 0x342   :  { %v948_v18 = vmul.f32 %v4230_v24, %v4228_v8  ;;  %v4232_v17 = vpop.eup %4231  ;;  %v5850_v24 = vcombine.low %v4944_v13, %v4950_v11 }
 0x343   :  { %v947_v1 = vmul.f32 %v945_v12, %v4985_v14 }
 0x345   :  { %v5032_v16 = vadd.f32 %v948_v18, %v947_v1 }
 0x347   :  { %4233 = vtanh.f32 %v5032_v16 }
 0x351   :  { %v4234_v2 = vpop.eup %4233 }
 0x352   :  { %v5035_v10 = vmul.f32 %v4234_v2, %v4232_v17 }
 0x354   :  { %v952_v6 = vpack.c.bf16 %v5035_v10, %v5035_v10 }
 0x356   :  { %986 = vmatmul.mubr.bf16.vlgmr.msra.gmra.mrb[12].mxu1 %v952_v6  ;;  %1027 = vmatmul.mubr.bf16.vlgmr.msra.gmra.mrb[16].mxu0 %v952_v6 }
 0x357   :  { %1086 = vmatpush1.bf16.msra.mxu1 %v4787_v33  ;;  %1127 = vmatpush1.bf16.msra.mxu0 %v4789_v34 }
 0x358   :  { %1087 = vmatprep.subr.bf16.mxu1 %v4791_v36  ;;  %1128 = vmatprep.subr.bf16.mxu0 %v4793_v37 }
 0x359   :  { %1117 = vmatprep.mubr.bf16.mxu1 %v4613_v23  ;;  %1158 = vmatprep.mubr.bf16.mxu0 %v4613_v23 }
 0x35b   :  { %1088 = vmatpush1.bf16.msra.mxu1 %v4799_v38  ;;  %1129 = vmatpush1.bf16.msra.mxu0 %v4801_v39 }
 0x35c   :  { %1089 = vmatprep.subr.bf16.mxu1 %v4805_v40  ;;  %1130 = vmatprep.subr.bf16.mxu0 %v4807_v41 }
 0x35f   :  { %1090 = vmatpush1.bf16.msra.mxu1 %v4813_v42  ;;  %1131 = vmatpush1.bf16.msra.mxu0 %v4815_v43 }
 0x360   :  { %1091 = vmatprep.subr.bf16.mxu1 %v4819_v44  ;;  %1132 = vmatprep.subr.bf16.mxu0 %v4821_v45 }
 0x363   :  { %1092 = vmatpush1.bf16.msra.mxu1 %v4825_v46  ;;  %1133 = vmatpush1.bf16.msra.mxu0 %v4827_v47 }
 0x364   :  { %1093 = vmatprep.subr.bf16.mxu1 %v4831_v48  ;;  %1134 = vmatprep.subr.bf16.mxu0 %v4833_v49 }
 0x367   :  { %1094 = vmatpush1.bf16.msra.mxu1 %v4837_v50  ;;  %1135 = vmatpush1.bf16.msra.mxu0 %v4839_v51 }
 0x368   :  { %1095 = vmatprep.subr.bf16.mxu1 %v4843_v52  ;;  %1136 = vmatprep.subr.bf16.mxu0 %v4845_v53 }
 0x36b   :  { %1096 = vmatpush1.bf16.msra.mxu1 %v4849_v54  ;;  %1137 = vmatpush1.bf16.msra.mxu0 %v4851_v55 }
 0x36c   :  { %1097 = vmatprep.subr.bf16.mxu1 %v4855_v56  ;;  %1138 = vmatprep.subr.bf16.mxu0 %v4857_v57 }
 0x36f   :  { %1098 = vmatpush1.bf16.msra.mxu1 %v4861_v58  ;;  %1139 = vmatpush1.bf16.msra.mxu0 %v4863_v59 }
 0x370   :  { %1099 = vmatprep.subr.bf16.mxu1 %v4867_v60  ;;  %1140 = vmatprep.subr.bf16.mxu0 %v4869_v61 }
 0x373   :  { %1100 = vmatpush1.bf16.msra.mxu1 %v4873_v62  ;;  %1141 = vmatpush1.bf16.msra.mxu0 %v4875_v63 }
 0x374   :  { %1217 = vmatprep.subr.bf16.mxu1 %v4776_v21  ;;  %1258 = vmatprep.subr.bf16.mxu0 %v4778_v22 }
 0x429   :  { %v987_v14 = vpop.f32.mrb[12].mxu1  ;;  %v1028_v7 = vpop.f32.mrb[16].mxu0 }
 0x42a   :  { %v989_v5 = vpop.f32.mrb[13].mxu1  ;;  %v1030_v4 = vpop.f32.mrb[17].mxu0 }
 0x42b   :  { %v1039_v9 = vcombine.low %v987_v14, %v989_v5  ;;  %v1040_v26 = vcombine.low %v1028_v7, %v1030_v4  ;;  %v991_v31 = vpop.f32.mrb[14].mxu1  ;;  %v1032_v15 = vpop.f32.mrb[18].mxu0 }
 0x42c   :  { %v992_v32 = vpop.f32.mrb[15].mxu1  ;;  %v1033_v35 = vpop.f32.mrb[19].mxu0 }
 0x42d   :  { %v1047_v0 = vrot.slane %v1039_v9, %v4938_v25  ;;  %v1054_v8 = vrot.slane %v1040_v26, %v4938_v25  ;;  %v1745_v35 = vcombine.low %v5035_v10, %v5035_v10 }
 0x42f   :  { %v1055_v12 = vcombine.low %v1047_v0, %v1054_v8 }
 0x431   :  { %v1057_v20 = vadd.f32 %v1055_v12, %v5850_v24  ;;  %v1752_v24 = vrot.slane %v1745_v35, %v4938_v25 }
 0x433   :  { %v3842_v18 = vmul.f32 -1.442695, %v1057_v20  ;;  %v1068_v1 = vrot.slane %v1057_v20, 6  ;;  %v1065_v14 = vrot.slane %v1057_v20, 4 }
 0x435   :  { %4235 = vpow2.f32 %v3842_v18  ;;  %v3843_v17 = vmul.f32 -1.442695, %v1068_v1 }
 0x437   :  { %4237 = vpow2.f32 %v3843_v17 }
 0x43f   :  { %v4236_v2 = vpop.eup %4235 }
 0x440   :  { %v1061_v6 = vadd.f32 1.0, %v4236_v2 }
 0x441   :  { %v4238_v7 = vpop.eup %4237 }
 0x442   :  { %4239 = vrcp.f32 %v1061_v6  ;;  %v1073_v26 = vadd.f32 1.0, %v4238_v7 }
 0x443   :  { %4241 = vtanh.f32 %v1065_v14 }
 0x444   :  { %4243 = vrcp.f32 %v1073_v26 }
 0x44c   :  { %v4240_v5 = vpop.eup %4239 }
 0x44d   :  { %v1077_v4 = vrot.slane %v4240_v5, 2  ;;  %v4242_v9 = vpop.eup %4241 }
 0x44e   :  { %v1080_v31 = vmul.f32 %v4242_v9, %v4240_v5  ;;  %v4244_v0 = vpop.eup %4243 }
 0x44f   :  { %v1079_v15 = vmul.f32 %v1077_v4, %v5032_v16  ;;  %v1807_v16 = vsel %vm1806_vm7, %v4988_v19, %v1752_v24 }
 0x451   :  { %v5079_v32 = vadd.f32 %v1080_v31, %v1079_v15 }
 0x453   :  { %4245 = vtanh.f32 %v5079_v32 }
 0x45d   :  { %v4246_v8 = vpop.eup %4245 }
 0x45e   :  { %v1083_v12 = vmul.f32 %v4246_v8, %v4244_v0  ;;  %v5851_v0 = vcombine.high %v4944_v13, %v4950_v11 }
 0x460   :  { %v1084_v20 = vpack.c.bf16 %v1083_v12, %v1083_v12  ;;  %v1761_v18 = vrot.slane %v1083_v12, %v4938_v25 }
 0x462   :  { %1118 = vmatmul.mubr.bf16.vlgmr.msra.gmra.mrb[16].mxu1 %v1084_v20  ;;  %v1762_v1 = vcombine.low %v1761_v18, %v1761_v18  ;;  %1159 = vmatmul.mubr.bf16.vlgmr.msra.gmra.mrb[20].mxu0 %v1084_v20 }
 0x463   :  { %1218 = vmatpush1.bf16.msra.mxu1 %v4787_v33  ;;  %1259 = vmatpush1.bf16.msra.mxu0 %v4789_v34 }
 0x464   :  { %1219 = vmatprep.subr.bf16.mxu1 %v4791_v36  ;;  %1260 = vmatprep.subr.bf16.mxu0 %v4793_v37  ;;  %v5093_v10 = vsel %vm112_vm0, %v1807_v16, %v1762_v1 }
 0x465   :  { %1249 = vmatprep.mubr.bf16.mxu1 %v4613_v23  ;;  %1290 = vmatprep.mubr.bf16.mxu0 %v4613_v23 }
 0x467   :  { %1220 = vmatpush1.bf16.msra.mxu1 %v4799_v38  ;;  %1261 = vmatpush1.bf16.msra.mxu0 %v4801_v39 }
 0x468   :  { %1221 = vmatprep.subr.bf16.mxu1 %v4805_v40  ;;  %1262 = vmatprep.subr.bf16.mxu0 %v4807_v41 }
 0x46b   :  { %1222 = vmatpush1.bf16.msra.mxu1 %v4813_v42  ;;  %1263 = vmatpush1.bf16.msra.mxu0 %v4815_v43 }
 0x46c   :  { %1223 = vmatprep.subr.bf16.mxu1 %v4819_v44  ;;  %1264 = vmatprep.subr.bf16.mxu0 %v4821_v45 }
 0x46f   :  { %1224 = vmatpush1.bf16.msra.mxu1 %v4825_v46  ;;  %1265 = vmatpush1.bf16.msra.mxu0 %v4827_v47 }
 0x470   :  { %1225 = vmatprep.subr.bf16.mxu1 %v4831_v48  ;;  %1266 = vmatprep.subr.bf16.mxu0 %v4833_v49 }
 0x473   :  { %1226 = vmatpush1.bf16.msra.mxu1 %v4837_v50  ;;  %1267 = vmatpush1.bf16.msra.mxu0 %v4839_v51 }
 0x474   :  { %1227 = vmatprep.subr.bf16.mxu1 %v4843_v52  ;;  %1268 = vmatprep.subr.bf16.mxu0 %v4845_v53 }
 0x477   :  { %1228 = vmatpush1.bf16.msra.mxu1 %v4849_v54  ;;  %1269 = vmatpush1.bf16.msra.mxu0 %v4851_v55 }
 0x478   :  { %1229 = vmatprep.subr.bf16.mxu1 %v4855_v56  ;;  %1270 = vmatprep.subr.bf16.mxu0 %v4857_v57 }
 0x47b   :  { %1230 = vmatpush1.bf16.msra.mxu1 %v4861_v58  ;;  %1271 = vmatpush1.bf16.msra.mxu0 %v4863_v59 }
 0x47c   :  { %1231 = vmatprep.subr.bf16.mxu1 %v4867_v60  ;;  %1272 = vmatprep.subr.bf16.mxu0 %v4869_v61 }
 0x47f   :  { %1232 = vmatpush1.bf16.msra.mxu1 %v4873_v62  ;;  %1273 = vmatpush1.bf16.msra.mxu0 %v4875_v63 }
 0x480   :  { %1349 = vmatprep.subr.bf16.mxu1 %v4776_v21  ;;  %1390 = vmatprep.subr.bf16.mxu0 %v4778_v22 }
 0x535   :  { %v1119_v19 = vpop.f32.mrb[16].mxu1  ;;  %v1160_v17 = vpop.f32.mrb[20].mxu0 }
 0x536   :  { %v1121_v2 = vpop.f32.mrb[17].mxu1  ;;  %v1162_v6 = vpop.f32.mrb[21].mxu0 }
 0x537   :  { %v1171_v14 = vcombine.low %v1119_v19, %v1121_v2  ;;  %v1172_v7 = vcombine.low %v1160_v17, %v1162_v6  ;;  %v1123_v5 = vpop.f32.mrb[18].mxu1  ;;  %v1164_v4 = vpop.f32.mrb[22].mxu0 }
 0x538   :  { %v1124_v9 = vpop.f32.mrb[19].mxu1  ;;  %v1165_v26 = vpop.f32.mrb[23].mxu0 }
 0x539   :  { %v1179_v31 = vrot.slane %v1171_v14, %v4938_v25  ;;  %v1186_v15 = vrot.slane %v1172_v7, %v4938_v25 }
 0x53b   :  { %v1187_v35 = vcombine.low %v1179_v31, %v1186_v15 }
 0x53d   :  { %v1189_v8 = vadd.f32 %v1187_v35, %v5851_v0 }
 0x53f   :  { %v3844_v12 = vmul.f32 -1.442695, %v1189_v8  ;;  %v1200_v24 = vrot.slane %v1189_v8, 6  ;;  %v1197_v16 = vrot.slane %v1189_v8, 4 }
 0x541   :  { %4247 = vpow2.f32 %v3844_v12  ;;  %v3845_v20 = vmul.f32 -1.442695, %v1200_v24 }
 0x543   :  { %4249 = vpow2.f32 %v3845_v20 }
 0x54b   :  { %v4248_v18 = vpop.eup %4247 }
 0x54c   :  { %v1193_v1 = vadd.f32 1.0, %v4248_v18 }
 0x54d   :  { %v4250_v19 = vpop.eup %4249 }
 0x54e   :  { %4251 = vrcp.f32 %v1193_v1  ;;  %v1205_v14 = vadd.f32 1.0, %v4250_v19 }
 0x54f   :  { %4253 = vtanh.f32 %v1197_v16 }
 0x550   :  { %4255 = vrcp.f32 %v1205_v14 }
 0x558   :  { %v4252_v17 = vpop.eup %4251 }
 0x559   :  { %v1209_v2 = vrot.slane %v4252_v17, 2  ;;  %v4254_v6 = vpop.eup %4253 }
 0x55a   :  { %v1212_v7 = vmul.f32 %v4254_v6, %v4252_v17  ;;  %v4256_v11 = vpop.eup %4255 }
 0x55b   :  { %v1211_v5 = vmul.f32 %v1209_v2, %v5079_v32 }
 0x55d   :  { %v5131_v13 = vadd.f32 %v1212_v7, %v1211_v5 }
 0x55f   :  { %4257 = vtanh.f32 %v5131_v13 }
 0x569   :  { %v4258_v4 = vpop.eup %4257 }
 0x56a   :  { %v1215_v9 = vmul.f32 %v4258_v4, %v4256_v11 }
 0x56c   :  { %v1216_v26 = vpack.c.bf16 %v1215_v9, %v1215_v9  ;;  %v1765_v31 = vcombine.low %v1215_v9, %v1215_v9 }
 0x56e   :  { %1250 = vmatmul.mubr.bf16.vlgmr.msra.gmra.mrb[20].mxu1 %v1216_v26  ;;  %1291 = vmatmul.mubr.bf16.vlgmr.msra.gmra.mrb[24].mxu0 %v1216_v26  ;;  %v1772_v15 = vrot.slane %v1765_v31, %v4938_v25 }
 0x56f   :  { %1350 = vmatpush1.bf16.msra.mxu1 %v4787_v33  ;;  %1391 = vmatpush1.bf16.msra.mxu0 %v4789_v34 }
 0x570   :  { %1351 = vmatprep.subr.bf16.mxu1 %v4791_v36  ;;  %1392 = vmatprep.subr.bf16.mxu0 %v4793_v37  ;;  %v1773_v32 = vcombine.low %v1772_v15, %v1772_v15 }
 0x571   :  { %1381 = vmatprep.mubr.bf16.mxu1 %v4613_v23  ;;  %1422 = vmatprep.mubr.bf16.mxu0 %v4613_v23 }
 0x572   :  { %v5143_v35 = vsel %vm1809_vm8, %v5093_v10, %v1773_v32 }
 0x573   :  { %1352 = vmatpush1.bf16.msra.mxu1 %v4799_v38  ;;  %1393 = vmatpush1.bf16.msra.mxu0 %v4801_v39 }
 0x574   :  { %1353 = vmatprep.subr.bf16.mxu1 %v4805_v40  ;;  %1394 = vmatprep.subr.bf16.mxu0 %v4807_v41 }
 0x577   :  { %1354 = vmatpush1.bf16.msra.mxu1 %v4813_v42  ;;  %1395 = vmatpush1.bf16.msra.mxu0 %v4815_v43 }
 0x578   :  { %1355 = vmatprep.subr.bf16.mxu1 %v4819_v44  ;;  %1396 = vmatprep.subr.bf16.mxu0 %v4821_v45 }
 0x57b   :  { %1356 = vmatpush1.bf16.msra.mxu1 %v4825_v46  ;;  %1397 = vmatpush1.bf16.msra.mxu0 %v4827_v47 }
 0x57c   :  { %1357 = vmatprep.subr.bf16.mxu1 %v4831_v48  ;;  %1398 = vmatprep.subr.bf16.mxu0 %v4833_v49 }
 0x57f   :  { %1358 = vmatpush1.bf16.msra.mxu1 %v4837_v50  ;;  %1399 = vmatpush1.bf16.msra.mxu0 %v4839_v51 }
 0x580   :  { %1359 = vmatprep.subr.bf16.mxu1 %v4843_v52  ;;  %1400 = vmatprep.subr.bf16.mxu0 %v4845_v53 }
 0x583   :  { %1360 = vmatpush1.bf16.msra.mxu1 %v4849_v54  ;;  %1401 = vmatpush1.bf16.msra.mxu0 %v4851_v55 }
 0x584   :  { %1361 = vmatprep.subr.bf16.mxu1 %v4855_v56  ;;  %1402 = vmatprep.subr.bf16.mxu0 %v4857_v57 }
 0x587   :  { %1362 = vmatpush1.bf16.msra.mxu1 %v4861_v58  ;;  %1403 = vmatpush1.bf16.msra.mxu0 %v4863_v59 }
 0x588   :  { %1363 = vmatprep.subr.bf16.mxu1 %v4867_v60  ;;  %1404 = vmatprep.subr.bf16.mxu0 %v4869_v61 }
 0x58b   :  { %1364 = vmatpush1.bf16.msra.mxu1 %v4873_v62  ;;  %1405 = vmatpush1.bf16.msra.mxu0 %v4875_v63 }
 0x58c   :  { %1481 = vmatprep.subr.bf16.mxu1 %v4776_v21  ;;  %1522 = vmatprep.subr.bf16.mxu0 %v4778_v22  ;;  %v5852_v21 = vcombine.low %v4961_v27, %v4967_v29 }
 0x641   :  { %v1251_v10 = vpop.f32.mrb[20].mxu1  ;;  %v1292_v0 = vpop.f32.mrb[24].mxu0 }
 0x642   :  { %v1253_v8 = vpop.f32.mrb[21].mxu1  ;;  %v1294_v12 = vpop.f32.mrb[25].mxu0 }
 0x643   :  { %v1303_v24 = vcombine.low %v1251_v10, %v1253_v8  ;;  %v1304_v20 = vcombine.low %v1292_v0, %v1294_v12  ;;  %v1255_v18 = vpop.f32.mrb[22].mxu1  ;;  %v1296_v1 = vpop.f32.mrb[26].mxu0 }
 0x644   :  { %v1256_v16 = vpop.f32.mrb[23].mxu1  ;;  %v1297_v19 = vpop.f32.mrb[27].mxu0 }
 0x645   :  { %v1311_v17 = vrot.slane %v1303_v24, %v4938_v25  ;;  %v1318_v2 = vrot.slane %v1304_v20, %v4938_v25 }
 0x647   :  { %v1319_v6 = vcombine.low %v1311_v17, %v1318_v2  ;;  %v4405_v17 = vld [vmem:[#allocation7] ss:$16 sps:$4 sm:$0xff]   ;;  %v4406_v2 = vld [vmem:[#allocation7 + $0x8] ss:$16 sps:$4 sm:$0xff]  }
 0x649   :  { %v1321_v14 = vadd.f32 %v1319_v6, %v5852_v21  ;;  %v4407_v6 = vld [vmem:[#allocation7 + $0x24] ss:$16 sps:$4 sm:$0xff]   ;;  %v4408_v21 = vld [vmem:[#allocation7 + $0x2c] ss:$16 sps:$4 sm:$0xff]  }
 0x64b   :  { %v3846_v22 = vmul.f32 -1.442695, %v1321_v14  ;;  %v1332_v7 = vrot.slane %v1321_v14, 6  ;;  %v1329_v9 = vrot.slane %v1321_v14, 4  ;;  %v4409_v14 = vld [vmem:[#allocation7 + $0x20] ss:$16 sps:$4 sm:$0xff]  }
 0x64d   :  { %4259 = vpow2.f32 %v3846_v22  ;;  %v3847_v5 = vmul.f32 -1.442695, %v1332_v7  ;;  %v4410_v22 = vld [vmem:[#allocation7 + $0x28] ss:$16 sps:$4 sm:$0xff]   ;;  %v4411_v7 = vld [vmem:[#allocation7 + $0x44] ss:$16 sps:$4 sm:$0xff]  }
 0x64f   :  { %4261 = vpow2.f32 %v3847_v5  ;;  %v4412_v5 = vld [vmem:[#allocation7 + $0x4c] ss:$16 sps:$4 sm:$0xff]  }
 0x657   :  { %v4260_v11 = vpop.eup %4259 }
 0x658   :  { %v1325_v4 = vadd.f32 1.0, %v4260_v11  ;;  %v4413_v11 = vld [vmem:[#allocation7 + $0x40] ss:$16 sps:$4 sm:$0xff]  }
 0x659   :  { %v4262_v26 = vpop.eup %4261 }
 0x65a   :  { %4263 = vrcp.f32 %v1325_v4  ;;  %v1337_v10 = vadd.f32 1.0, %v4262_v26  ;;  %v4414_v4 = vld [vmem:[#allocation7 + $0x48] ss:$16 sps:$4 sm:$0xff]   ;;  %v4416_v26 = vld [vmem:[#allocation7 + $0x6c] ss:$16 sps:$4 sm:$0xff]  }
 0x65b   :  { %4265 = vtanh.f32 %v1329_v9  ;;  %v4415_v9 = vld [vmem:[#allocation7 + $0x64] ss:$16 sps:$4 sm:$0xff]  }
 0x65c   :  { %4267 = vrcp.f32 %v1337_v10  ;;  %v4420_v10 = vld [vmem:[#allocation7 + $0x8c] ss:$16 sps:$4 sm:$0xff]  }
 0x664   :  { %v4264_v31 = vpop.eup %4263 }
 0x665   :  { %v1341_v15 = vrot.slane %v4264_v31, 2  ;;  %v4266_v32 = vpop.eup %4265 }
 0x666   :  { %v1344_v0 = vmul.f32 %v4266_v32, %v4264_v31  ;;  %v4268_v24 = vpop.eup %4267  ;;  %v4417_v31 = vld [vmem:[#allocation7 + $0x60] ss:$16 sps:$4 sm:$0xff]   ;;  %v4419_v32 = vld [vmem:[#allocation7 + $0x84] ss:$16 sps:$4 sm:$0xff]  }
 0x667   :  { %v1343_v8 = vmul.f32 %v1341_v15, %v5131_v13  ;;  %v4418_v15 = vld [vmem:[#allocation7 + $0x68] ss:$16 sps:$4 sm:$0xff]  }
 0x669   :  { %v5179_v12 = vadd.f32 %v1344_v0, %v1343_v8  ;;  %v4421_v0 = vld [vmem:[#allocation7 + $0x80] ss:$16 sps:$4 sm:$0xff]   ;;  %v4422_v8 = vld [vmem:[#allocation7 + $0x88] ss:$16 sps:$4 sm:$0xff]  }
 0x66b   :  { %4269 = vtanh.f32 %v5179_v12 }
 0x675   :  { %v4270_v20 = vpop.eup %4269 }
 0x676   :  { %v5182_v18 = vmul.f32 %v4270_v20, %v4268_v24  ;;  %v4424_v24 = vld [vmem:[#allocation7 + $0xac] ss:$16 sps:$4 sm:$0xff]   ;;  %v4425_v20 = vld [vmem:[#allocation7 + $0xa0] ss:$16 sps:$4 sm:$0xff]  }
 0x678   :  { %v1348_v1 = vpack.c.bf16 %v5182_v18, %v5182_v18 }
 0x67a   :  { %1382 = vmatmul.mubr.bf16.vlgmr.msra.gmra.mrb[24].mxu1 %v1348_v1  ;;  %1423 = vmatmul.mubr.bf16.vlgmr.msra.gmra.mrb[28].mxu0 %v1348_v1  ;;  %v4426_v1 = vld [vmem:[#allocation7 + $0xa8] ss:$16 sps:$4 sm:$0xff]  }
 0x67b   :  { %1482 = vmatpush1.bf16.msra.mxu1 %v4787_v33  ;;  %1523 = vmatpush1.bf16.msra.mxu0 %v4789_v34  ;;  %v4403_v33 = vld [vmem:[#allocation7 + $0x4] ss:$16 sps:$4 sm:$0xff]   ;;  %v4404_v34 = vld [vmem:[#allocation7 + $0xc] ss:$16 sps:$4 sm:$0xff]  }
 0x67c   :  { %1483 = vmatprep.subr.bf16.mxu1 %v4791_v36  ;;  %1524 = vmatprep.subr.bf16.mxu0 %v4793_v37 }
 0x67d   :  { %1513 = vmatprep.mubr.bf16.mxu1 %v4613_v23  ;;  %1554 = vmatprep.mubr.bf16.mxu0 %v4613_v23 }
 0x67f   :  { %1484 = vmatpush1.bf16.msra.mxu1 %v4799_v38  ;;  %1525 = vmatpush1.bf16.msra.mxu0 %v4801_v39 }
 0x680   :  { %1485 = vmatprep.subr.bf16.mxu1 %v4805_v40  ;;  %1526 = vmatprep.subr.bf16.mxu0 %v4807_v41 }
 0x683   :  { %1486 = vmatpush1.bf16.msra.mxu1 %v4813_v42  ;;  %1527 = vmatpush1.bf16.msra.mxu0 %v4815_v43 }
 0x684   :  { %1487 = vmatprep.subr.bf16.mxu1 %v4819_v44  ;;  %1528 = vmatprep.subr.bf16.mxu0 %v4821_v45 }
 0x687   :  { %1488 = vmatpush1.bf16.msra.mxu1 %v4825_v46  ;;  %1529 = vmatpush1.bf16.msra.mxu0 %v4827_v47 }
 0x688   :  { %1489 = vmatprep.subr.bf16.mxu1 %v4831_v48  ;;  %1530 = vmatprep.subr.bf16.mxu0 %v4833_v49  ;;  %v5853_v49 = vcombine.high %v4961_v27, %v4967_v29 }
 0x68b   :  { %1490 = vmatpush1.bf16.msra.mxu1 %v4837_v50  ;;  %1531 = vmatpush1.bf16.msra.mxu0 %v4839_v51 }
 0x68c   :  { %1491 = vmatprep.subr.bf16.mxu1 %v4843_v52  ;;  %1532 = vmatprep.subr.bf16.mxu0 %v4845_v53 }
 0x68f   :  { %1492 = vmatpush1.bf16.msra.mxu1 %v4849_v54  ;;  %1533 = vmatpush1.bf16.msra.mxu0 %v4851_v55 }
 0x690   :  { %1493 = vmatprep.subr.bf16.mxu1 %v4855_v56  ;;  %1534 = vmatprep.subr.bf16.mxu0 %v4857_v57 }
 0x693   :  { %1494 = vmatpush1.bf16.msra.mxu1 %v4861_v58  ;;  %1535 = vmatpush1.bf16.msra.mxu0 %v4863_v59 }
 0x694   :  { %1495 = vmatprep.subr.bf16.mxu1 %v4867_v60  ;;  %1536 = vmatprep.subr.bf16.mxu0 %v4869_v61 }
 0x697   :  { %1496 = vmatpush1.bf16.msra.mxu1 %v4873_v62  ;;  %1537 = vmatpush1.bf16.msra.mxu0 %v4875_v63 }
 0x698   :  { %1613 = vmatprep.subr.bf16.mxu1 %v4403_v33  ;;  %1654 = vmatprep.subr.bf16.mxu0 %v4404_v34  ;;  %v4427_v33 = vld [vmem:[#allocation7 + $0xc4] ss:$16 sps:$4 sm:$0xff]   ;;  %v4428_v34 = vld [vmem:[#allocation7 + $0xcc] ss:$16 sps:$4 sm:$0xff]  }
 0x74d   :  { %v1383_v36 = vpop.f32.mrb[24].mxu1  ;;  %v1424_v37 = vpop.f32.mrb[28].mxu0 }
 0x74e   :  { %v1385_v38 = vpop.f32.mrb[25].mxu1  ;;  %v1426_v39 = vpop.f32.mrb[29].mxu0 }
 0x74f   :  { %v1435_v40 = vcombine.low %v1383_v36, %v1385_v38  ;;  %v1436_v41 = vcombine.low %v1424_v37, %v1426_v39  ;;  %v1387_v42 = vpop.f32.mrb[26].mxu1  ;;  %v1428_v43 = vpop.f32.mrb[30].mxu0  ;;  %v4429_v36 = vld [vmem:[#allocation7 + $0xc0] ss:$16 sps:$4 sm:$0xff]   ;;  %v4430_v37 = vld [vmem:[#allocation7 + $0xc8] ss:$16 sps:$4 sm:$0xff]  }
 0x750   :  { %v1388_v44 = vpop.f32.mrb[27].mxu1  ;;  %v1429_v45 = vpop.f32.mrb[31].mxu0  ;;  %v4431_v38 = vld [vmem:[#allocation7 + $0xe4] ss:$16 sps:$4 sm:$0xff]   ;;  %v4432_v39 = vld [vmem:[#allocation7 + $0xec] ss:$16 sps:$4 sm:$0xff]  }
 0x751   :  { %v1443_v46 = vrot.slane %v1435_v40, %v4938_v25  ;;  %v1450_v47 = vrot.slane %v1436_v41, %v4938_v25  ;;  %v4433_v40 = vld [vmem:[#allocation7 + $0xe0] ss:$16 sps:$4 sm:$0xff]   ;;  %v4434_v41 = vld [vmem:[#allocation7 + $0xe8] ss:$16 sps:$4 sm:$0xff]  }
 0x753   :  { %v1451_v48 = vcombine.low %v1443_v46, %v1450_v47 }
 0x755   :  { %v1453_v50 = vadd.f32 %v1451_v48, %v5853_v49 }
 0x757   :  { %v3848_v51 = vmul.f32 -1.442695, %v1453_v50  ;;  %v1464_v52 = vrot.slane %v1453_v50, 6  ;;  %v1461_v56 = vrot.slane %v1453_v50, 4 }
 0x759   :  { %4271 = vpow2.f32 %v3848_v51  ;;  %v3849_v53 = vmul.f32 -1.442695, %v1464_v52 }
 0x75b   :  { %4273 = vpow2.f32 %v3849_v53 }
 0x763   :  { %v4272_v54 = vpop.eup %4271 }
 0x764   :  { %v1457_v55 = vadd.f32 1.0, %v4272_v54 }
 0x765   :  { %v4274_v57 = vpop.eup %4273 }
 0x766   :  { %4275 = vrcp.f32 %v1457_v55  ;;  %v1469_v61 = vadd.f32 1.0, %v4274_v57  ;;  %v5854_v55 = vcombine.low %v4964_v28, %v4970_v30 }
 0x767   :  { %4277 = vtanh.f32 %v1461_v56 }
 0x768   :  { %4279 = vrcp.f32 %v1469_v61 }
 0x770   :  { %v4276_v58 = vpop.eup %4275 }
 0x771   :  { %v1473_v59 = vrot.slane %v4276_v58, 2  ;;  %v4278_v60 = vpop.eup %4277 }
 0x772   :  { %v1476_v62 = vmul.f32 %v4278_v60, %v4276_v58  ;;  %v4280_v29 = vpop.eup %4279 }
 0x773   :  { %v1475_v63 = vmul.f32 %v1473_v59, %v5179_v12  ;;  %v4423_v12 = vld [vmem:[#allocation7 + $0xa4] ss:$16 sps:$4 sm:$0xff]  }
 0x775   :  { %v5224_v27 = vadd.f32 %v1476_v62, %v1475_v63 }
 0x777   :  { %4281 = vtanh.f32 %v5224_v27 }
 0x781   :  { %v4282_v13 = vpop.eup %4281 }
 0x782   :  { %v5227_v16 = vmul.f32 %v4282_v13, %v4280_v29 }
 0x784   :  { %v1480_v19 = vpack.c.bf16 %v5227_v16, %v5227_v16 }
 0x786   :  { %1514 = vmatmul.mubr.bf16.vlgmr.msra.gmra.mrb[28].mxu1 %v1480_v19  ;;  %1555 = vmatmul.mubr.bf16.vlgmr.msra.gmra.mrb[32].mxu0 %v1480_v19 }
 0x787   :  { %1614 = vmatpush1.bf16.msra.mxu1 %v4405_v17  ;;  %1655 = vmatpush1.bf16.msra.mxu0 %v4406_v2 }
 0x788   :  { %1615 = vmatprep.subr.bf16.mxu1 %v4407_v6  ;;  %1656 = vmatprep.subr.bf16.mxu0 %v4408_v21 }
 0x789   :  { %1645 = vmatprep.mubr.bf16.mxu1 %v4613_v23  ;;  %1686 = vmatprep.mubr.bf16.mxu0 %v4613_v23 }
 0x78b   :  { %1616 = vmatpush1.bf16.msra.mxu1 %v4409_v14  ;;  %1657 = vmatpush1.bf16.msra.mxu0 %v4410_v22  ;;  %v1776_v14 = vcombine.low %v5227_v16, %v5227_v16 }
 0x78c   :  { %1617 = vmatprep.subr.bf16.mxu1 %v4411_v7  ;;  %1658 = vmatprep.subr.bf16.mxu0 %v4412_v5 }
 0x78f   :  { %1618 = vmatpush1.bf16.msra.mxu1 %v4413_v11  ;;  %1659 = vmatpush1.bf16.msra.mxu0 %v4414_v4  ;;  %v1783_v11 = vrot.slane %v1776_v14, %v4938_v25  ;;  %v5855_v14 = vcombine.high %v4964_v28, %v4970_v30 }
 0x790   :  { %1619 = vmatprep.subr.bf16.mxu1 %v4415_v9  ;;  %1660 = vmatprep.subr.bf16.mxu0 %v4416_v26 }
 0x793   :  { %1620 = vmatpush1.bf16.msra.mxu1 %v4417_v31  ;;  %1661 = vmatpush1.bf16.msra.mxu0 %v4418_v15  ;;  %v4105_v31 = vld [vmem:[#allocation5 + $0x4] ss:$16 sps:$4 sm:$0xff]   ;;  %v4108_v15 = vld [vmem:[#allocation5 + $0xc] ss:$16 sps:$4 sm:$0xff]  }
 0x794   :  { %1621 = vmatprep.subr.bf16.mxu1 %v4419_v32  ;;  %1662 = vmatprep.subr.bf16.mxu0 %v4420_v10  ;;  %v4103_v32 = vld [vmem:[#allocation5] ss:$16 sps:$4 sm:$0xff]   ;;  %v4106_v10 = vld [vmem:[#allocation5 + $0x8] ss:$16 sps:$4 sm:$0xff]  }
 0x797   :  { %1622 = vmatpush1.bf16.msra.mxu1 %v4421_v0  ;;  %1663 = vmatpush1.bf16.msra.mxu0 %v4422_v8  ;;  %v4111_v0 = vld [vmem:[#allocation5 + $0x24] ss:$16 sps:$4 sm:$0xff]   ;;  %v4114_v8 = vld [vmem:[#allocation5 + $0x2c] ss:$16 sps:$4 sm:$0xff]  }
 0x798   :  { %1623 = vmatprep.subr.bf16.mxu1 %v4423_v12  ;;  %1664 = vmatprep.subr.bf16.mxu0 %v4424_v24  ;;  %v4109_v12 = vld [vmem:[#allocation5 + $0x20] ss:$16 sps:$4 sm:$0xff]   ;;  %v4112_v24 = vld [vmem:[#allocation5 + $0x28] ss:$16 sps:$4 sm:$0xff]  }
 0x79b   :  { %1624 = vmatpush1.bf16.msra.mxu1 %v4425_v20  ;;  %1665 = vmatpush1.bf16.msra.mxu0 %v4426_v1  ;;  %v4120_v20 = vld [vmem:[#allocation5 + $0x4c] ss:$16 sps:$4 sm:$0xff]   ;;  %v4115_v1 = vld [vmem:[#allocation5 + $0x40] ss:$16 sps:$4 sm:$0xff]  }
 0x79c   :  { %1625 = vmatprep.subr.bf16.mxu1 %v4427_v33  ;;  %1666 = vmatprep.subr.bf16.mxu0 %v4428_v34  ;;  %v4118_v33 = vld [vmem:[#allocation5 + $0x48] ss:$16 sps:$4 sm:$0xff]   ;;  %v4121_v34 = vld [vmem:[#allocation5 + $0x60] ss:$16 sps:$4 sm:$0xff]  }
 0x79f   :  { %1626 = vmatpush1.bf16.msra.mxu1 %v4429_v36  ;;  %1667 = vmatpush1.bf16.msra.mxu0 %v4430_v37  ;;  %v4123_v36 = vld [vmem:[#allocation5 + $0x64] ss:$16 sps:$4 sm:$0xff]   ;;  %v4124_v37 = vld [vmem:[#allocation5 + $0x68] ss:$16 sps:$4 sm:$0xff]  }
 0x7a0   :  { %1627 = vmatprep.subr.bf16.mxu1 %v4431_v38  ;;  %1668 = vmatprep.subr.bf16.mxu0 %v4432_v39  ;;  %v4126_v38 = vld [vmem:[#allocation5 + $0x6c] ss:$16 sps:$4 sm:$0xff]   ;;  %v4129_v39 = vld [vmem:[#allocation5 + $0x84] ss:$16 sps:$4 sm:$0xff]  }
 0x7a3   :  { %1628 = vmatpush1.bf16.msra.mxu1 %v4433_v40  ;;  %1669 = vmatpush1.bf16.msra.mxu0 %v4434_v41  ;;  %v4132_v40 = vld [vmem:[#allocation5 + $0x8c] ss:$16 sps:$4 sm:$0xff]   ;;  %v4127_v41 = vld [vmem:[#allocation5 + $0x80] ss:$16 sps:$4 sm:$0xff]  }
 0x7a4   :  { %2031 = vmatprep.subr.bf16.mxu1 %v4105_v31  ;;  %2074 = vmatprep.subr.bf16.mxu0 %v4108_v15 }
 0x859   :  { %v1515_v42 = vpop.f32.mrb[28].mxu1  ;;  %v1556_v43 = vpop.f32.mrb[32].mxu0 }
 0x85a   :  { %v1517_v44 = vpop.f32.mrb[29].mxu1  ;;  %v1558_v45 = vpop.f32.mrb[33].mxu0 }
 0x85b   :  { %v1567_v46 = vcombine.low %v1515_v42, %v1517_v44  ;;  %v1568_v47 = vcombine.low %v1556_v43, %v1558_v45  ;;  %v1519_v48 = vpop.f32.mrb[30].mxu1  ;;  %v1560_v49 = vpop.f32.mrb[34].mxu0  ;;  %v4130_v42 = vld [vmem:[#allocation5 + $0x88] ss:$16 sps:$4 sm:$0xff]   ;;  %v4135_v43 = vld [vmem:[#allocation5 + $0xa4] ss:$16 sps:$4 sm:$0xff]  }
 0x85c   :  { %v1520_v50 = vpop.f32.mrb[31].mxu1  ;;  %v1561_v51 = vpop.f32.mrb[35].mxu0  ;;  %v4138_v44 = vld [vmem:[#allocation5 + $0xac] ss:$16 sps:$4 sm:$0xff]   ;;  %v4133_v45 = vld [vmem:[#allocation5 + $0xa0] ss:$16 sps:$4 sm:$0xff]  }
 0x85d   :  { %v1575_v52 = vrot.slane %v1567_v46, %v4938_v25  ;;  %v1582_v53 = vrot.slane %v1568_v47, %v4938_v25  ;;  %v4136_v46 = vld [vmem:[#allocation5 + $0xa8] ss:$16 sps:$4 sm:$0xff]   ;;  %v4141_v47 = vld [vmem:[#allocation5 + $0xc4] ss:$16 sps:$4 sm:$0xff]   ;;  %v4144_v48 = vld [vmem:[#allocation5 + $0xcc] ss:$16 sps:$4 sm:$0xff]  }
 0x85e   :  { %v4139_v49 = vld [vmem:[#allocation5 + $0xc0] ss:$16 sps:$4 sm:$0xff]   ;;  %v4142_v50 = vld [vmem:[#allocation5 + $0xc8] ss:$16 sps:$4 sm:$0xff]   ;;  %v4147_v51 = vld [vmem:[#allocation5 + $0xe4] ss:$16 sps:$4 sm:$0xff]  }
 0x85f   :  { %v1583_v54 = vcombine.low %v1575_v52, %v1582_v53  ;;  %v4150_v52 = vld [vmem:[#allocation5 + $0xec] ss:$16 sps:$4 sm:$0xff]   ;;  %v4145_v53 = vld [vmem:[#allocation5 + $0xe0] ss:$16 sps:$4 sm:$0xff]  }
 0x861   :  { %v1585_v56 = vadd.f32 %v1583_v54, %v5854_v55  ;;  %v4148_v54 = vld [vmem:[#allocation5 + $0xe8] ss:$16 sps:$4 sm:$0xff]   ;;  %v5253_v55 = vld [vmem:[#allocation7 + $0x104] ss:$16 sps:$4 sm:$0xff]  }
 0x863   :  { %v3850_v57 = vmul.f32 -1.442695, %v1585_v56  ;;  %v1596_v58 = vrot.slane %v1585_v56, 6  ;;  %v1593_v62 = vrot.slane %v1585_v56, 4  ;;  %v5255_v56 = vld [vmem:[#allocation7 + $0x10c] ss:$16 sps:$4 sm:$0xff]  }
 0x865   :  { %4283 = vpow2.f32 %v3850_v57  ;;  %v3851_v59 = vmul.f32 -1.442695, %v1596_v58 }
 0x867   :  { %4285 = vpow2.f32 %v3851_v59 }
 0x86f   :  { %v4284_v60 = vpop.eup %4283 }
 0x870   :  { %v1589_v61 = vadd.f32 1.0, %v4284_v60 }
 0x871   :  { %v4286_v63 = vpop.eup %4285 }
 0x872   :  { %4287 = vrcp.f32 %v1589_v61  ;;  %v1601_v17 = vadd.f32 1.0, %v4286_v63 }
 0x873   :  { %4289 = vtanh.f32 %v1593_v62 }
 0x874   :  { %4291 = vrcp.f32 %v1601_v17 }
 0x87c   :  { %v4288_v29 = vpop.eup %4287 }
 0x87d   :  { %v1605_v13 = vrot.slane %v4288_v29, 2  ;;  %v4290_v19 = vpop.eup %4289 }
 0x87e   :  { %v1608_v2 = vmul.f32 %v4290_v19, %v4288_v29  ;;  %v4292_v22 = vpop.eup %4291 }
 0x87f   :  { %v1607_v6 = vmul.f32 %v1605_v13, %v5224_v27  ;;  %v1811_v27 = vsel %vm1806_vm7, %v5182_v18, %v1783_v11  ;;  %v4117_v18 = vld [vmem:[#allocation5 + $0x44] ss:$16 sps:$4 sm:$0xff]  }
 0x881   :  { %v5239_v21 = vadd.f32 %v1608_v2, %v1607_v6 }
 0x883   :  { %4293 = vtanh.f32 %v5239_v21 }
 0x88d   :  { %v4294_v7 = vpop.eup %4293 }
 0x88e   :  { %v1611_v5 = vmul.f32 %v4294_v7, %v4292_v22 }
 0x890   :  { %v1612_v4 = vpack.c.bf16 %v1611_v5, %v1611_v5  ;;  %v1792_v9 = vrot.slane %v1611_v5, %v4938_v25 }
 0x892   :  { %1646 = vmatmul.mubr.bf16.vlgmr.msra.gmra.mrb[32].mxu1 %v1612_v4  ;;  %v1793_v26 = vcombine.low %v1792_v9, %v1792_v9  ;;  %1687 = vmatmul.mubr.bf16.vlgmr.msra.gmra.mrb[36].mxu0 %v1612_v4 }
 0x893   :  { %2063 = vmatprep.mubr.bf16.mxu1 %v4613_v23  ;;  %2106 = vmatprep.mubr.bf16.mxu0 %v4613_v23 }
 0x894   :  { %v5251_v16 = vsel %vm112_vm0, %v1811_v27, %v1793_v26  ;;  %2032 = vmatpush1.bf16.msra.mxu1 %v4103_v32  ;;  %2075 = vmatpush1.bf16.msra.mxu0 %v4106_v10 }
 0x895   :  { %2033 = vmatprep.subr.bf16.mxu1 %v4111_v0  ;;  %2076 = vmatprep.subr.bf16.mxu0 %v4114_v8 }
 0x898   :  { %2034 = vmatpush1.bf16.msra.mxu1 %v4109_v12  ;;  %2077 = vmatpush1.bf16.msra.mxu0 %v4112_v24 }
 0x899   :  { %2035 = vmatprep.subr.bf16.mxu1 %v4117_v18  ;;  %2078 = vmatprep.subr.bf16.mxu0 %v4120_v20 }
 0x89c   :  { %2036 = vmatpush1.bf16.msra.mxu1 %v4115_v1  ;;  %2079 = vmatpush1.bf16.msra.mxu0 %v4118_v33 }
 0x89d   :  { %2037 = vmatprep.subr.bf16.mxu1 %v4123_v36  ;;  %2080 = vmatprep.subr.bf16.mxu0 %v4126_v38  ;;  %v5270_v36 = vld [vmem:[#allocation7 + $0x108] ss:$16 sps:$4 sm:$0xff]   ;;  %v5275_v38 = vld [vmem:[#allocation7 + $0x12c] ss:$16 sps:$4 sm:$0xff]  }
 0x8a0   :  { %2038 = vmatpush1.bf16.msra.mxu1 %v4121_v34  ;;  %2081 = vmatpush1.bf16.msra.mxu0 %v4124_v37  ;;  %v5268_v34 = vld [vmem:[#allocation7 + $0x100] ss:$16 sps:$4 sm:$0xff]   ;;  %v5273_v37 = vld [vmem:[#allocation7 + $0x124] ss:$16 sps:$4 sm:$0xff]  }
 0x8a1   :  { %2039 = vmatprep.subr.bf16.mxu1 %v4129_v39  ;;  %2082 = vmatprep.subr.bf16.mxu0 %v4132_v40  ;;  %v5279_v39 = vld [vmem:[#allocation7 + $0x120] ss:$16 sps:$4 sm:$0xff]   ;;  %v5281_v40 = vld [vmem:[#allocation7 + $0x128] ss:$16 sps:$4 sm:$0xff]  }
 0x8a4   :  { %2040 = vmatpush1.bf16.msra.mxu1 %v4127_v41  ;;  %2083 = vmatpush1.bf16.msra.mxu0 %v4130_v42  ;;  %v5293_v41 = vld [vmem:[#allocation7 + $0x140] ss:$16 sps:$4 sm:$0xff]   ;;  %v5295_v42 = vld [vmem:[#allocation7 + $0x148] ss:$16 sps:$4 sm:$0xff]  }
 0x8a5   :  { %2041 = vmatprep.subr.bf16.mxu1 %v4135_v43  ;;  %2084 = vmatprep.subr.bf16.mxu0 %v4138_v44  ;;  %v5299_v43 = vld [vmem:[#allocation7 + $0x164] ss:$16 sps:$4 sm:$0xff]   ;;  %v5301_v44 = vld [vmem:[#allocation7 + $0x16c] ss:$16 sps:$4 sm:$0xff]  }
 0x8a8   :  { %2042 = vmatpush1.bf16.msra.mxu1 %v4133_v45  ;;  %2085 = vmatpush1.bf16.msra.mxu0 %v4136_v46  ;;  %v5305_v45 = vld [vmem:[#allocation7 + $0x160] ss:$16 sps:$4 sm:$0xff]   ;;  %v5307_v46 = vld [vmem:[#allocation7 + $0x168] ss:$16 sps:$4 sm:$0xff]  }
 0x8a9   :  { %2043 = vmatprep.subr.bf16.mxu1 %v4141_v47  ;;  %2086 = vmatprep.subr.bf16.mxu0 %v4144_v48  ;;  %v5311_v47 = vld [vmem:[#allocation7 + $0x184] ss:$16 sps:$4 sm:$0xff]   ;;  %v5313_v48 = vld [vmem:[#allocation7 + $0x18c] ss:$16 sps:$4 sm:$0xff]  }
 0x8ac   :  { %2044 = vmatpush1.bf16.msra.mxu1 %v4139_v49  ;;  %2087 = vmatpush1.bf16.msra.mxu0 %v4142_v50  ;;  %v5317_v49 = vld [vmem:[#allocation7 + $0x180] ss:$16 sps:$4 sm:$0xff]   ;;  %v5319_v50 = vld [vmem:[#allocation7 + $0x188] ss:$16 sps:$4 sm:$0xff]  }
 0x8ad   :  { %2045 = vmatprep.subr.bf16.mxu1 %v4147_v51  ;;  %2088 = vmatprep.subr.bf16.mxu0 %v4150_v52  ;;  %v5323_v51 = vld [vmem:[#allocation7 + $0x1a4] ss:$16 sps:$4 sm:$0xff]   ;;  %v5325_v52 = vld [vmem:[#allocation7 + $0x1ac] ss:$16 sps:$4 sm:$0xff]  }
 0x8b0   :  { %2046 = vmatpush1.bf16.msra.mxu1 %v4145_v53  ;;  %2089 = vmatpush1.bf16.msra.mxu0 %v4148_v54  ;;  %v5329_v53 = vld [vmem:[#allocation7 + $0x1a0] ss:$16 sps:$4 sm:$0xff]   ;;  %v5331_v54 = vld [vmem:[#allocation7 + $0x1a8] ss:$16 sps:$4 sm:$0xff]  }
 0x8b1   :  { %2403 = vmatprep.subr.bf16.mxu1 %v5253_v55  ;;  %2444 = vmatprep.subr.bf16.mxu0 %v5255_v56 }
 0x965   :  { %v1647_v57 = vpop.f32.mrb[32].mxu1  ;;  %v1688_v58 = vpop.f32.mrb[36].mxu0 }
 0x966   :  { %v1649_v59 = vpop.f32.mrb[33].mxu1  ;;  %v1690_v60 = vpop.f32.mrb[37].mxu0 }
 0x967   :  { %v1699_v61 = vcombine.low %v1647_v57, %v1649_v59  ;;  %v1700_v62 = vcombine.low %v1688_v58, %v1690_v60  ;;  %v1651_v63 = vpop.f32.mrb[34].mxu1  ;;  %v1692_v29 = vpop.f32.mrb[38].mxu0  ;;  %v5335_v57 = vld [vmem:[#allocation7 + $0x1c4] ss:$16 sps:$4 sm:$0xff]   ;;  %v5337_v58 = vld [vmem:[#allocation7 + $0x1cc] ss:$16 sps:$4 sm:$0xff]  }
 0x968   :  { %v1652_v13 = vpop.f32.mrb[35].mxu1  ;;  %v1693_v19 = vpop.f32.mrb[39].mxu0  ;;  %v5341_v59 = vld [vmem:[#allocation7 + $0x1c0] ss:$16 sps:$4 sm:$0xff]   ;;  %v5343_v60 = vld [vmem:[#allocation7 + $0x1c8] ss:$16 sps:$4 sm:$0xff]  }
 0x969   :  { %v1707_v17 = vrot.slane %v1699_v61, %v4938_v25  ;;  %v1714_v2 = vrot.slane %v1700_v62, %v4938_v25  ;;  %v5347_v61 = vld [vmem:[#allocation7 + $0x1e4] ss:$16 sps:$4 sm:$0xff]   ;;  %v5349_v62 = vld [vmem:[#allocation7 + $0x1ec] ss:$16 sps:$4 sm:$0xff]   ;;  %v5353_v63 = vld [vmem:[#allocation7 + $0x1e0] ss:$16 sps:$4 sm:$0xff]  }
 0x96a   :  { %v5355_v29 = vld [vmem:[#allocation7 + $0x1e8] ss:$16 sps:$4 sm:$0xff]   ;;  %v3886_v13 = vld [vmem:[%s5826_s1 + $0x2] sm:$0x3] }
 0x96b   :  { %v1715_v6 = vcombine.low %v1707_v17, %v1714_v2  ;;  %v2242_v19 = vpack.c.bf16 %v3886_v13, %v3886_v13  ;;  %v1849_v17 = vld [vmem:[%s5833_s8] sm:$0xf]  ;;  %v5856_v2 = vsub.s32 0, %v4920_v3 }
 0x96d   :  { %v1717_v22 = vadd.f32 %v1715_v6, %v5855_v14  ;;  %v1854_v6 = vrot.slane %v1849_v17, %v5856_v2  ;;  %v5857_v14 = vsub.s32 2, %v4920_v3 }
 0x96f   :  { %v3852_v7 = vmul.f32 -1.442695, %v1717_v22  ;;  %v1728_v5 = vrot.slane %v1717_v22, 6  ;;  %v1725_v26 = vrot.slane %v1717_v22, 4  ;;  %v1862_v22 = vrot.slane %v1849_v17, %v5857_v14 }
 0x971   :  { %4295 = vpow2.f32 %v3852_v7  ;;  %v3853_v11 = vmul.f32 -1.442695, %v1728_v5  ;;  %v5858_v7 = vsub.s32 1, %v4920_v3 }
 0x973   :  { %4297 = vpow2.f32 %v3853_v11  ;;  %v1858_v5 = vrot.slane %v1849_v17, %v5858_v7  ;;  %v5859_v11 = vsub.s32 3, %v4920_v3 }
 0x97b   :  { %v4296_v4 = vpop.eup %4295 }
 0x97c   :  { %v1721_v9 = vadd.f32 1.0, %v4296_v4  ;;  %v1866_v4 = vrot.slane %v1849_v17, %v5859_v11 }
 0x97d   :  { %v4298_v27 = vpop.eup %4297 }
 0x97e   :  { %4299 = vrcp.f32 %v1721_v9  ;;  %v1733_v10 = vadd.f32 1.0, %v4298_v27 }
 0x97f   :  { %4301 = vtanh.f32 %v1725_v26 }
 0x980   :  { %4303 = vrcp.f32 %v1733_v10 }
 0x988   :  { %v4300_v31 = vpop.eup %4299 }
 0x989   :  { %v1737_v15 = vrot.slane %v4300_v31, 2  ;;  %v4302_v32 = vpop.eup %4301 }
 0x98a   :  { %v1740_v8 = vmul.f32 %v4302_v32, %v4300_v31  ;;  %v4304_v30 = vpop.eup %4303 }
 0x98b   :  { %v1739_v0 = vmul.f32 %v1737_v15, %v5239_v21 }
 0x98d   :  { %v1741_v28 = vadd.f32 %v1740_v8, %v1739_v0 }
 0x98f   :  { %4305 = vtanh.f32 %v1741_v28  ;;  %1815 = vst [vmem:[#allocation11] sm:$0x3] %v1741_v28 }
 0x999   :  { %v4306_v12 = vpop.eup %4305 }
 0x99a   :  { %v1743_v24 = vmul.f32 %v4306_v12, %v4304_v30 }
 0x99c   :  { %v1796_v18 = vcombine.low %v1743_v24, %v1743_v24  ;;  %1814 = vst [vmem:[#allocation9] sm:$0x3] %v1743_v24 }
 0x99e   :  { %v1803_v20 = vrot.slane %v1796_v18, %v4938_v25 }
 0x9a0   :  { %v1804_v1 = vcombine.low %v1803_v20, %v1803_v20 }
 0x9a2   :  { %v1813_v33 = vsel %vm1809_vm8, %v5251_v16, %v1804_v1  ;;  %v5285_v16 = vld [vmem:[#allocation7 + $0x144] ss:$16 sps:$4 sm:$0xff]  }
 0x9a3   :  { %v1816_v21 = vpack.c.bf16 %v1813_v33, %v5143_v35  ;;  %v5287_v35 = vld [vmem:[#allocation7 + $0x14c] ss:$16 sps:$4 sm:$0xff]  }
 0x9a5   :  { %2064 = vmatmul.mubr.bf16.vlgmr.msra.gmra.mrb[36].mxu1 %v1816_v21  ;;  %2107 = vmatmul.mubr.bf16.vlgmr.msra.gmra.mrb[40].mxu0 %v1816_v21 }
 0x9a6   :  { %2404 = vmatpush1.bf16.msra.mxu1 %v5268_v34  ;;  %2445 = vmatpush1.bf16.msra.mxu0 %v5270_v36 }
 0x9a7   :  { %2405 = vmatprep.subr.bf16.mxu1 %v5273_v37  ;;  %2446 = vmatprep.subr.bf16.mxu0 %v5275_v38 }
 0x9a8   :  { %2435 = vmatprep.mubr.bf16.mxu1 %v4613_v23  ;;  %2476 = vmatprep.mubr.bf16.mxu0 %v4613_v23 }
 0x9aa   :  { %2406 = vmatpush1.bf16.msra.mxu1 %v5279_v39  ;;  %2447 = vmatpush1.bf16.msra.mxu0 %v5281_v40 }
 0x9ab   :  { %2407 = vmatprep.subr.bf16.mxu1 %v5285_v16  ;;  %2448 = vmatprep.subr.bf16.mxu0 %v5287_v35 }
 0x9ae   :  { %2408 = vmatpush1.bf16.msra.mxu1 %v5293_v41  ;;  %2449 = vmatpush1.bf16.msra.mxu0 %v5295_v42 }
 0x9af   :  { %2409 = vmatprep.subr.bf16.mxu1 %v5299_v43  ;;  %2450 = vmatprep.subr.bf16.mxu0 %v5301_v44 }
 0x9b2   :  { %2410 = vmatpush1.bf16.msra.mxu1 %v5305_v45  ;;  %2451 = vmatpush1.bf16.msra.mxu0 %v5307_v46 }
 0x9b3   :  { %2411 = vmatprep.subr.bf16.mxu1 %v5311_v47  ;;  %2452 = vmatprep.subr.bf16.mxu0 %v5313_v48 }
 0x9b6   :  { %2412 = vmatpush1.bf16.msra.mxu1 %v5317_v49  ;;  %2453 = vmatpush1.bf16.msra.mxu0 %v5319_v50 }
 0x9b7   :  { %2413 = vmatprep.subr.bf16.mxu1 %v5323_v51  ;;  %2454 = vmatprep.subr.bf16.mxu0 %v5325_v52 }
 0x9ba   :  { %2414 = vmatpush1.bf16.msra.mxu1 %v5329_v53  ;;  %2455 = vmatpush1.bf16.msra.mxu0 %v5331_v54 }
 0x9bb   :  { %2415 = vmatprep.subr.bf16.mxu1 %v5335_v57  ;;  %2456 = vmatprep.subr.bf16.mxu0 %v5337_v58 }
 0x9be   :  { %2416 = vmatpush1.bf16.msra.mxu1 %v5341_v59  ;;  %2457 = vmatpush1.bf16.msra.mxu0 %v5343_v60 }
 0x9bf   :  { %2417 = vmatprep.subr.bf16.mxu1 %v5347_v61  ;;  %2458 = vmatprep.subr.bf16.mxu0 %v5349_v62 }
 0x9c2   :  { %2418 = vmatpush1.bf16.msra.mxu1 %v5353_v63  ;;  %2459 = vmatpush1.bf16.msra.mxu0 %v5355_v29 }
 0x9c3   :  { %2535 = vmatprep.subr.bf16.mxu1 %v5253_v55  ;;  %2576 = vmatprep.subr.bf16.mxu0 %v5255_v56 }
 0x9c5   :  { %2436 = vmatmul.mubr.bf16.vlgmr.msra.gmra.mrb[40].mxu1 %v2242_v19  ;;  %2477 = vmatmul.mubr.bf16.vlgmr.msra.gmra.mrb[44].mxu0 %v2242_v19 }
 0x9c6   :  { %2536 = vmatpush1.bf16.msra.mxu1 %v5268_v34  ;;  %2577 = vmatpush1.bf16.msra.mxu0 %v5270_v36 }
 0x9c7   :  { %2537 = vmatprep.subr.bf16.mxu1 %v5273_v37  ;;  %2578 = vmatprep.subr.bf16.mxu0 %v5275_v38 }
 0x9c8   :  { %2567 = vmatprep.mubr.bf16.mxu1 %v4613_v23  ;;  %2608 = vmatprep.mubr.bf16.mxu0 %v4613_v23 }
 0x9ca   :  { %2538 = vmatpush1.bf16.msra.mxu1 %v5279_v39  ;;  %2579 = vmatpush1.bf16.msra.mxu0 %v5281_v40 }
 0x9cb   :  { %2539 = vmatprep.subr.bf16.mxu1 %v5285_v16  ;;  %2580 = vmatprep.subr.bf16.mxu0 %v5287_v35 }
 0x9ce   :  { %2540 = vmatpush1.bf16.msra.mxu1 %v5293_v41  ;;  %2581 = vmatpush1.bf16.msra.mxu0 %v5295_v42 }
 0x9cf   :  { %2541 = vmatprep.subr.bf16.mxu1 %v5299_v43  ;;  %2582 = vmatprep.subr.bf16.mxu0 %v5301_v44 }
 0x9d2   :  { %2542 = vmatpush1.bf16.msra.mxu1 %v5305_v45  ;;  %2583 = vmatpush1.bf16.msra.mxu0 %v5307_v46 }
 0x9d3   :  { %2543 = vmatprep.subr.bf16.mxu1 %v5311_v47  ;;  %2584 = vmatprep.subr.bf16.mxu0 %v5313_v48 }
 0x9d6   :  { %2544 = vmatpush1.bf16.msra.mxu1 %v5317_v49  ;;  %2585 = vmatpush1.bf16.msra.mxu0 %v5319_v50 }
 0x9d7   :  { %2545 = vmatprep.subr.bf16.mxu1 %v5323_v51  ;;  %2586 = vmatprep.subr.bf16.mxu0 %v5325_v52 }
 0x9da   :  { %2546 = vmatpush1.bf16.msra.mxu1 %v5329_v53  ;;  %2587 = vmatpush1.bf16.msra.mxu0 %v5331_v54 }
 0x9db   :  { %2547 = vmatprep.subr.bf16.mxu1 %v5335_v57  ;;  %2588 = vmatprep.subr.bf16.mxu0 %v5337_v58 }
 0x9de   :  { %2548 = vmatpush1.bf16.msra.mxu1 %v5341_v59  ;;  %2589 = vmatpush1.bf16.msra.mxu0 %v5343_v60 }
 0x9df   :  { %2549 = vmatprep.subr.bf16.mxu1 %v5347_v61  ;;  %2590 = vmatprep.subr.bf16.mxu0 %v5349_v62 }
 0x9e2   :  { %2550 = vmatpush1.bf16.msra.mxu1 %v5353_v63  ;;  %2591 = vmatpush1.bf16.msra.mxu0 %v5355_v29 }
 0x9e3   :  { %2667 = vmatprep.subr.bf16.mxu1 %v5253_v55  ;;  %2708 = vmatprep.subr.bf16.mxu0 %v5255_v56 }
 0xa78   :  { %v2065_v9 = vpop.f32.mrb[36].mxu1  ;;  %v2108_v26 = vpop.f32.mrb[40].mxu0 }
 0xa79   :  { %v2066_v27 = vadd.f32 %v2065_v9, %v1854_v6  ;;  %v2109_v31 = vadd.f32 %v2108_v26, %v1862_v22  ;;  %v2067_v15 = vpop.f32.mrb[37].mxu1  ;;  %v2110_v32 = vpop.f32.mrb[41].mxu0 }
 0xa7a   :  { %v2068_v10 = vadd.f32 %v2067_v15, %v1858_v5  ;;  %v2111_v0 = vadd.f32 %v2110_v32, %v1866_v4  ;;  %v2069_v8 = vpop.f32.mrb[38].mxu1  ;;  %v2112_v28 = vpop.f32.mrb[42].mxu0 }
 0xa7b   :  { %v2070_v30 = vadd.f32 %v2069_v8, %v1854_v6  ;;  %v2113_v12 = vadd.f32 %v2112_v28, %v1862_v22  ;;  %v2071_v24 = vpop.f32.mrb[39].mxu1  ;;  %v2114_v18 = vpop.f32.mrb[43].mxu0 }
 0xa7c   :  { %v2125_v20 = vcombine.low %v2066_v27, %v2068_v10  ;;  %v2126_v1 = vcombine.high %v2066_v27, %v2068_v10  ;;  %v2127_v33 = vcombine.low %v2109_v31, %v2111_v0  ;;  %v2128_v21 = vcombine.high %v2109_v31, %v2111_v0 }
 0xa7d   :  { %v2072_v3 = vadd.f32 %v2071_v24, %v1858_v5  ;;  %v2115_v13 = vadd.f32 %v2114_v18, %v1866_v4 }
 0xa7e   :  { %v5412_v19 = vrot.slane %v2125_v20, %v4938_v25  ;;  %v5415_v17 = vrot.slane %v2126_v1, %v4938_v25  ;;  %v5418_v2 = vrot.slane %v2127_v33, %v4938_v25  ;;  %v5421_v6 = vrot.slane %v2128_v21, %v4938_v25 }
 0xa7f   :  { %v2161_v14 = vcombine.low %v2070_v30, %v2072_v3  ;;  %v2162_v22 = vcombine.high %v2070_v30, %v2072_v3  ;;  %v2163_v7 = vcombine.low %v2113_v12, %v2115_v13  ;;  %v2164_v11 = vcombine.high %v2113_v12, %v2115_v13 }
 0xa80   :  { %v2157_v5 = vcombine.low %v5412_v19, %v5418_v2  ;;  %v2158_v4 = vcombine.high %v5412_v19, %v5418_v2 }
 0xa81   :  { %v5432_v27 = vrot.slane %v2161_v14, %v4938_v25  ;;  %v5435_v31 = vrot.slane %v2162_v22, %v4938_v25  ;;  %v5438_v15 = vrot.slane %v2163_v7, %v4938_v25  ;;  %v5441_v32 = vrot.slane %v2164_v11, %v4938_v25 }
 0xa98   :  { %v2437_v30 = vpop.f32.mrb[40].mxu1  ;;  %v2478_v12 = vpop.f32.mrb[44].mxu0 }
 0xa99   :  { %v2439_v24 = vpop.f32.mrb[41].mxu1  ;;  %v2480_v18 = vpop.f32.mrb[45].mxu0 }
 0xa9a   :  { %v2489_v20 = vcombine.low %v2437_v30, %v2439_v24  ;;  %v2490_v1 = vcombine.low %v2478_v12, %v2480_v18  ;;  %v2441_v33 = vpop.f32.mrb[42].mxu1  ;;  %v2482_v21 = vpop.f32.mrb[46].mxu0  ;;  %v3887_v24 = vld [vmem:[%s5827_s2 + $0x2] sm:$0x3] }
 0xa9b   :  { %v2442_v3 = vpop.f32.mrb[43].mxu1  ;;  %v2483_v13 = vpop.f32.mrb[47].mxu0 }
 0xa9c   :  { %v2497_v14 = vrot.slane %v2489_v20, %v4938_v25  ;;  %v2504_v22 = vrot.slane %v2490_v1, %v4938_v25 }
 0xa9e   :  { %v2505_v7 = vcombine.low %v2497_v14, %v2504_v22 }
 0xaa0   :  { %v2507_v11 = vadd.f32 %v2505_v7, %v2157_v5 }
 0xaa2   :  { %v3920_v8 = vmul.f32 -1.442695, %v2507_v11  ;;  %v2518_v0 = vrot.slane %v2507_v11, 6  ;;  %v2515_v9 = vrot.slane %v2507_v11, 4 }
 0xaa4   :  { %4307 = vpow2.f32 %v3920_v8  ;;  %v3921_v28 = vmul.f32 -1.442695, %v2518_v0 }
 0xaa6   :  { %4309 = vpow2.f32 %v3921_v28 }
 0xaae   :  { %v4308_v10 = vpop.eup %4307 }
 0xaaf   :  { %v2511_v26 = vadd.f32 1.0, %v4308_v10 }
 0xab0   :  { %v4310_v30 = vpop.eup %4309 }
 0xab1   :  { %4311 = vrcp.f32 %v2511_v26  ;;  %v2523_v1 = vadd.f32 1.0, %v4310_v30 }
 0xab2   :  { %4313 = vtanh.f32 %v2515_v9 }
 0xab3   :  { %4315 = vrcp.f32 %v2523_v1 }
 0xabb   :  { %v4312_v12 = vpop.eup %4311 }
 0xabc   :  { %v2527_v18 = vrot.slane %v4312_v12, 2  ;;  %v4314_v20 = vpop.eup %4313 }
 0xabd   :  { %v2530_v5 = vmul.f32 %v4314_v20, %v4312_v12  ;;  %v4316_v10 = vpop.eup %4315 }
 0xabe   :  { %v2529_v33 = vmul.f32 %v3887_v24, %v2527_v18 }
 0xac0   :  { %v5456_v8 = vadd.f32 %v2530_v5, %v2529_v33 }
 0xac2   :  { %4317 = vtanh.f32 %v5456_v8 }
 0xacc   :  { %v4318_v0 = vpop.eup %4317 }
 0xacd   :  { %v5459_v26 = vmul.f32 %v4318_v0, %v4316_v10 }
 0xacf   :  { %v2534_v9 = vpack.c.bf16 %v5459_v26, %v5459_v26 }
 0xad1   :  { %2568 = vmatmul.mubr.bf16.vlgmr.msra.gmra.mrb[44].mxu1 %v2534_v9  ;;  %2609 = vmatmul.mubr.bf16.vlgmr.msra.gmra.mrb[48].mxu0 %v2534_v9 }
 0xad2   :  { %2668 = vmatpush1.bf16.msra.mxu1 %v5268_v34  ;;  %2709 = vmatpush1.bf16.msra.mxu0 %v5270_v36 }
 0xad3   :  { %2669 = vmatprep.subr.bf16.mxu1 %v5273_v37  ;;  %2710 = vmatprep.subr.bf16.mxu0 %v5275_v38 }
 0xad4   :  { %2699 = vmatprep.mubr.bf16.mxu1 %v4613_v23  ;;  %2740 = vmatprep.mubr.bf16.mxu0 %v4613_v23 }
 0xad6   :  { %2670 = vmatpush1.bf16.msra.mxu1 %v5279_v39  ;;  %2711 = vmatpush1.bf16.msra.mxu0 %v5281_v40 }
 0xad7   :  { %2671 = vmatprep.subr.bf16.mxu1 %v5285_v16  ;;  %2712 = vmatprep.subr.bf16.mxu0 %v5287_v35 }
 0xada   :  { %2672 = vmatpush1.bf16.msra.mxu1 %v5293_v41  ;;  %2713 = vmatpush1.bf16.msra.mxu0 %v5295_v42 }
 0xadb   :  { %2673 = vmatprep.subr.bf16.mxu1 %v5299_v43  ;;  %2714 = vmatprep.subr.bf16.mxu0 %v5301_v44 }
 0xade   :  { %2674 = vmatpush1.bf16.msra.mxu1 %v5305_v45  ;;  %2715 = vmatpush1.bf16.msra.mxu0 %v5307_v46 }
 0xadf   :  { %2675 = vmatprep.subr.bf16.mxu1 %v5311_v47  ;;  %2716 = vmatprep.subr.bf16.mxu0 %v5313_v48 }
 0xae2   :  { %2676 = vmatpush1.bf16.msra.mxu1 %v5317_v49  ;;  %2717 = vmatpush1.bf16.msra.mxu0 %v5319_v50 }
 0xae3   :  { %2677 = vmatprep.subr.bf16.mxu1 %v5323_v51  ;;  %2718 = vmatprep.subr.bf16.mxu0 %v5325_v52 }
 0xae6   :  { %2678 = vmatpush1.bf16.msra.mxu1 %v5329_v53  ;;  %2719 = vmatpush1.bf16.msra.mxu0 %v5331_v54 }
 0xae7   :  { %2679 = vmatprep.subr.bf16.mxu1 %v5335_v57  ;;  %2720 = vmatprep.subr.bf16.mxu0 %v5337_v58 }
 0xaea   :  { %2680 = vmatpush1.bf16.msra.mxu1 %v5341_v59  ;;  %2721 = vmatpush1.bf16.msra.mxu0 %v5343_v60 }
 0xaeb   :  { %2681 = vmatprep.subr.bf16.mxu1 %v5347_v61  ;;  %2722 = vmatprep.subr.bf16.mxu0 %v5349_v62 }
 0xaee   :  { %2682 = vmatpush1.bf16.msra.mxu1 %v5353_v63  ;;  %2723 = vmatpush1.bf16.msra.mxu0 %v5355_v29 }
 0xaef   :  { %2799 = vmatprep.subr.bf16.mxu1 %v5253_v55  ;;  %2840 = vmatprep.subr.bf16.mxu0 %v5255_v56 }
 0xba4   :  { %v2569_v28 = vpop.f32.mrb[44].mxu1  ;;  %v2610_v21 = vpop.f32.mrb[48].mxu0 }
 0xba5   :  { %v2571_v3 = vpop.f32.mrb[45].mxu1  ;;  %v2612_v13 = vpop.f32.mrb[49].mxu0 }
 0xba6   :  { %v2621_v14 = vcombine.low %v2569_v28, %v2571_v3  ;;  %v2622_v22 = vcombine.low %v2610_v21, %v2612_v13  ;;  %v2573_v7 = vpop.f32.mrb[46].mxu1  ;;  %v2614_v11 = vpop.f32.mrb[50].mxu0 }
 0xba7   :  { %v2574_v30 = vpop.f32.mrb[47].mxu1  ;;  %v2615_v12 = vpop.f32.mrb[51].mxu0 }
 0xba8   :  { %v2629_v24 = vrot.slane %v2621_v14, %v4938_v25  ;;  %v2636_v18 = vrot.slane %v2622_v22, %v4938_v25 }
 0xbaa   :  { %v2637_v20 = vcombine.low %v2629_v24, %v2636_v18 }
 0xbac   :  { %v2639_v1 = vadd.f32 %v2637_v20, %v2158_v4 }
 0xbae   :  { %v3922_v5 = vmul.f32 -1.442695, %v2639_v1  ;;  %v2650_v33 = vrot.slane %v2639_v1, 6  ;;  %v2647_v28 = vrot.slane %v2639_v1, 4 }
 0xbb0   :  { %4319 = vpow2.f32 %v3922_v5  ;;  %v3923_v10 = vmul.f32 -1.442695, %v2650_v33 }
 0xbb2   :  { %4321 = vpow2.f32 %v3923_v10 }
 0xbba   :  { %v4320_v0 = vpop.eup %4319 }
 0xbbb   :  { %v2643_v9 = vadd.f32 1.0, %v4320_v0 }
 0xbbc   :  { %v4322_v21 = vpop.eup %4321 }
 0xbbd   :  { %4323 = vrcp.f32 %v2643_v9  ;;  %v2655_v22 = vadd.f32 1.0, %v4322_v21 }
 0xbbe   :  { %4325 = vtanh.f32 %v2647_v28 }
 0xbbf   :  { %4327 = vrcp.f32 %v2655_v22 }
 0xbc7   :  { %v4324_v3 = vpop.eup %4323 }
 0xbc8   :  { %v2659_v13 = vrot.slane %v4324_v3, 2  ;;  %v4326_v14 = vpop.eup %4325 }
 0xbc9   :  { %v2662_v7 = vmul.f32 %v4326_v14, %v4324_v3  ;;  %v4328_v2 = vpop.eup %4327 }
 0xbca   :  { %v2661_v11 = vmul.f32 %v2659_v13, %v5456_v8  ;;  %v5860_v13 = vcombine.low %v5415_v17, %v5421_v6 }
 0xbcc   :  { %v5503_v19 = vadd.f32 %v2662_v7, %v2661_v11 }
 0xbce   :  { %4329 = vtanh.f32 %v5503_v19 }
 0xbd8   :  { %v4330_v4 = vpop.eup %4329 }
 0xbd9   :  { %v5506_v30 = vmul.f32 %v4330_v4, %v4328_v2 }
 0xbdb   :  { %v2666_v12 = vpack.c.bf16 %v5506_v30, %v5506_v30 }
 0xbdd   :  { %2700 = vmatmul.mubr.bf16.vlgmr.msra.gmra.mrb[48].mxu1 %v2666_v12  ;;  %2741 = vmatmul.mubr.bf16.vlgmr.msra.gmra.mrb[52].mxu0 %v2666_v12 }
 0xbde   :  { %2800 = vmatpush1.bf16.msra.mxu1 %v5268_v34  ;;  %2841 = vmatpush1.bf16.msra.mxu0 %v5270_v36 }
 0xbdf   :  { %2801 = vmatprep.subr.bf16.mxu1 %v5273_v37  ;;  %2842 = vmatprep.subr.bf16.mxu0 %v5275_v38 }
 0xbe0   :  { %2831 = vmatprep.mubr.bf16.mxu1 %v4613_v23  ;;  %2872 = vmatprep.mubr.bf16.mxu0 %v4613_v23 }
 0xbe2   :  { %2802 = vmatpush1.bf16.msra.mxu1 %v5279_v39  ;;  %2843 = vmatpush1.bf16.msra.mxu0 %v5281_v40 }
 0xbe3   :  { %2803 = vmatprep.subr.bf16.mxu1 %v5285_v16  ;;  %2844 = vmatprep.subr.bf16.mxu0 %v5287_v35 }
 0xbe6   :  { %2804 = vmatpush1.bf16.msra.mxu1 %v5293_v41  ;;  %2845 = vmatpush1.bf16.msra.mxu0 %v5295_v42 }
 0xbe7   :  { %2805 = vmatprep.subr.bf16.mxu1 %v5299_v43  ;;  %2846 = vmatprep.subr.bf16.mxu0 %v5301_v44 }
 0xbea   :  { %2806 = vmatpush1.bf16.msra.mxu1 %v5305_v45  ;;  %2847 = vmatpush1.bf16.msra.mxu0 %v5307_v46 }
 0xbeb   :  { %2807 = vmatprep.subr.bf16.mxu1 %v5311_v47  ;;  %2848 = vmatprep.subr.bf16.mxu0 %v5313_v48 }
 0xbee   :  { %2808 = vmatpush1.bf16.msra.mxu1 %v5317_v49  ;;  %2849 = vmatpush1.bf16.msra.mxu0 %v5319_v50 }
 0xbef   :  { %2809 = vmatprep.subr.bf16.mxu1 %v5323_v51  ;;  %2850 = vmatprep.subr.bf16.mxu0 %v5325_v52 }
 0xbf2   :  { %2810 = vmatpush1.bf16.msra.mxu1 %v5329_v53  ;;  %2851 = vmatpush1.bf16.msra.mxu0 %v5331_v54 }
 0xbf3   :  { %2811 = vmatprep.subr.bf16.mxu1 %v5335_v57  ;;  %2852 = vmatprep.subr.bf16.mxu0 %v5337_v58 }
 0xbf6   :  { %2812 = vmatpush1.bf16.msra.mxu1 %v5341_v59  ;;  %2853 = vmatpush1.bf16.msra.mxu0 %v5343_v60 }
 0xbf7   :  { %2813 = vmatprep.subr.bf16.mxu1 %v5347_v61  ;;  %2854 = vmatprep.subr.bf16.mxu0 %v5349_v62 }
 0xbfa   :  { %2814 = vmatpush1.bf16.msra.mxu1 %v5353_v63  ;;  %2855 = vmatpush1.bf16.msra.mxu0 %v5355_v29 }
 0xbfb   :  { %2931 = vmatprep.subr.bf16.mxu1 %v5253_v55  ;;  %2972 = vmatprep.subr.bf16.mxu0 %v5255_v56 }
 0xcb0   :  { %v2701_v8 = vpop.f32.mrb[48].mxu1  ;;  %v2742_v24 = vpop.f32.mrb[52].mxu0 }
 0xcb1   :  { %v2703_v18 = vpop.f32.mrb[49].mxu1  ;;  %v2744_v20 = vpop.f32.mrb[53].mxu0 }
 0xcb2   :  { %v2753_v1 = vcombine.low %v2701_v8, %v2703_v18  ;;  %v2754_v5 = vcombine.low %v2742_v24, %v2744_v20  ;;  %v2705_v33 = vpop.f32.mrb[50].mxu1  ;;  %v2746_v10 = vpop.f32.mrb[54].mxu0 }
 0xcb3   :  { %v2706_v0 = vpop.f32.mrb[51].mxu1  ;;  %v2747_v9 = vpop.f32.mrb[55].mxu0 }
 0xcb4   :  { %v2761_v28 = vrot.slane %v2753_v1, %v4938_v25  ;;  %v2768_v21 = vrot.slane %v2754_v5, %v4938_v25  ;;  %v3459_v0 = vcombine.low %v5506_v30, %v5506_v30 }
 0xcb6   :  { %v2769_v3 = vcombine.low %v2761_v28, %v2768_v21 }
 0xcb8   :  { %v2771_v14 = vadd.f32 %v2769_v3, %v5860_v13  ;;  %v3466_v3 = vrot.slane %v3459_v0, %v4938_v25  ;;  %v5861_v0 = vcombine.high %v5415_v17, %v5421_v6 }
 0xcba   :  { %v3924_v22 = vmul.f32 -1.442695, %v2771_v14  ;;  %v2782_v7 = vrot.slane %v2771_v14, 6  ;;  %v2779_v12 = vrot.slane %v2771_v14, 4 }
 0xcbc   :  { %4331 = vpow2.f32 %v3924_v22  ;;  %v3925_v11 = vmul.f32 -1.442695, %v2782_v7 }
 0xcbe   :  { %4333 = vpow2.f32 %v3925_v11 }
 0xcc6   :  { %v4332_v2 = vpop.eup %4331 }
 0xcc7   :  { %v2775_v4 = vadd.f32 1.0, %v4332_v2 }
 0xcc8   :  { %v4334_v8 = vpop.eup %4333 }
 0xcc9   :  { %4335 = vrcp.f32 %v2775_v4  ;;  %v2787_v1 = vadd.f32 1.0, %v4334_v8 }
 0xcca   :  { %4337 = vtanh.f32 %v2779_v12 }
 0xccb   :  { %4339 = vrcp.f32 %v2787_v1 }
 0xcd3   :  { %v4336_v24 = vpop.eup %4335 }
 0xcd4   :  { %v2791_v18 = vrot.slane %v4336_v24, 2  ;;  %v4338_v20 = vpop.eup %4337 }
 0xcd5   :  { %v2794_v5 = vmul.f32 %v4338_v20, %v4336_v24  ;;  %v4340_v9 = vpop.eup %4339 }
 0xcd6   :  { %v2793_v33 = vmul.f32 %v2791_v18, %v5503_v19  ;;  %v3520_v19 = vsel %vm1806_vm7, %v5459_v26, %v3466_v3 }
 0xcd8   :  { %v5550_v10 = vadd.f32 %v2794_v5, %v2793_v33 }
 0xcda   :  { %4341 = vtanh.f32 %v5550_v10 }
 0xce4   :  { %v4342_v28 = vpop.eup %4341 }
 0xce5   :  { %v2797_v21 = vmul.f32 %v4342_v28, %v4340_v9 }
 0xce7   :  { %v2798_v13 = vpack.c.bf16 %v2797_v21, %v2797_v21  ;;  %v3475_v14 = vrot.slane %v2797_v21, %v4938_v25 }
 0xce9   :  { %2832 = vmatmul.mubr.bf16.vlgmr.msra.gmra.mrb[52].mxu1 %v2798_v13  ;;  %v3476_v22 = vcombine.low %v3475_v14, %v3475_v14  ;;  %2873 = vmatmul.mubr.bf16.vlgmr.msra.gmra.mrb[56].mxu0 %v2798_v13 }
 0xcea   :  { %2932 = vmatpush1.bf16.msra.mxu1 %v5268_v34  ;;  %2973 = vmatpush1.bf16.msra.mxu0 %v5270_v36 }
 0xceb   :  { %2933 = vmatprep.subr.bf16.mxu1 %v5273_v37  ;;  %2974 = vmatprep.subr.bf16.mxu0 %v5275_v38  ;;  %v5564_v30 = vsel %vm112_vm0, %v3520_v19, %v3476_v22 }
 0xcec   :  { %2963 = vmatprep.mubr.bf16.mxu1 %v4613_v23  ;;  %3004 = vmatprep.mubr.bf16.mxu0 %v4613_v23 }
 0xcee   :  { %2934 = vmatpush1.bf16.msra.mxu1 %v5279_v39  ;;  %2975 = vmatpush1.bf16.msra.mxu0 %v5281_v40 }
 0xcef   :  { %2935 = vmatprep.subr.bf16.mxu1 %v5285_v16  ;;  %2976 = vmatprep.subr.bf16.mxu0 %v5287_v35 }
 0xcf2   :  { %2936 = vmatpush1.bf16.msra.mxu1 %v5293_v41  ;;  %2977 = vmatpush1.bf16.msra.mxu0 %v5295_v42 }
 0xcf3   :  { %2937 = vmatprep.subr.bf16.mxu1 %v5299_v43  ;;  %2978 = vmatprep.subr.bf16.mxu0 %v5301_v44 }
 0xcf6   :  { %2938 = vmatpush1.bf16.msra.mxu1 %v5305_v45  ;;  %2979 = vmatpush1.bf16.msra.mxu0 %v5307_v46 }
 0xcf7   :  { %2939 = vmatprep.subr.bf16.mxu1 %v5311_v47  ;;  %2980 = vmatprep.subr.bf16.mxu0 %v5313_v48 }
 0xcfa   :  { %2940 = vmatpush1.bf16.msra.mxu1 %v5317_v49  ;;  %2981 = vmatpush1.bf16.msra.mxu0 %v5319_v50 }
 0xcfb   :  { %2941 = vmatprep.subr.bf16.mxu1 %v5323_v51  ;;  %2982 = vmatprep.subr.bf16.mxu0 %v5325_v52 }
 0xcfe   :  { %2942 = vmatpush1.bf16.msra.mxu1 %v5329_v53  ;;  %2983 = vmatpush1.bf16.msra.mxu0 %v5331_v54 }
 0xcff   :  { %2943 = vmatprep.subr.bf16.mxu1 %v5335_v57  ;;  %2984 = vmatprep.subr.bf16.mxu0 %v5337_v58 }
 0xd02   :  { %2944 = vmatpush1.bf16.msra.mxu1 %v5341_v59  ;;  %2985 = vmatpush1.bf16.msra.mxu0 %v5343_v60 }
 0xd03   :  { %2945 = vmatprep.subr.bf16.mxu1 %v5347_v61  ;;  %2986 = vmatprep.subr.bf16.mxu0 %v5349_v62 }
 0xd06   :  { %2946 = vmatpush1.bf16.msra.mxu1 %v5353_v63  ;;  %2987 = vmatpush1.bf16.msra.mxu0 %v5355_v29 }
 0xd07   :  { %3063 = vmatprep.subr.bf16.mxu1 %v5253_v55  ;;  %3104 = vmatprep.subr.bf16.mxu0 %v5255_v56 }
 0xdbc   :  { %v2833_v26 = vpop.f32.mrb[52].mxu1  ;;  %v2874_v7 = vpop.f32.mrb[56].mxu0 }
 0xdbd   :  { %v2835_v11 = vpop.f32.mrb[53].mxu1  ;;  %v2876_v2 = vpop.f32.mrb[57].mxu0 }
 0xdbe   :  { %v2885_v4 = vcombine.low %v2833_v26, %v2835_v11  ;;  %v2886_v12 = vcombine.low %v2874_v7, %v2876_v2  ;;  %v2837_v8 = vpop.f32.mrb[54].mxu1  ;;  %v2878_v24 = vpop.f32.mrb[58].mxu0 }
 0xdbf   :  { %v2838_v18 = vpop.f32.mrb[55].mxu1  ;;  %v2879_v20 = vpop.f32.mrb[59].mxu0 }
 0xdc0   :  { %v2893_v1 = vrot.slane %v2885_v4, %v4938_v25  ;;  %v2900_v5 = vrot.slane %v2886_v12, %v4938_v25 }
 0xdc2   :  { %v2901_v33 = vcombine.low %v2893_v1, %v2900_v5 }
 0xdc4   :  { %v2903_v9 = vadd.f32 %v2901_v33, %v5861_v0 }
 0xdc6   :  { %v3926_v28 = vmul.f32 -1.442695, %v2903_v9  ;;  %v2914_v21 = vrot.slane %v2903_v9, 6  ;;  %v2911_v22 = vrot.slane %v2903_v9, 4 }
 0xdc8   :  { %4343 = vpow2.f32 %v3926_v28  ;;  %v3927_v3 = vmul.f32 -1.442695, %v2914_v21 }
 0xdca   :  { %4345 = vpow2.f32 %v3927_v3 }
 0xdd2   :  { %v4344_v13 = vpop.eup %4343 }
 0xdd3   :  { %v2907_v14 = vadd.f32 1.0, %v4344_v13 }
 0xdd4   :  { %v4346_v19 = vpop.eup %4345 }
 0xdd5   :  { %4347 = vrcp.f32 %v2907_v14  ;;  %v2919_v2 = vadd.f32 1.0, %v4346_v19 }
 0xdd6   :  { %4349 = vtanh.f32 %v2911_v22 }
 0xdd7   :  { %4351 = vrcp.f32 %v2919_v2 }
 0xddf   :  { %v4348_v26 = vpop.eup %4347 }
 0xde0   :  { %v2923_v7 = vrot.slane %v4348_v26, 2  ;;  %v4350_v11 = vpop.eup %4349 }
 0xde1   :  { %v2926_v4 = vmul.f32 %v4350_v11, %v4348_v26  ;;  %v4352_v6 = vpop.eup %4351 }
 0xde2   :  { %v2925_v12 = vmul.f32 %v2923_v7, %v5550_v10 }
 0xde4   :  { %v5602_v17 = vadd.f32 %v2926_v4, %v2925_v12 }
 0xde6   :  { %4353 = vtanh.f32 %v5602_v17 }
 0xdf0   :  { %v4354_v8 = vpop.eup %4353 }
 0xdf1   :  { %v2929_v24 = vmul.f32 %v4354_v8, %v4352_v6 }
 0xdf3   :  { %v2930_v18 = vpack.c.bf16 %v2929_v24, %v2929_v24  ;;  %v3479_v20 = vcombine.low %v2929_v24, %v2929_v24 }
 0xdf5   :  { %2964 = vmatmul.mubr.bf16.vlgmr.msra.gmra.mrb[56].mxu1 %v2930_v18  ;;  %3005 = vmatmul.mubr.bf16.vlgmr.msra.gmra.mrb[60].mxu0 %v2930_v18  ;;  %v3486_v1 = vrot.slane %v3479_v20, %v4938_v25 }
 0xdf6   :  { %3064 = vmatpush1.bf16.msra.mxu1 %v5268_v34  ;;  %3105 = vmatpush1.bf16.msra.mxu0 %v5270_v36 }
 0xdf7   :  { %3065 = vmatprep.subr.bf16.mxu1 %v5273_v37  ;;  %3106 = vmatprep.subr.bf16.mxu0 %v5275_v38  ;;  %v3487_v10 = vcombine.low %v3486_v1, %v3486_v1 }
 0xdf8   :  { %3095 = vmatprep.mubr.bf16.mxu1 %v4613_v23  ;;  %3136 = vmatprep.mubr.bf16.mxu0 %v4613_v23 }
 0xdf9   :  { %v5614_v5 = vsel %vm1809_vm8, %v5564_v30, %v3487_v10 }
 0xdfa   :  { %3066 = vmatpush1.bf16.msra.mxu1 %v5279_v39  ;;  %3107 = vmatpush1.bf16.msra.mxu0 %v5281_v40 }
 0xdfb   :  { %3067 = vmatprep.subr.bf16.mxu1 %v5285_v16  ;;  %3108 = vmatprep.subr.bf16.mxu0 %v5287_v35 }
 0xdfe   :  { %3068 = vmatpush1.bf16.msra.mxu1 %v5293_v41  ;;  %3109 = vmatpush1.bf16.msra.mxu0 %v5295_v42 }
 0xdff   :  { %3069 = vmatprep.subr.bf16.mxu1 %v5299_v43  ;;  %3110 = vmatprep.subr.bf16.mxu0 %v5301_v44 }
 0xe02   :  { %3070 = vmatpush1.bf16.msra.mxu1 %v5305_v45  ;;  %3111 = vmatpush1.bf16.msra.mxu0 %v5307_v46 }
 0xe03   :  { %3071 = vmatprep.subr.bf16.mxu1 %v5311_v47  ;;  %3112 = vmatprep.subr.bf16.mxu0 %v5313_v48 }
 0xe06   :  { %3072 = vmatpush1.bf16.msra.mxu1 %v5317_v49  ;;  %3113 = vmatpush1.bf16.msra.mxu0 %v5319_v50 }
 0xe07   :  { %3073 = vmatprep.subr.bf16.mxu1 %v5323_v51  ;;  %3114 = vmatprep.subr.bf16.mxu0 %v5325_v52 }
 0xe0a   :  { %3074 = vmatpush1.bf16.msra.mxu1 %v5329_v53  ;;  %3115 = vmatpush1.bf16.msra.mxu0 %v5331_v54 }
 0xe0b   :  { %3075 = vmatprep.subr.bf16.mxu1 %v5335_v57  ;;  %3116 = vmatprep.subr.bf16.mxu0 %v5337_v58 }
 0xe0e   :  { %3076 = vmatpush1.bf16.msra.mxu1 %v5341_v59  ;;  %3117 = vmatpush1.bf16.msra.mxu0 %v5343_v60 }
 0xe0f   :  { %3077 = vmatprep.subr.bf16.mxu1 %v5347_v61  ;;  %3118 = vmatprep.subr.bf16.mxu0 %v5349_v62 }
 0xe12   :  { %3078 = vmatpush1.bf16.msra.mxu1 %v5353_v63  ;;  %3119 = vmatpush1.bf16.msra.mxu0 %v5355_v29 }
 0xe13   :  { %3195 = vmatprep.subr.bf16.mxu1 %v5253_v55  ;;  %3236 = vmatprep.subr.bf16.mxu0 %v5255_v56  ;;  %v5862_v55 = vcombine.low %v5432_v27, %v5438_v15 }
 0xec8   :  { %v2965_v30 = vpop.f32.mrb[56].mxu1  ;;  %v3006_v33 = vpop.f32.mrb[60].mxu0 }
 0xec9   :  { %v2967_v0 = vpop.f32.mrb[57].mxu1  ;;  %v3008_v9 = vpop.f32.mrb[61].mxu0 }
 0xeca   :  { %v3017_v28 = vcombine.low %v2965_v30, %v2967_v0  ;;  %v3018_v21 = vcombine.low %v3006_v33, %v3008_v9  ;;  %v2969_v3 = vpop.f32.mrb[58].mxu1  ;;  %v3010_v13 = vpop.f32.mrb[62].mxu0 }
 0xecb   :  { %v2970_v14 = vpop.f32.mrb[59].mxu1  ;;  %v3011_v22 = vpop.f32.mrb[63].mxu0 }
 0xecc   :  { %v3025_v19 = vrot.slane %v3017_v28, %v4938_v25  ;;  %v3032_v26 = vrot.slane %v3018_v21, %v4938_v25  ;;  %v4437_v22 = vld [vmem:[#allocation7 + $0x100] ss:$16 sps:$4 sm:$0xff]  }
 0xece   :  { %v3033_v7 = vcombine.low %v3025_v19, %v3032_v26  ;;  %v4438_v19 = vld [vmem:[#allocation7 + $0x108] ss:$16 sps:$4 sm:$0xff]   ;;  %v4439_v26 = vld [vmem:[#allocation7 + $0x124] ss:$16 sps:$4 sm:$0xff]  }
 0xed0   :  { %v3035_v11 = vadd.f32 %v3033_v7, %v5862_v55  ;;  %v4440_v7 = vld [vmem:[#allocation7 + $0x12c] ss:$16 sps:$4 sm:$0xff]   ;;  %v4441_v55 = vld [vmem:[#allocation7 + $0x120] ss:$16 sps:$4 sm:$0xff]  }
 0xed2   :  { %v3928_v56 = vmul.f32 -1.442695, %v3035_v11  ;;  %v3046_v2 = vrot.slane %v3035_v11, 6  ;;  %v3043_v8 = vrot.slane %v3035_v11, 4  ;;  %v4442_v11 = vld [vmem:[#allocation7 + $0x128] ss:$16 sps:$4 sm:$0xff]  }
 0xed4   :  { %4355 = vpow2.f32 %v3928_v56  ;;  %v3929_v4 = vmul.f32 -1.442695, %v3046_v2  ;;  %v4443_v56 = vld [vmem:[#allocation7 + $0x144] ss:$16 sps:$4 sm:$0xff]   ;;  %v4444_v2 = vld [vmem:[#allocation7 + $0x14c] ss:$16 sps:$4 sm:$0xff]  }
 0xed6   :  { %4357 = vpow2.f32 %v3929_v4  ;;  %v4445_v4 = vld [vmem:[#allocation7 + $0x140] ss:$16 sps:$4 sm:$0xff]  }
 0xede   :  { %v4356_v12 = vpop.eup %4355 }
 0xedf   :  { %v3039_v6 = vadd.f32 1.0, %v4356_v12  ;;  %v4446_v12 = vld [vmem:[#allocation7 + $0x148] ss:$16 sps:$4 sm:$0xff]  }
 0xee0   :  { %v4358_v24 = vpop.eup %4357 }
 0xee1   :  { %4359 = vrcp.f32 %v3039_v6  ;;  %v3051_v10 = vadd.f32 1.0, %v4358_v24  ;;  %v4447_v6 = vld [vmem:[#allocation7 + $0x164] ss:$16 sps:$4 sm:$0xff]   ;;  %v4449_v24 = vld [vmem:[#allocation7 + $0x160] ss:$16 sps:$4 sm:$0xff]  }
 0xee2   :  { %4361 = vtanh.f32 %v3043_v8  ;;  %v4448_v8 = vld [vmem:[#allocation7 + $0x16c] ss:$16 sps:$4 sm:$0xff]  }
 0xee3   :  { %4363 = vrcp.f32 %v3051_v10  ;;  %v4454_v10 = vld [vmem:[#allocation7 + $0x188] ss:$16 sps:$4 sm:$0xff]  }
 0xeeb   :  { %v4360_v18 = vpop.eup %4359 }
 0xeec   :  { %v3055_v20 = vrot.slane %v4360_v18, 2  ;;  %v4362_v1 = vpop.eup %4361 }
 0xeed   :  { %v3058_v30 = vmul.f32 %v4362_v1, %v4360_v18  ;;  %v4364_v9 = vpop.eup %4363  ;;  %v4450_v18 = vld [vmem:[#allocation7 + $0x168] ss:$16 sps:$4 sm:$0xff]   ;;  %v4453_v1 = vld [vmem:[#allocation7 + $0x180] ss:$16 sps:$4 sm:$0xff]  }
 0xeee   :  { %v3057_v33 = vmul.f32 %v3055_v20, %v5602_v17  ;;  %v4452_v20 = vld [vmem:[#allocation7 + $0x18c] ss:$16 sps:$4 sm:$0xff]  }
 0xef0   :  { %v5650_v0 = vadd.f32 %v3058_v30, %v3057_v33  ;;  %v4455_v30 = vld [vmem:[#allocation7 + $0x1a4] ss:$16 sps:$4 sm:$0xff]   ;;  %v4456_v33 = vld [vmem:[#allocation7 + $0x1ac] ss:$16 sps:$4 sm:$0xff]  }
 0xef2   :  { %4365 = vtanh.f32 %v5650_v0 }
 0xefc   :  { %v4366_v28 = vpop.eup %4365 }
 0xefd   :  { %v5653_v21 = vmul.f32 %v4366_v28, %v4364_v9  ;;  %v4458_v9 = vld [vmem:[#allocation7 + $0x1a8] ss:$16 sps:$4 sm:$0xff]   ;;  %v4459_v28 = vld [vmem:[#allocation7 + $0x1c4] ss:$16 sps:$4 sm:$0xff]  }
 0xeff   :  { %v3062_v3 = vpack.c.bf16 %v5653_v21, %v5653_v21 }
 0xf01   :  { %3096 = vmatmul.mubr.bf16.vlgmr.msra.gmra.mrb[60].mxu1 %v3062_v3  ;;  %3137 = vmatmul.mubr.bf16.vlgmr.msra.gmra.mrb[64].mxu0 %v3062_v3  ;;  %v4460_v3 = vld [vmem:[#allocation7 + $0x1cc] ss:$16 sps:$4 sm:$0xff]  }
 0xf02   :  { %3196 = vmatpush1.bf16.msra.mxu1 %v5268_v34  ;;  %3237 = vmatpush1.bf16.msra.mxu0 %v5270_v36  ;;  %v4435_v34 = vld [vmem:[#allocation7 + $0x104] ss:$16 sps:$4 sm:$0xff]   ;;  %v4436_v36 = vld [vmem:[#allocation7 + $0x10c] ss:$16 sps:$4 sm:$0xff]  }
 0xf03   :  { %3197 = vmatprep.subr.bf16.mxu1 %v5273_v37  ;;  %3238 = vmatprep.subr.bf16.mxu0 %v5275_v38 }
 0xf04   :  { %3227 = vmatprep.mubr.bf16.mxu1 %v4613_v23  ;;  %3268 = vmatprep.mubr.bf16.mxu0 %v4613_v23 }
 0xf06   :  { %3198 = vmatpush1.bf16.msra.mxu1 %v5279_v39  ;;  %3239 = vmatpush1.bf16.msra.mxu0 %v5281_v40 }
 0xf07   :  { %3199 = vmatprep.subr.bf16.mxu1 %v5285_v16  ;;  %3240 = vmatprep.subr.bf16.mxu0 %v5287_v35 }
 0xf0a   :  { %3200 = vmatpush1.bf16.msra.mxu1 %v5293_v41  ;;  %3241 = vmatpush1.bf16.msra.mxu0 %v5295_v42 }
 0xf0b   :  { %3201 = vmatprep.subr.bf16.mxu1 %v5299_v43  ;;  %3242 = vmatprep.subr.bf16.mxu0 %v5301_v44 }
 0xf0e   :  { %3202 = vmatpush1.bf16.msra.mxu1 %v5305_v45  ;;  %3243 = vmatpush1.bf16.msra.mxu0 %v5307_v46 }
 0xf0f   :  { %3203 = vmatprep.subr.bf16.mxu1 %v5311_v47  ;;  %3244 = vmatprep.subr.bf16.mxu0 %v5313_v48  ;;  %v5863_v48 = vcombine.high %v5432_v27, %v5438_v15 }
 0xf12   :  { %3204 = vmatpush1.bf16.msra.mxu1 %v5317_v49  ;;  %3245 = vmatpush1.bf16.msra.mxu0 %v5319_v50 }
 0xf13   :  { %3205 = vmatprep.subr.bf16.mxu1 %v5323_v51  ;;  %3246 = vmatprep.subr.bf16.mxu0 %v5325_v52 }
 0xf16   :  { %3206 = vmatpush1.bf16.msra.mxu1 %v5329_v53  ;;  %3247 = vmatpush1.bf16.msra.mxu0 %v5331_v54 }
 0xf17   :  { %3207 = vmatprep.subr.bf16.mxu1 %v5335_v57  ;;  %3248 = vmatprep.subr.bf16.mxu0 %v5337_v58 }
 0xf1a   :  { %3208 = vmatpush1.bf16.msra.mxu1 %v5341_v59  ;;  %3249 = vmatpush1.bf16.msra.mxu0 %v5343_v60 }
 0xf1b   :  { %3209 = vmatprep.subr.bf16.mxu1 %v5347_v61  ;;  %3250 = vmatprep.subr.bf16.mxu0 %v5349_v62 }
 0xf1e   :  { %3210 = vmatpush1.bf16.msra.mxu1 %v5353_v63  ;;  %3251 = vmatpush1.bf16.msra.mxu0 %v5355_v29 }
 0xf1f   :  { %3327 = vmatprep.subr.bf16.mxu1 %v4435_v34  ;;  %3368 = vmatprep.subr.bf16.mxu0 %v4436_v36  ;;  %v4461_v34 = vld [vmem:[#allocation7 + $0x1c0] ss:$16 sps:$4 sm:$0xff]   ;;  %v4462_v36 = vld [vmem:[#allocation7 + $0x1c8] ss:$16 sps:$4 sm:$0xff]  }
 0xfd4   :  { %v3097_v37 = vpop.f32.mrb[60].mxu1  ;;  %v3138_v38 = vpop.f32.mrb[64].mxu0 }
 0xfd5   :  { %v3099_v39 = vpop.f32.mrb[61].mxu1  ;;  %v3140_v40 = vpop.f32.mrb[65].mxu0 }
 0xfd6   :  { %v3149_v16 = vcombine.low %v3097_v37, %v3099_v39  ;;  %v3150_v35 = vcombine.low %v3138_v38, %v3140_v40  ;;  %v3101_v41 = vpop.f32.mrb[62].mxu1  ;;  %v3142_v42 = vpop.f32.mrb[66].mxu0  ;;  %v4463_v37 = vld [vmem:[#allocation7 + $0x1e4] ss:$16 sps:$4 sm:$0xff]   ;;  %v4464_v38 = vld [vmem:[#allocation7 + $0x1ec] ss:$16 sps:$4 sm:$0xff]  }
 0xfd7   :  { %v3102_v43 = vpop.f32.mrb[63].mxu1  ;;  %v3143_v44 = vpop.f32.mrb[67].mxu0  ;;  %v4465_v39 = vld [vmem:[#allocation7 + $0x1e0] ss:$16 sps:$4 sm:$0xff]   ;;  %v4466_v40 = vld [vmem:[#allocation7 + $0x1e8] ss:$16 sps:$4 sm:$0xff]  }
 0xfd8   :  { %v3157_v45 = vrot.slane %v3149_v16, %v4938_v25  ;;  %v3164_v46 = vrot.slane %v3150_v35, %v4938_v25 }
 0xfda   :  { %v3165_v47 = vcombine.low %v3157_v45, %v3164_v46 }
 0xfdc   :  { %v3167_v49 = vadd.f32 %v3165_v47, %v5863_v48 }
 0xfde   :  { %v3930_v50 = vmul.f32 -1.442695, %v3167_v49  ;;  %v3178_v51 = vrot.slane %v3167_v49, 6  ;;  %v3175_v57 = vrot.slane %v3167_v49, 4 }
 0xfe0   :  { %4367 = vpow2.f32 %v3930_v50  ;;  %v3931_v52 = vmul.f32 -1.442695, %v3178_v51 }
 0xfe2   :  { %4369 = vpow2.f32 %v3931_v52  ;;  %v5864_v52 = vcombine.low %v5435_v31, %v5441_v32 }
 0xfea   :  { %v4368_v53 = vpop.eup %4367 }
 0xfeb   :  { %v3171_v54 = vadd.f32 1.0, %v4368_v53 }
 0xfec   :  { %v4370_v58 = vpop.eup %4369 }
 0xfed   :  { %4371 = vrcp.f32 %v3171_v54  ;;  %v3183_v62 = vadd.f32 1.0, %v4370_v58 }
 0xfee   :  { %4373 = vtanh.f32 %v3175_v57 }
 0xfef   :  { %4375 = vrcp.f32 %v3183_v62 }
 0xff7   :  { %v4372_v59 = vpop.eup %4371 }
 0xff8   :  { %v3187_v60 = vrot.slane %v4372_v59, 2  ;;  %v4374_v61 = vpop.eup %4373 }
 0xff9   :  { %v3190_v63 = vmul.f32 %v4374_v61, %v4372_v59  ;;  %v4376_v15 = vpop.eup %4375 }
 0xffa   :  { %v3189_v29 = vmul.f32 %v3187_v60, %v5650_v0  ;;  %v4457_v0 = vld [vmem:[#allocation7 + $0x1a0] ss:$16 sps:$4 sm:$0xff]  }
 0xffc   :  { %v5695_v27 = vadd.f32 %v3190_v63, %v3189_v29 }
 0xffe   :  { %4377 = vtanh.f32 %v5695_v27 }
0x1008   :  { %v4378_v17 = vpop.eup %4377 }
0x1009   :  { %v5698_v13 = vmul.f32 %v4378_v17, %v4376_v15 }
0x100b   :  { %v3194_v14 = vpack.c.bf16 %v5698_v13, %v5698_v13 }
0x100d   :  { %3228 = vmatmul.mubr.bf16.vlgmr.msra.gmra.mrb[64].mxu1 %v3194_v14  ;;  %3269 = vmatmul.mubr.bf16.vlgmr.msra.gmra.mrb[68].mxu0 %v3194_v14 }
0x100e   :  { %3328 = vmatpush1.bf16.msra.mxu1 %v4437_v22  ;;  %3369 = vmatpush1.bf16.msra.mxu0 %v4438_v19 }
0x100f   :  { %3329 = vmatprep.subr.bf16.mxu1 %v4439_v26  ;;  %3370 = vmatprep.subr.bf16.mxu0 %v4440_v7  ;;  %v3490_v26 = vcombine.low %v5698_v13, %v5698_v13  ;;  %v4199_v13 = vld [vmem:[%s5835_s10] sm:$0xff]  }
0x1010   :  { %3359 = vmatprep.mubr.bf16.mxu1 %v4613_v23  ;;  %3400 = vmatprep.mubr.bf16.mxu0 %v4613_v23  ;;  %v4451_v23 = vld [vmem:[#allocation7 + $0x184] ss:$16 sps:$4 sm:$0xff]  }
0x1012   :  { %3330 = vmatpush1.bf16.msra.mxu1 %v4441_v55  ;;  %3371 = vmatpush1.bf16.msra.mxu0 %v4442_v11 }
0x1013   :  { %3331 = vmatprep.subr.bf16.mxu1 %v4443_v56  ;;  %3372 = vmatprep.subr.bf16.mxu0 %v4444_v2  ;;  %v3497_v56 = vrot.slane %v3490_v26, %v4938_v25 }
0x1016   :  { %3332 = vmatpush1.bf16.msra.mxu1 %v4445_v4  ;;  %3373 = vmatpush1.bf16.msra.mxu0 %v4446_v12 }
0x1017   :  { %3333 = vmatprep.subr.bf16.mxu1 %v4447_v6  ;;  %3374 = vmatprep.subr.bf16.mxu0 %v4448_v8  ;;  %v4615_v8 = vmov 0.0  }
0x101a   :  { %3334 = vmatpush1.bf16.msra.mxu1 %v4449_v24  ;;  %3375 = vmatpush1.bf16.msra.mxu0 %v4450_v18  ;;  %v4200_v24 = vld [vmem:[%s5835_s10 + $0x8] sm:$0xff]   ;;  %v4202_v18 = vld [vmem:[%s5835_s10 + $0x18] sm:$0xff]  }
0x101b   :  { %3335 = vmatprep.subr.bf16.mxu1 %v4451_v23  ;;  %3376 = vmatprep.subr.bf16.mxu0 %v4452_v20  ;;  %v4203_v23 = vld [vmem:[%s5835_s10 + $0x20] sm:$0xff]   ;;  %v4204_v20 = vld [vmem:[%s5835_s10 + $0x28] sm:$0xff]  }
0x101e   :  { %3336 = vmatpush1.bf16.msra.mxu1 %v4453_v1  ;;  %3377 = vmatpush1.bf16.msra.mxu0 %v4454_v10  ;;  %v4205_v1 = vld [vmem:[%s5835_s10 + $0x30] sm:$0xff]   ;;  %v4206_v10 = vld [vmem:[%s5835_s10 + $0x38] sm:$0xff]  }
0x101f   :  { %3337 = vmatprep.subr.bf16.mxu1 %v4455_v30  ;;  %3378 = vmatprep.subr.bf16.mxu0 %v4456_v33  ;;  %v4207_v30 = vld [vmem:[%s5837_s12] sm:$0xff]   ;;  %v4208_v33 = vld [vmem:[%s5837_s12 + $0x8] sm:$0xff]  }
0x1022   :  { %3338 = vmatpush1.bf16.msra.mxu1 %v4457_v0  ;;  %3379 = vmatpush1.bf16.msra.mxu0 %v4458_v9 }
0x1023   :  { %3339 = vmatprep.subr.bf16.mxu1 %v4459_v28  ;;  %3380 = vmatprep.subr.bf16.mxu0 %v4460_v3 }
0x1026   :  { %3340 = vmatpush1.bf16.msra.mxu1 %v4461_v34  ;;  %3381 = vmatpush1.bf16.msra.mxu0 %v4462_v36 }
0x1027   :  { %3341 = vmatprep.subr.bf16.mxu1 %v4463_v37  ;;  %3382 = vmatprep.subr.bf16.mxu0 %v4464_v38 }
0x102a   :  { %3342 = vmatpush1.bf16.msra.mxu1 %v4465_v39  ;;  %3383 = vmatpush1.bf16.msra.mxu0 %v4466_v40 }
0x102b   :  { %3976 = vmatprep.subr.bf16.mxu1 %v4615_v8  ;;  %3996 = vmatprep.subr.bf16.mxu0 %v4615_v8 }
0x10e0   :  { %v3229_v16 = vpop.f32.mrb[64].mxu1  ;;  %v3270_v35 = vpop.f32.mrb[68].mxu0 }
0x10e1   :  { %v3231_v41 = vpop.f32.mrb[65].mxu1  ;;  %v3272_v42 = vpop.f32.mrb[69].mxu0 }
0x10e2   :  { %v3281_v43 = vcombine.low %v3229_v16, %v3231_v41  ;;  %v3282_v44 = vcombine.low %v3270_v35, %v3272_v42  ;;  %v3233_v45 = vpop.f32.mrb[66].mxu1  ;;  %v3274_v46 = vpop.f32.mrb[70].mxu0  ;;  %v5865_v42 = vcombine.high %v5435_v31, %v5441_v32 }
0x10e3   :  { %v3234_v47 = vpop.f32.mrb[67].mxu1  ;;  %v3275_v48 = vpop.f32.mrb[71].mxu0 }
0x10e4   :  { %v3289_v49 = vrot.slane %v3281_v43, %v4938_v25  ;;  %v3296_v50 = vrot.slane %v3282_v44, %v4938_v25 }
0x10e6   :  { %v3297_v51 = vcombine.low %v3289_v49, %v3296_v50 }
0x10e8   :  { %v3299_v53 = vadd.f32 %v3297_v51, %v5864_v52 }
0x10ea   :  { %v3932_v54 = vmul.f32 -1.442695, %v3299_v53  ;;  %v3310_v57 = vrot.slane %v3299_v53, 6  ;;  %v3307_v61 = vrot.slane %v3299_v53, 4 }
0x10ec   :  { %4379 = vpow2.f32 %v3932_v54  ;;  %v3933_v58 = vmul.f32 -1.442695, %v3310_v57 }
0x10ee   :  { %4381 = vpow2.f32 %v3933_v58 }
0x10f6   :  { %v4380_v59 = vpop.eup %4379 }
0x10f7   :  { %v3303_v60 = vadd.f32 1.0, %v4380_v59 }
0x10f8   :  { %v4382_v62 = vpop.eup %4381 }
0x10f9   :  { %4383 = vrcp.f32 %v3303_v60  ;;  %v3315_v17 = vadd.f32 1.0, %v4382_v62 }
0x10fa   :  { %4385 = vtanh.f32 %v3307_v61 }
0x10fb   :  { %4387 = vrcp.f32 %v3315_v17  ;;  %v4209_v17 = vld [vmem:[%s5837_s12 + $0x10] sm:$0xff]  }
0x1103   :  { %v4384_v63 = vpop.eup %4383 }
0x1104   :  { %v3319_v29 = vrot.slane %v4384_v63, 2  ;;  %v4386_v15 = vpop.eup %4385 }
0x1105   :  { %v3322_v14 = vmul.f32 %v4386_v15, %v4384_v63  ;;  %v4388_v7 = vpop.eup %4387 }
0x1106   :  { %v3321_v22 = vmul.f32 %v3319_v29, %v5695_v27  ;;  %v3523_v27 = vsel %vm1806_vm7, %v5653_v21, %v3497_v56  ;;  %v4201_v21 = vld [vmem:[%s5835_s10 + $0x10] sm:$0xff]  }
0x1108   :  { %v5710_v19 = vadd.f32 %v3322_v14, %v3321_v22  ;;  %v4210_v14 = vld [vmem:[%s5837_s12 + $0x18] sm:$0xff]   ;;  %s4617_s12 = smov [#allocation9]  }
0x1109   :  { %s3752_s0 = sshll.u32 %s4617_s12, 4  ;;  %s3753_s0 = int_to_ptr.vmem [resolvable:$true] %s3752_s0 }
0x110a   :  { %4389 = vtanh.f32 %v5710_v19  ;;  %s4533_s7 = scalar_lea.vmem %s3753_s0, 64  ;;  %p4538_p11 = scmp.lt.s32.totalorder %s3753_s0, %s3753_s0 }
0x110b   :  { %p4534_p10 = scmp.ne.s32.totalorder %s3753_s0, %s4533_s7  ;;  %p4539_p12 = scmp.lt.s32.totalorder %s4533_s7, %s4533_s7 }
0x110d   :  { %p4540_p13 = por %p4539_p12, %p4538_p11 }
0x110f   :  { %p4541_p0 = pnand %p4540_p13, %p4534_p10 }
0x1114   :  { %v4390_v55 = vpop.eup %4389 }
0x1115   :  { %v3325_v11 = vmul.f32 %v4390_v55, %v4388_v7 }
0x1117   :  { %v3326_v2 = vpack.c.bf16 %v3325_v11, %v3325_v11  ;;  %v3506_v4 = vrot.slane %v3325_v11, %v4938_v25 }
0x1119   :  { %3360 = vmatmul.mubr.bf16.vlgmr.msra.gmra.mrb[68].mxu1 %v3326_v2  ;;  %v3507_v12 = vcombine.low %v3506_v4, %v3506_v4  ;;  %3401 = vmatmul.mubr.bf16.vlgmr.msra.gmra.mrb[72].mxu0 %v3326_v2 }
0x111a   :  { %3977 = vmatpush3.bf16.msra.mxu1 %v4199_v13  ;;  %3992 = vmatprep.mubr.msk.bf16.mxu1 %vm4616_vm9, %v4615_v8 }
0x111b   :  { %v5720_v6 = vsel %vm112_vm0, %v3523_v27, %v3507_v12  ;;  %3978 = vmatprep.subr.bf16.mxu1 %v4615_v8  ;;  %4004 = vmatprep.mubr.msk.bf16.mxu0 %vm4616_vm9, %v4615_v8 }
0x111c   :  { %3997 = vmatpush3.bf16.msra.mxu0 %v4207_v30 }
0x111d   :  { %3998 = vmatprep.subr.bf16.mxu0 %v4615_v8 }
0x111e   :  { %3979 = vmatpush3.bf16.msra.mxu1 %v4200_v24 }
0x111f   :  { %3980 = vmatprep.subr.bf16.mxu1 %v4615_v8 }
0x1120   :  { %3999 = vmatpush3.bf16.msra.mxu0 %v4208_v33 }
0x1121   :  { %4000 = vmatprep.subr.bf16.mxu0 %v4615_v8 }
0x1122   :  { %3981 = vmatpush3.bf16.msra.mxu1 %v4201_v21 }
0x1123   :  { %3982 = vmatprep.subr.bf16.mxu1 %v4615_v8 }
0x1124   :  { %4001 = vmatpush3.bf16.msra.mxu0 %v4209_v17 }
0x1125   :  { %4002 = vmatprep.subr.bf16.mxu0 %v4615_v8 }
0x1126   :  { %3983 = vmatpush3.bf16.msra.mxu1 %v4202_v18 }
0x1127   :  { %3984 = vmatprep.subr.bf16.mxu1 %v4615_v8 }
0x1128   :  { %4003 = vmatpush3.bf16.msra.mxu0 %v4210_v14 }
0x112a   :  { %3985 = vmatpush3.bf16.msra.mxu1 %v4203_v23 }
0x112b   :  { %3986 = vmatprep.subr.bf16.mxu1 %v4615_v8 }
0x112e   :  { %3987 = vmatpush3.bf16.msra.mxu1 %v4204_v20 }
0x112f   :  { %3988 = vmatprep.subr.bf16.mxu1 %v4615_v8 }
0x1132   :  { %3989 = vmatpush3.bf16.msra.mxu1 %v4205_v1 }
0x1133   :  { %3990 = vmatprep.subr.bf16.mxu1 %v4615_v8 }
0x1136   :  { %3991 = vmatpush3.bf16.msra.mxu1 %v4206_v10 }
0x11ec   :  { %v3361_v0 = vpop.f32.mrb[68].mxu1  ;;  %v3402_v9 = vpop.f32.mrb[72].mxu0 }
0x11ed   :  { %v3363_v28 = vpop.f32.mrb[69].mxu1  ;;  %v3404_v3 = vpop.f32.mrb[73].mxu0 }
0x11ee   :  { %v3413_v34 = vcombine.low %v3361_v0, %v3363_v28  ;;  %v3414_v36 = vcombine.low %v3402_v9, %v3404_v3  ;;  %v3365_v37 = vpop.f32.mrb[70].mxu1  ;;  %v3406_v38 = vpop.f32.mrb[74].mxu0 }
0x11ef   :  { %v3366_v39 = vpop.f32.mrb[71].mxu1  ;;  %v3407_v40 = vpop.f32.mrb[75].mxu0 }
0x11f0   :  { %v3421_v16 = vrot.slane %v3413_v34, %v4938_v25  ;;  %v3428_v35 = vrot.slane %v3414_v36, %v4938_v25 }
0x11f2   :  { %v3429_v41 = vcombine.low %v3421_v16, %v3428_v35 }
0x11f4   :  { %v3431_v43 = vadd.f32 %v3429_v41, %v5865_v42 }
0x11f6   :  { %v3934_v44 = vmul.f32 -1.442695, %v3431_v43  ;;  %v3442_v45 = vrot.slane %v3431_v43, 6  ;;  %v3439_v49 = vrot.slane %v3431_v43, 4 }
0x11f8   :  { %4391 = vpow2.f32 %v3934_v44  ;;  %v3935_v46 = vmul.f32 -1.442695, %v3442_v45 }
0x11fa   :  { %4393 = vpow2.f32 %v3935_v46 }
0x1202   :  { %v4392_v47 = vpop.eup %4391 }
0x1203   :  { %v3435_v48 = vadd.f32 1.0, %v4392_v47 }
0x1204   :  { %v4394_v50 = vpop.eup %4393 }
0x1205   :  { %4395 = vrcp.f32 %v3435_v48  ;;  %v3447_v54 = vadd.f32 1.0, %v4394_v50 }
0x1206   :  { %4397 = vtanh.f32 %v3439_v49 }
0x1207   :  { %4399 = vrcp.f32 %v3447_v54 }
0x120f   :  { %v4396_v51 = vpop.eup %4395 }
0x1210   :  { %v3451_v52 = vrot.slane %v4396_v51, 2  ;;  %v4398_v53 = vpop.eup %4397 }
0x1211   :  { %v3454_v58 = vmul.f32 %v4398_v53, %v4396_v51  ;;  %v4400_v32 = vpop.eup %4399 }
0x1212   :  { %v3453_v57 = vmul.f32 %v3451_v52, %v5710_v19 }
0x1214   :  { %v3455_v31 = vadd.f32 %v3454_v58, %v3453_v57 }
0x1216   :  { %4401 = vtanh.f32 %v3455_v31  ;;  %3529 = vst [vmem:[#allocation11 + $0x2] sm:$0x3] %v3455_v31 }
0x1220   :  { %v4402_v59 = vpop.eup %4401 }
0x1221   :  { %v3457_v60 = vmul.f32 %v4402_v59, %v4400_v32 }
0x1223   :  { %v3510_v61 = vcombine.low %v3457_v60, %v3457_v60  ;;  %3527 = vst [vmem:[#allocation9 + $0x2] sm:$0x3] %v3457_v60 }
0x1225   :  { %v3517_v62 = vrot.slane %v3510_v61, %v4938_v25  ;;  %v3936_v25 = vld [vmem:[%s5836_s11] ss:$0 sm:$0xff] }
0x1227   :  { %v3518_v63 = vcombine.low %v3517_v62, %v3517_v62 }
0x1229   :  { %v3525_v29 = vsel %vm1809_vm8, %v5720_v6, %v3518_v63 }
0x122a   :  { %v3530_v15 = vpack.c.bf16 %v3525_v29, %v5614_v5 }
0x122c   :  { %3993 = vmatmul.mubr.bf16.vlgmr.msra.gmra.mrb[72].mxu1 %v3530_v15 }
0x12ff   :  { %v3636_v22 = vpop.f32.mrb[72].mxu1 }
0x1300   :  { %v3637_v19 = vadd.f32 %v3936_v25, %v3636_v22  ;;  %v3994_v5 = vpop.f32.mrb[73].mxu1 }
0x1301   :  { %v3639_v26 = vpop.f32.mrb[74].mxu1 }
0x1302   :  { %v3645_v7 = vmul.f32 0.01, %v3637_v19  ;;  %v3640_v55 = vadd.f32 %v3936_v25, %v3639_v26  ;;  %v3995_v11 = vpop.f32.mrb[75].mxu1  ;;  %vm3643_vm10 = vcmp.gt.f32.partialorder %v3637_v19, 0.0 }
0x1304   :  { %vm3644_vm11 = vcmp.gt.f32.partialorder %v3640_v55, 0.0  ;;  %v3646_v56 = vmul.f32 0.01, %v3640_v55  ;;  %v3647_v2 = vsel %vm3643_vm10, %v3637_v19, %v3645_v7 }
0x1306   :  { %v3648_v4 = vsel %vm3644_vm11, %v3640_v55, %v3646_v56 }
0x1307   :  { %v3649_v12 = vpack.c.bf16 %v3648_v4, %v3647_v2 }
0x1309   :  { %4005 = vmatmul.mubr.msk.bf16.vlgmr.msra.gmra.mrb[76].mxu0 %vm316_vm6, %v3649_v12 }
0x130a   :  { %4544 = shalt.err (!%p4541_p0)
}
0x130b   :  { %s4545_s17 = scalar_lea.hbm %s5840_s15, 64 }
0x130c   :  { %p4546_p1 = scmp.ne.s32.totalorder %s5840_s15, %s4545_s17  ;;  %p4549_p2 = scmp.lt.u32.totalorder %s4545_s17, %s5840_s15 }
0x130e   :  { %p4551_p3 = pnand %p4549_p2, %p4546_p1 }
0x1310   :  { %4554 = shalt.err (!%p4551_p3)
}
0x1311   :  { %s4618_s19 = smov 32   ;;  %s4619_s3 = smov 2  }
0x1312   :  { %3758 = dma.vmem_to_hbm [thread:$0]  %s3753_s0, 64, %s5840_s15, [#allocation10], %s4618_s19, %s4618_s19, %s4619_s3  }
0x1313   :  { %s4620_s25 = smov [#allocation11]  }
0x1314   :  { %s3764_s26 = sshll.u32 %s4620_s25, 4  ;;  %s3765_s26 = int_to_ptr.vmem [resolvable:$true] %s3764_s26 }
0x1315   :  { %s4555_s27 = scalar_lea.vmem %s3765_s26, 64  ;;  %p4560_p5 = scmp.lt.s32.totalorder %s3765_s26, %s3765_s26 }
0x1316   :  { %p4556_p4 = scmp.ne.s32.totalorder %s3765_s26, %s4555_s27  ;;  %p4561_p6 = scmp.lt.s32.totalorder %s4555_s27, %s4555_s27 }
0x1318   :  { %p4562_p7 = por %p4561_p6, %p4560_p5 }
0x131a   :  { %p4563_p8 = pnand %p4562_p7, %p4556_p4 }
0x131c   :  { %4566 = shalt.err (!%p4563_p8)
}
0x131d   :  { %s4567_s29 = scalar_lea.hbm %s5841_s16, 64 }
0x131e   :  { %p4568_p9 = scmp.ne.s32.totalorder %s5841_s16, %s4567_s29  ;;  %p4571_p10 = scmp.lt.u32.totalorder %s4567_s29, %s5841_s16 }
0x1320   :  { %p4573_p11 = pnand %p4571_p10, %p4568_p9 }
0x1322   :  { %4576 = shalt.err (!%p4573_p11)
}
0x1323   :  { %3770 = dma.vmem_to_hbm [thread:$0]  %s3765_s26, 64, %s5841_s16, [#allocation10], %s4618_s19, %s4618_s19, %s4619_s3  }
0x1324   :  { %v3945_v27 = vld [vmem:[%s5838_s13] ss:$0 sm:$0xff]  ;;  %s4621_s12 = smov [#allocation8]  }
0x1325   :  { %s3740_s0 = sshll.u32 %s4621_s12, 4  ;;  %s3741_s0 = int_to_ptr.vmem [resolvable:$true] %s3740_s0 }
0x1326   :  { %s4577_s7 = scalar_lea.vmem %s3741_s0, 256  ;;  %p4582_p13 = scmp.lt.s32.totalorder %s3741_s0, %s3741_s0 }
0x1327   :  { %p4578_p12 = scmp.ne.s32.totalorder %s3741_s0, %s4577_s7  ;;  %p4583_p0 = scmp.lt.s32.totalorder %s4577_s7, %s4577_s7 }
0x1329   :  { %p4584_p1 = por %p4583_p0, %p4582_p13 }
0x132b   :  { %p4585_p2 = pnand %p4584_p1, %p4578_p12 }
0x13dc   :  { %v3726_v6 = vpop.f32.mrb[76].mxu0 }
0x13dd   :  { %v3727_v13 = vadd.f32 %v3945_v27, %v3726_v6  ;;  %v4006_v8 = vpop.f32.mrb[77].mxu0 }
0x13de   :  { %v3729_v24 = vpop.f32.mrb[78].mxu0 }
0x13df   :  { %3733 = vst [vmem:[#allocation8] sm:$0xff] %v3727_v13  ;;  %v3730_v21 = vadd.f32 %v3945_v27, %v3729_v24  ;;  %v4007_v18 = vpop.f32.mrb[79].mxu0 }
0x13e1   :  { %3734 = vst [vmem:[#allocation8 + $0x8] sm:$0xff] %v3730_v21 }
0x13e2   :  { %4588 = shalt.err (!%p4585_p2)
}
0x13e3   :  { %s4589_s11 = scalar_lea.hbm %s5839_s14, 256 }
0x13e4   :  { %p4590_p3 = scmp.ne.s32.totalorder %s5839_s14, %s4589_s11  ;;  %p4593_p4 = scmp.lt.u32.totalorder %s4589_s11, %s5839_s14 }
0x13e6   :  { %p4595_p5 = pnand %p4593_p4, %p4590_p3 }
0x13e8   :  { %4598 = shalt.err (!%p4595_p5)
}
0x13e9   :  { %s4622_s9 = smov 128   ;;  %s4623_s18 = smov 8  }
0x13ea   :  { %3746 = dma.vmem_to_hbm [thread:$0]  %s3741_s0, 256, %s5839_s14, [#allocation4], %s4622_s9, %s4622_s9, %s4623_s18  }
0x13eb   :  { %4603 = dma.done.wait [#allocation4], 256  }
0x13ec   :  { %4604 = vsyncadd [#allocation4], 4294967040 }
0x13ed   :  { %4605 = dma.done.wait [#allocation10], 128  }
0x13ee   :  { %4606 = vsyncadd [#allocation10], 4294967168 }
0x13ef   :  { %3780 = vsyncpa [#allocation3], 1 }
0x13f0   :  { %3781 = vsyncpa [#allocation6], 1 }
0x13f1   :  { %3782 = vsyncpa [#allocation4], 1 }
0x13f2   :  { %3783 = vsyncpa [#allocation10], 1 }

</bundles_post_ra>
